<compile_context>
chip_gen: v7x
topology: tpu7x:2x2x1
jax: 0.10.0
libtpu: 0.0.40
codegen_flags: <defaults>
</compile_context>

<pallas_src>
import functools

import jax
import jax.numpy as jnp
from jax.experimental import pallas as pl
from jax.experimental.pallas import tpu as pltpu


# ---------------------------------------------------------------------------
# VMEM budget (generation-aware) and tile pickers
# ---------------------------------------------------------------------------
@functools.lru_cache(maxsize=1)
def _vmem_budget_bytes():
    """~72% of physical VMEM: ~92 MiB on v5e/v6e, ~46 MiB on v7x."""
    try:
        cap = pltpu.get_tpu_info().vmem_capacity_bytes
    except Exception:
        cap = 64 * 1024 * 1024  # conservative fallback (v7x-sized)
    return int(cap * 0.72)


def _divisors_of(n, candidates):
    ds = [c for c in candidates if c <= n and n % c == 0]
    return ds if ds else [n]


def _agg_tiles(n, fout, budget):
    """Pick (tm, tk) for the aggregation kernel, maximizing the A-tile area
    under the VMEM budget (double-buffered bf16 A tile + resident bf16 XW +
    f32 accumulator + double-buffered output)."""
    tms = _divisors_of(n, (1024, 512, 256, 128, 64, 32, 16, 8))
    tks = _divisors_of(n, (4096, 2048, 1024, 512, 256, 128))
    xw_bytes = 2 * n * fout * 2                       # resident bf16 XW (x2 conservative)
    best = None
    for tm in tms:
        for tk in tks:
            a_bytes = 2 * tm * tk * 2                 # double-buffered bf16 A tile
            acc_bytes = tm * fout * 4                 # f32 accumulator scratch
            out_bytes = 2 * tm * fout * 4             # double-buffered output tile
            if xw_bytes + a_bytes + acc_bytes + out_bytes > budget:
                continue
            if best is None or tm * tk > best[0] * best[1]:
                best = (tm, tk)
    return best if best is not None else (tms[-1], tks[-1])


def _struct_tiles(n, d, budget, out_itemsize):
    tms = _divisors_of(n, (1024, 512, 256, 128, 64, 32, 16, 8))
    tns = _divisors_of(n, (4096, 2048, 1024, 512, 256, 128))
    best = None
    for tm in tms:
        for tn in tns:
            z_bytes = 2 * (tm * d + d * tn) * 2       # bf16 Z row tile + Z_T col tile
            o_bytes = 2 * tm * tn * out_itemsize      # double-buffered output tile
            if z_bytes + o_bytes > budget:
                continue
            if best is None or tm * tn > best[0] * best[1]:
                best = (tm, tn)
    return best if best is not None else (tms[-1], tns[-1])


# ---------------------------------------------------------------------------
# Kernel 1: feature transform  XW = X @ W  (tiny; hoisted out of aggregation)
# ---------------------------------------------------------------------------
def _xw_kernel(x_ref, w_ref, o_ref):
    xw = jnp.dot(x_ref[...].astype(jnp.float32), w_ref[...],
                 preferred_element_type=jnp.float32)
    o_ref[...] = xw.astype(o_ref.dtype)


def xw_matmul(x, w):
    n, fin = x.shape
    fout = w.shape[1]
    budget = _vmem_budget_bytes()
    itemsize = jnp.dtype(x.dtype).itemsize
    tms = _divisors_of(n, (4096, 2048, 1024, 512, 256, 128, 64, 32, 16, 8))
    tm = next((t for t in tms
               if 2 * t * fin * itemsize + 2 * fin * fout * 4 + 2 * t * fout * 2 <= budget),
              tms[-1])
    return pl.pallas_call(
        _xw_kernel,
        out_shape=jax.ShapeDtypeStruct((n, fout), jnp.bfloat16),
        grid_spec=pltpu.PrefetchScalarGridSpec(
            num_scalar_prefetch=0,
            grid=(n // tm,),
            in_specs=[
                pl.BlockSpec((tm, fin), lambda i: (i, 0)),
                pl.BlockSpec((fin, fout), lambda i: (0, 0)),   # constant block: fetched once
            ],
            out_specs=pl.BlockSpec((tm, fout), lambda i: (i, 0)),
        ),
        compiler_params=pltpu.CompilerParams(
            dimension_semantics=("parallel",),
            vmem_limit_bytes=budget),
    )(x, w)


# ---------------------------------------------------------------------------
# Kernel 2: neighborhood aggregation  out = relu(A @ XW)
#   * A streamed bf16, K-tiled (tm x tk tiles), f32 MXU accumulation.
#   * XW resident in VMEM (constant block index) and K-sliced in-kernel.
#   * NOTE: the output block index is constant along k and k is the INNERMOST
#     grid axis -> output / accumulator stay resident across the reduction.
#     Do not reorder the grid axes.
# ---------------------------------------------------------------------------
def _gcn_agg_kernel(a_ref, xw_ref, o_ref, acc_ref, *, tk):
    k = pl.program_id(1)

    @pl.when(k == 0)
    def _():
        acc_ref[...] = jnp.zeros_like(acc_ref)

    k0 = pl.multiple_of(k * tk, tk)
    acc_ref[...] += jnp.dot(a_ref[...], xw_ref[pl.ds(k0, tk), :],
                            preferred_element_type=jnp.float32)

    @pl.when(k == pl.num_programs(1) - 1)
    def _():
        o_ref[...] = jnp.maximum(acc_ref[...], 0.0).astype(o_ref.dtype)


def gcn_aggregate(a_bf16, xw_bf16, out_dtype=jnp.bfloat16):
    n = a_bf16.shape[0]
    fout = xw_bf16.shape[1]
    budget = _vmem_budget_bytes()
    tm, tk = _agg_tiles(n, fout, budget)
    return pl.pallas_call(
        functools.partial(_gcn_agg_kernel, tk=tk),
        out_shape=jax.ShapeDtypeStruct((n, fout), out_dtype),
        grid_spec=pltpu.PrefetchScalarGridSpec(
            num_scalar_prefetch=0,
            grid=(n // tm, n // tk),
            in_specs=[
                pl.BlockSpec((tm, tk), lambda i, k: (i, k)),   # A tile (bf16, streamed)
                pl.BlockSpec((n, fout), lambda i, k: (0, 0)),  # XW resident (fetched once)
            ],
            out_specs=pl.BlockSpec((tm, fout), lambda i, k: (i, 0)),
            scratch_shapes=[pltpu.VMEM((tm, fout), jnp.float32)],
        ),
        compiler_params=pltpu.CompilerParams(
            dimension_semantics=("parallel", "arbitrary"),
            vmem_limit_bytes=budget),
    )(a_bf16, xw_bf16)


def gcn_layer(a_bf16, h, w, out_dtype=jnp.bfloat16):
    return gcn_aggregate(a_bf16, xw_matmul(h, w), out_dtype=out_dtype)


# ---------------------------------------------------------------------------
# Kernel 3: structure decoder  A_hat[i, j] = sigmoid(Z_i . Z_j)
#   * Z_T pre-transposed once in the wrapper -> standard MXU contraction,
#     no per-tile transpose.
#   * sigmoid via EUP exp + approx reciprocal; bf16 lane-dense output tiles.
# ---------------------------------------------------------------------------
def _struct_decoder_kernel(zi_ref, zjt_ref, o_ref):
    s = jnp.dot(zi_ref[...], zjt_ref[...], preferred_element_type=jnp.float32)
    sig = pl.reciprocal(1.0 + jnp.exp(-s), approx=True)
    o_ref[...] = sig.astype(o_ref.dtype)


def struct_decoder(z, out_dtype=jnp.bfloat16):
    n, d = z.shape
    zt = z.T                                   # one small [d, N] transpose in the wrapper
    budget = _vmem_budget_bytes()
    tm, tn = _struct_tiles(n, d, budget, jnp.dtype(out_dtype).itemsize)
    return pl.pallas_call(
        _struct_decoder_kernel,
        out_shape=jax.ShapeDtypeStruct((n, n), out_dtype),
        grid_spec=pltpu.PrefetchScalarGridSpec(
            num_scalar_prefetch=0,
            grid=(n // tm, n // tn),
            in_specs=[
                pl.BlockSpec((tm, d), lambda i, j: (i, 0)),
                pl.BlockSpec((d, tn), lambda i, j: (0, j)),
            ],
            out_specs=pl.BlockSpec((tm, tn), lambda i, j: (i, j)),
        ),
        compiler_params=pltpu.CompilerParams(
            dimension_semantics=("parallel", "parallel"),
            vmem_limit_bytes=budget),
    )(z, zt)


# ---------------------------------------------------------------------------
# Model: parameter init + forward
# ---------------------------------------------------------------------------
def init_params(key, dim_in, dim_out=16):
    dims = [(dim_in, 64), (64, 32), (32, dim_out), (dim_out, dim_in)]
    keys = jax.random.split(key, len(dims))
    params = []
    for k, (fi, fo) in zip(keys, dims):
        limit = jnp.sqrt(6.0 / (fi + fo))      # Glorot-uniform style deterministic init
        params.append(jax.random.uniform(k, (fi, fo), jnp.float32, -limit, limit))
    return params


def dominant_forward(a_norm, x, params):
    w1, w2, w3, w4 = params
    a_bf16 = a_norm.astype(jnp.bfloat16)       # cast A once; every layer streams it in bf16
    h = gcn_layer(a_bf16, x, w1)               # [N, 64]      bf16
    h = gcn_layer(a_bf16, h, w2)               # [N, 32]      bf16
    z = gcn_layer(a_bf16, h, w3)               # [N, dim_out] bf16
    a_hat = struct_decoder(z)                  # [N, N]       bf16 (halved writeback)
    x_hat = gcn_layer(a_bf16, z, w4, out_dtype=jnp.float32)   # [N, dim_in] f32
    return a_hat, x_hat


def dominant_forward_ref(a_norm, x, params):
    """Pure-f32 JAX reference matching the original PyTorch DOMINANT model."""
    def gcn(h, w):
        return jnp.maximum(a_norm @ (h @ w), 0.0)
    w1, w2, w3, w4 = params
    h = gcn(x, w1)
    h = gcn(h, w2)
    z = gcn(h, w3)
    a_hat = jax.nn.sigmoid(z @ z.T)
    x_hat = gcn(z, w4)
    return a_hat, x_hat


def make_a_norm(key, n):
    # random symmetric adjacency with self loops, D^{-1/2} (A+I) D^{-1/2}
    a = (jax.random.uniform(key, (n, n)) < 0.05).astype(jnp.float32)
    a = jnp.maximum(a, a.T)
    a = a + jnp.eye(n, dtype=jnp.float32)
    deg = jnp.sum(a, axis=1)
    d_inv_sqrt = 1.0 / jnp.sqrt(deg)
    return a * d_inv_sqrt[:, None] * d_inv_sqrt[None, :]


if __name__ == "__main__":
    N, DIM_IN, DIM_OUT = 256, 32, 16
    key = jax.random.PRNGKey(0)
    k_a, k_x, k_p = jax.random.split(key, 3)

    a_norm = make_a_norm(k_a, N)
    x = jax.random.normal(k_x, (N, DIM_IN), jnp.float32)
    params = init_params(k_p, DIM_IN, DIM_OUT)

    fwd = jax.jit(dominant_forward)
    a_hat, x_hat = fwd(a_norm, x, params)
    jax.block_until_ready((a_hat, x_hat))

    assert a_hat.shape == (N, N) and x_hat.shape == (N, DIM_IN)

    # Compare against the true f32 DOMINANT reference; tolerance absorbs the
    # bf16 A / bf16 activation data path and the approx-reciprocal sigmoid.
    a_ref, x_ref = dominant_forward_ref(a_norm, x, params)
    a_hat_f32 = a_hat.astype(jnp.float32)
    assert jnp.allclose(a_hat_f32, a_ref, atol=5e-2, rtol=5e-2), float(
        jnp.max(jnp.abs(a_hat_f32 - a_ref)))
    assert jnp.allclose(x_hat, x_ref, atol=5e-2, rtol=5e-2), float(
        jnp.max(jnp.abs(x_hat - x_ref)))

    print("KERNEL_OK")
</pallas_src>

<mosaic_0001>
module attributes {stable_mosaic.version = 11 : i64} {
  func.func @_xw_kernel(%arg0: i32, %arg1: memref<256x32xf32, #tpu.memory_space<vmem>>, %arg2: memref<32x64xf32, #tpu.memory_space<vmem>>, %arg3: memref<256x64xbf16, #tpu.memory_space<vmem>>) attributes {dimension_semantics = [#tpu.dimension_semantics<parallel>], iteration_bounds = array<i64: 1>, scalar_prefetch = 0 : i64, scratch_operands = 0 : i64, tpu.core_type = #tpu.core_type<tc>, window_params = [{transform_indices = @transform_0, window_bounds = array<i64: 256, 32>}, {pipeline_mode = #tpu.pipeline_mode<synchronous>, transform_indices = @transform_1, window_bounds = array<i64: 32, 64>}, {transform_indices = @transform_2, window_bounds = array<i64: 256, 64>}]} {
    %c0 = arith.constant 0 : index
    %c0_0 = arith.constant 0 : index
    %0 = vector.load %arg1[%c0, %c0_0] : memref<256x32xf32, #tpu.memory_space<vmem>>, vector<256x32xf32>
    %c0_1 = arith.constant 0 : index
    %c0_2 = arith.constant 0 : index
    %1 = vector.load %arg2[%c0_1, %c0_2] : memref<32x64xf32, #tpu.memory_space<vmem>>, vector<32x64xf32>
    %cst = arith.constant dense<0.000000e+00> : vector<256x64xf32>
    %2 = tpu.matmul %0, %1, %cst {dimension_numbers = #tpu.dot_dimension_numbers<[1], [0], [0], [1], [0, 0, 1, 1], [], []>} : vector<256x32xf32>, vector<32x64xf32>, vector<256x64xf32> -> vector<256x64xf32>
    %3 = arith.truncf %2 : vector<256x64xf32> to vector<256x64xbf16>
    %c0_3 = arith.constant 0 : index
    %c0_4 = arith.constant 0 : index
    %4 = vector.load %arg3[%c0_3, %c0_4] : memref<256x64xbf16, #tpu.memory_space<vmem>>, vector<256x64xbf16>
    tpu.vector_store %arg3[%c0_3, %c0_4], %3 {strides = array<i32>} : memref<256x64xbf16, #tpu.memory_space<vmem>>, vector<256x64xbf16>,
    return
  }
  func.func @transform_0(%arg0: i32) -> (i32, i32) {
    %c0_i32 = arith.constant 0 : i32
    %c0_i32_0 = arith.constant 0 : i32
    return %arg0, %c0_i32 : i32, i32
  }
  func.func @transform_1(%arg0: i32) -> (i32, i32) {
    %c0_i32 = arith.constant 0 : i32
    %c0_i32_0 = arith.constant 0 : i32
    %c0_i32_1 = arith.constant 0 : i32
    return %c0_i32, %c0_i32_0 : i32, i32
  }
  func.func @transform_2(%arg0: i32) -> (i32, i32) {
    %c0_i32 = arith.constant 0 : i32
    %c0_i32_0 = arith.constant 0 : i32
    return %arg0, %c0_i32 : i32, i32
  }
}

module attributes {stable_mosaic.version = 11 : i64} {
  func.func @_xw_kernel(%arg0: i32, %arg1: memref<256x64xbf16, #tpu.memory_space<vmem>>, %arg2: memref<64x32xf32, #tpu.memory_space<vmem>>, %arg3: memref<256x32xbf16, #tpu.memory_space<vmem>>) attributes {dimension_semantics = [#tpu.dimension_semantics<parallel>], iteration_bounds = array<i64: 1>, scalar_prefetch = 0 : i64, scratch_operands = 0 : i64, tpu.core_type = #tpu.core_type<tc>, window_params = [{transform_indices = @transform_0, window_bounds = array<i64: 256, 64>}, {pipeline_mode = #tpu.pipeline_mode<synchronous>, transform_indices = @transform_1, window_bounds = array<i64: 64, 32>}, {transform_indices = @transform_2, window_bounds = array<i64: 256, 32>}]} {
    %c0 = arith.constant 0 : index
    %c0_0 = arith.constant 0 : index
    %0 = vector.load %arg1[%c0, %c0_0] : memref<256x64xbf16, #tpu.memory_space<vmem>>, vector<256x64xbf16>
    %1 = arith.extf %0 : vector<256x64xbf16> to vector<256x64xf32>
    %c0_1 = arith.constant 0 : index
    %c0_2 = arith.constant 0 : index
    %2 = vector.load %arg2[%c0_1, %c0_2] : memref<64x32xf32, #tpu.memory_space<vmem>>, vector<64x32xf32>
    %cst = arith.constant dense<0.000000e+00> : vector<256x32xf32>
    %3 = tpu.matmul %1, %2, %cst {dimension_numbers = #tpu.dot_dimension_numbers<[1], [0], [0], [1], [0, 0, 1, 1], [], []>} : vector<256x64xf32>, vector<64x32xf32>, vector<256x32xf32> -> vector<256x32xf32>
    %4 = arith.truncf %3 : vector<256x32xf32> to vector<256x32xbf16>
    %c0_3 = arith.constant 0 : index
    %c0_4 = arith.constant 0 : index
    %5 = vector.load %arg3[%c0_3, %c0_4] : memref<256x32xbf16, #tpu.memory_space<vmem>>, vector<256x32xbf16>
    tpu.vector_store %arg3[%c0_3, %c0_4], %4 {strides = array<i32>} : memref<256x32xbf16, #tpu.memory_space<vmem>>, vector<256x32xbf16>,
    return
  }
  func.func @transform_0(%arg0: i32) -> (i32, i32) {
    %c0_i32 = arith.constant 0 : i32
    %c0_i32_0 = arith.constant 0 : i32
    return %arg0, %c0_i32 : i32, i32
  }
  func.func @transform_1(%arg0: i32) -> (i32, i32) {
    %c0_i32 = arith.constant 0 : i32
    %c0_i32_0 = arith.constant 0 : i32
    %c0_i32_1 = arith.constant 0 : i32
    return %c0_i32, %c0_i32_0 : i32, i32
  }
  func.func @transform_2(%arg0: i32) -> (i32, i32) {
    %c0_i32 = arith.constant 0 : i32
    %c0_i32_0 = arith.constant 0 : i32
    return %arg0, %c0_i32 : i32, i32
  }
}

module attributes {stable_mosaic.version = 11 : i64} {
  func.func @_gcn_agg_kernel(%arg0: i32, %arg1: i32, %arg2: memref<256x256xbf16, #tpu.memory_space<vmem>>, %arg3: memref<256x32xbf16, #tpu.memory_space<vmem>>, %arg4: memref<256x32xbf16, #tpu.memory_space<vmem>>, %arg5: memref<256x32xf32, #tpu.memory_space<vmem>>) attributes {dimension_semantics = [#tpu.dimension_semantics<parallel>, #tpu.dimension_semantics<arbitrary>], iteration_bounds = array<i64: 1, 1>, scalar_prefetch = 0 : i64, scratch_operands = 1 : i64, tpu.core_type = #tpu.core_type<tc>, window_params = [{transform_indices = @transform_0, window_bounds = array<i64: 256, 256>}, {pipeline_mode = #tpu.pipeline_mode<synchronous>, transform_indices = @transform_1, window_bounds = array<i64: 256, 32>}, {transform_indices = @transform_2, window_bounds = array<i64: 256, 32>}]} {
    %c0_i32 = arith.constant 0 : i32
    %0 = arith.cmpi eq, %arg1, %c0_i32 : i32
    %1 = arith.extui %0 : i1 to i32
    %c0_i32_0 = arith.constant 0 : i32
    %2 = arith.cmpi ne, %1, %c0_i32_0 : i32
    scf.if %2 {
      %cst_9 = arith.constant 0.000000e+00 : f32
      %15 = vector.broadcast %cst_9 : f32 to vector<256x32xf32>
      %c0_10 = arith.constant 0 : index
      %c0_11 = arith.constant 0 : index
      %16 = vector.load %arg5[%c0_10, %c0_11] : memref<256x32xf32, #tpu.memory_space<vmem>>, vector<256x32xf32>
      tpu.vector_store %arg5[%c0_10, %c0_11], %15 {strides = array<i32>} : memref<256x32xf32, #tpu.memory_space<vmem>>, vector<256x32xf32>,
    } else {
    }
    %c256_i32 = arith.constant 256 : i32
    %3 = arith.muli %arg1, %c256_i32 : i32
    %4 = tpu.assume_multiple %3, 256 : i32
    %c0 = arith.constant 0 : index
    %c0_1 = arith.constant 0 : index
    %5 = vector.load %arg5[%c0, %c0_1] : memref<256x32xf32, #tpu.memory_space<vmem>>, vector<256x32xf32>
    %c0_2 = arith.constant 0 : index
    %c0_3 = arith.constant 0 : index
    %6 = vector.load %arg2[%c0_2, %c0_3] : memref<256x256xbf16, #tpu.memory_space<vmem>>, vector<256x256xbf16>
    %7 = arith.index_cast %4 : i32 to index
    %c0_4 = arith.constant 0 : index
    %8 = vector.load %arg3[%7, %c0_4] : memref<256x32xbf16, #tpu.memory_space<vmem>>, vector<256x32xbf16>
    %cst = arith.constant dense<0.000000e+00> : vector<256x32xf32>
    %9 = tpu.matmul %6, %8, %cst {dimension_numbers = #tpu.dot_dimension_numbers<[1], [0], [0], [1], [0, 0, 1, 1], [], []>} : vector<256x256xbf16>, vector<256x32xbf16>, vector<256x32xf32> -> vector<256x32xf32>
    %10 = arith.addf %5, %9 : vector<256x32xf32>
    %c0_5 = arith.constant 0 : index
    %c0_6 = arith.constant 0 : index
    %11 = vector.load %arg5[%c0_5, %c0_6] : memref<256x32xf32, #tpu.memory_space<vmem>>, vector<256x32xf32>
    tpu.vector_store %arg5[%c0_5, %c0_6], %10 {strides = array<i32>} : memref<256x32xf32, #tpu.memory_space<vmem>>, vector<256x32xf32>,
    %c0_i32_7 = arith.constant 0 : i32
    %12 = arith.cmpi eq, %arg1, %c0_i32_7 : i32
    %13 = arith.extui %12 : i1 to i32
    %c0_i32_8 = arith.constant 0 : i32
    %14 = arith.cmpi ne, %13, %c0_i32_8 : i32
    scf.if %14 {
      %c0_9 = arith.constant 0 : index
      %c0_10 = arith.constant 0 : index
      %15 = vector.load %arg5[%c0_9, %c0_10] : memref<256x32xf32, #tpu.memory_space<vmem>>, vector<256x32xf32>
      %cst_11 = arith.constant 0.000000e+00 : f32
      %16 = vector.broadcast %cst_11 : f32 to vector<256x32xf32>
      %17 = arith.maximumf %15, %16 : vector<256x32xf32>
      %18 = arith.truncf %17 : vector<256x32xf32> to vector<256x32xbf16>
      %c0_12 = arith.constant 0 : index
      %c0_13 = arith.constant 0 : index
      %19 = vector.load %arg4[%c0_12, %c0_13] : memref<256x32xbf16, #tpu.memory_space<vmem>>, vector<256x32xbf16>
      tpu.vector_store %arg4[%c0_12, %c0_13], %18 {strides = array<i32>} : memref<256x32xbf16, #tpu.memory_space<vmem>>, vector<256x32xbf16>,
    } else {
    }
    return
  }
  func.func @transform_0(%arg0: i32, %arg1: i32) -> (i32, i32) {
    %c0_i32 = arith.constant 0 : i32
    return %arg0, %arg1 : i32, i32
  }
  func.func @transform_1(%arg0: i32, %arg1: i32) -> (i32, i32) {
    %c0_i32 = arith.constant 0 : i32
    %c0_i32_0 = arith.constant 0 : i32
    %c0_i32_1 = arith.constant 0 : i32
    return %c0_i32, %c0_i32_0 : i32, i32
  }
  func.func @transform_2(%arg0: i32, %arg1: i32) -> (i32, i32) {
    %c0_i32 = arith.constant 0 : i32
    %c0_i32_0 = arith.constant 0 : i32
    return %arg0, %c0_i32 : i32, i32
  }
}

module attributes {stable_mosaic.version = 11 : i64} {
  func.func @_gcn_agg_kernel(%arg0: i32, %arg1: i32, %arg2: memref<256x256xbf16, #tpu.memory_space<vmem>>, %arg3: memref<256x64xbf16, #tpu.memory_space<vmem>>, %arg4: memref<256x64xbf16, #tpu.memory_space<vmem>>, %arg5: memref<256x64xf32, #tpu.memory_space<vmem>>) attributes {dimension_semantics = [#tpu.dimension_semantics<parallel>, #tpu.dimension_semantics<arbitrary>], iteration_bounds = array<i64: 1, 1>, scalar_prefetch = 0 : i64, scratch_operands = 1 : i64, tpu.core_type = #tpu.core_type<tc>, window_params = [{transform_indices = @transform_0, window_bounds = array<i64: 256, 256>}, {pipeline_mode = #tpu.pipeline_mode<synchronous>, transform_indices = @transform_1, window_bounds = array<i64: 256, 64>}, {transform_indices = @transform_2, window_bounds = array<i64: 256, 64>}]} {
    %c0_i32 = arith.constant 0 : i32
    %0 = arith.cmpi eq, %arg1, %c0_i32 : i32
    %1 = arith.extui %0 : i1 to i32
    %c0_i32_0 = arith.constant 0 : i32
    %2 = arith.cmpi ne, %1, %c0_i32_0 : i32
    scf.if %2 {
      %cst_9 = arith.constant 0.000000e+00 : f32
      %15 = vector.broadcast %cst_9 : f32 to vector<256x64xf32>
      %c0_10 = arith.constant 0 : index
      %c0_11 = arith.constant 0 : index
      %16 = vector.load %arg5[%c0_10, %c0_11] : memref<256x64xf32, #tpu.memory_space<vmem>>, vector<256x64xf32>
      tpu.vector_store %arg5[%c0_10, %c0_11], %15 {strides = array<i32>} : memref<256x64xf32, #tpu.memory_space<vmem>>, vector<256x64xf32>,
    } else {
    }
    %c256_i32 = arith.constant 256 : i32
    %3 = arith.muli %arg1, %c256_i32 : i32
    %4 = tpu.assume_multiple %3, 256 : i32
    %c0 = arith.constant 0 : index
    %c0_1 = arith.constant 0 : index
    %5 = vector.load %arg5[%c0, %c0_1] : memref<256x64xf32, #tpu.memory_space<vmem>>, vector<256x64xf32>
    %c0_2 = arith.constant 0 : index
    %c0_3 = arith.constant 0 : index
    %6 = vector.load %arg2[%c0_2, %c0_3] : memref<256x256xbf16, #tpu.memory_space<vmem>>, vector<256x256xbf16>
    %7 = arith.index_cast %4 : i32 to index
    %c0_4 = arith.constant 0 : index
    %8 = vector.load %arg3[%7, %c0_4] : memref<256x64xbf16, #tpu.memory_space<vmem>>, vector<256x64xbf16>
    %cst = arith.constant dense<0.000000e+00> : vector<256x64xf32>
    %9 = tpu.matmul %6, %8, %cst {dimension_numbers = #tpu.dot_dimension_numbers<[1], [0], [0], [1], [0, 0, 1, 1], [], []>} : vector<256x256xbf16>, vector<256x64xbf16>, vector<256x64xf32> -> vector<256x64xf32>
    %10 = arith.addf %5, %9 : vector<256x64xf32>
    %c0_5 = arith.constant 0 : index
    %c0_6 = arith.constant 0 : index
    %11 = vector.load %arg5[%c0_5, %c0_6] : memref<256x64xf32, #tpu.memory_space<vmem>>, vector<256x64xf32>
    tpu.vector_store %arg5[%c0_5, %c0_6], %10 {strides = array<i32>} : memref<256x64xf32, #tpu.memory_space<vmem>>, vector<256x64xf32>,
    %c0_i32_7 = arith.constant 0 : i32
    %12 = arith.cmpi eq, %arg1, %c0_i32_7 : i32
    %13 = arith.extui %12 : i1 to i32
    %c0_i32_8 = arith.constant 0 : i32
    %14 = arith.cmpi ne, %13, %c0_i32_8 : i32
    scf.if %14 {
      %c0_9 = arith.constant 0 : index
      %c0_10 = arith.constant 0 : index
      %15 = vector.load %arg5[%c0_9, %c0_10] : memref<256x64xf32, #tpu.memory_space<vmem>>, vector<256x64xf32>
      %cst_11 = arith.constant 0.000000e+00 : f32
      %16 = vector.broadcast %cst_11 : f32 to vector<256x64xf32>
      %17 = arith.maximumf %15, %16 : vector<256x64xf32>
      %18 = arith.truncf %17 : vector<256x64xf32> to vector<256x64xbf16>
      %c0_12 = arith.constant 0 : index
      %c0_13 = arith.constant 0 : index
      %19 = vector.load %arg4[%c0_12, %c0_13] : memref<256x64xbf16, #tpu.memory_space<vmem>>, vector<256x64xbf16>
      tpu.vector_store %arg4[%c0_12, %c0_13], %18 {strides = array<i32>} : memref<256x64xbf16, #tpu.memory_space<vmem>>, vector<256x64xbf16>,
    } else {
    }
    return
  }
  func.func @transform_0(%arg0: i32, %arg1: i32) -> (i32, i32) {
    %c0_i32 = arith.constant 0 : i32
    return %arg0, %arg1 : i32, i32
  }
  func.func @transform_1(%arg0: i32, %arg1: i32) -> (i32, i32) {
    %c0_i32 = arith.constant 0 : i32
    %c0_i32_0 = arith.constant 0 : i32
    %c0_i32_1 = arith.constant 0 : i32
    return %c0_i32, %c0_i32_0 : i32, i32
  }
  func.func @transform_2(%arg0: i32, %arg1: i32) -> (i32, i32) {
    %c0_i32 = arith.constant 0 : i32
    %c0_i32_0 = arith.constant 0 : i32
    return %arg0, %c0_i32 : i32, i32
  }
}

module attributes {stable_mosaic.version = 11 : i64} {
  func.func @_gcn_agg_kernel(%arg0: i32, %arg1: i32, %arg2: memref<256x256xbf16, #tpu.memory_space<vmem>>, %arg3: memref<256x16xbf16, #tpu.memory_space<vmem>>, %arg4: memref<256x16xbf16, #tpu.memory_space<vmem>>, %arg5: memref<256x16xf32, #tpu.memory_space<vmem>>) attributes {dimension_semantics = [#tpu.dimension_semantics<parallel>, #tpu.dimension_semantics<arbitrary>], iteration_bounds = array<i64: 1, 1>, scalar_prefetch = 0 : i64, scratch_operands = 1 : i64, tpu.core_type = #tpu.core_type<tc>, window_params = [{transform_indices = @transform_0, window_bounds = array<i64: 256, 256>}, {pipeline_mode = #tpu.pipeline_mode<synchronous>, transform_indices = @transform_1, window_bounds = array<i64: 256, 16>}, {transform_indices = @transform_2, window_bounds = array<i64: 256, 16>}]} {
    %c0_i32 = arith.constant 0 : i32
    %0 = arith.cmpi eq, %arg1, %c0_i32 : i32
    %1 = arith.extui %0 : i1 to i32
    %c0_i32_0 = arith.constant 0 : i32
    %2 = arith.cmpi ne, %1, %c0_i32_0 : i32
    scf.if %2 {
      %cst_9 = arith.constant 0.000000e+00 : f32
      %15 = vector.broadcast %cst_9 : f32 to vector<256x16xf32>
      %c0_10 = arith.constant 0 : index
      %c0_11 = arith.constant 0 : index
      %16 = vector.load %arg5[%c0_10, %c0_11] : memref<256x16xf32, #tpu.memory_space<vmem>>, vector<256x16xf32>
      tpu.vector_store %arg5[%c0_10, %c0_11], %15 {strides = array<i32>} : memref<256x16xf32, #tpu.memory_space<vmem>>, vector<256x16xf32>,
    } else {
    }
    %c256_i32 = arith.constant 256 : i32
    %3 = arith.muli %arg1, %c256_i32 : i32
    %4 = tpu.assume_multiple %3, 256 : i32
    %c0 = arith.constant 0 : index
    %c0_1 = arith.constant 0 : index
    %5 = vector.load %arg5[%c0, %c0_1] : memref<256x16xf32, #tpu.memory_space<vmem>>, vector<256x16xf32>
    %c0_2 = arith.constant 0 : index
    %c0_3 = arith.constant 0 : index
    %6 = vector.load %arg2[%c0_2, %c0_3] : memref<256x256xbf16, #tpu.memory_space<vmem>>, vector<256x256xbf16>
    %7 = arith.index_cast %4 : i32 to index
    %c0_4 = arith.constant 0 : index
    %8 = vector.load %arg3[%7, %c0_4] : memref<256x16xbf16, #tpu.memory_space<vmem>>, vector<256x16xbf16>
    %cst = arith.constant dense<0.000000e+00> : vector<256x16xf32>
    %9 = tpu.matmul %6, %8, %cst {dimension_numbers = #tpu.dot_dimension_numbers<[1], [0], [0], [1], [0, 0, 1, 1], [], []>} : vector<256x256xbf16>, vector<256x16xbf16>, vector<256x16xf32> -> vector<256x16xf32>
    %10 = arith.addf %5, %9 : vector<256x16xf32>
    %c0_5 = arith.constant 0 : index
    %c0_6 = arith.constant 0 : index
    %11 = vector.load %arg5[%c0_5, %c0_6] : memref<256x16xf32, #tpu.memory_space<vmem>>, vector<256x16xf32>
    tpu.vector_store %arg5[%c0_5, %c0_6], %10 {strides = array<i32>} : memref<256x16xf32, #tpu.memory_space<vmem>>, vector<256x16xf32>,
    %c0_i32_7 = arith.constant 0 : i32
    %12 = arith.cmpi eq, %arg1, %c0_i32_7 : i32
    %13 = arith.extui %12 : i1 to i32
    %c0_i32_8 = arith.constant 0 : i32
    %14 = arith.cmpi ne, %13, %c0_i32_8 : i32
    scf.if %14 {
      %c0_9 = arith.constant 0 : index
      %c0_10 = arith.constant 0 : index
      %15 = vector.load %arg5[%c0_9, %c0_10] : memref<256x16xf32, #tpu.memory_space<vmem>>, vector<256x16xf32>
      %cst_11 = arith.constant 0.000000e+00 : f32
      %16 = vector.broadcast %cst_11 : f32 to vector<256x16xf32>
      %17 = arith.maximumf %15, %16 : vector<256x16xf32>
      %18 = arith.truncf %17 : vector<256x16xf32> to vector<256x16xbf16>
      %c0_12 = arith.constant 0 : index
      %c0_13 = arith.constant 0 : index
      %19 = vector.load %arg4[%c0_12, %c0_13] : memref<256x16xbf16, #tpu.memory_space<vmem>>, vector<256x16xbf16>
      tpu.vector_store %arg4[%c0_12, %c0_13], %18 {strides = array<i32>} : memref<256x16xbf16, #tpu.memory_space<vmem>>, vector<256x16xbf16>,
    } else {
    }
    return
  }
  func.func @transform_0(%arg0: i32, %arg1: i32) -> (i32, i32) {
    %c0_i32 = arith.constant 0 : i32
    return %arg0, %arg1 : i32, i32
  }
  func.func @transform_1(%arg0: i32, %arg1: i32) -> (i32, i32) {
    %c0_i32 = arith.constant 0 : i32
    %c0_i32_0 = arith.constant 0 : i32
    %c0_i32_1 = arith.constant 0 : i32
    return %c0_i32, %c0_i32_0 : i32, i32
  }
  func.func @transform_2(%arg0: i32, %arg1: i32) -> (i32, i32) {
    %c0_i32 = arith.constant 0 : i32
    %c0_i32_0 = arith.constant 0 : i32
    return %arg0, %c0_i32 : i32, i32
  }
}

module attributes {stable_mosaic.version = 11 : i64} {
  func.func @_xw_kernel(%arg0: i32, %arg1: memref<256x16xbf16, #tpu.memory_space<vmem>>, %arg2: memref<16x32xf32, #tpu.memory_space<vmem>>, %arg3: memref<256x32xbf16, #tpu.memory_space<vmem>>) attributes {dimension_semantics = [#tpu.dimension_semantics<parallel>], iteration_bounds = array<i64: 1>, scalar_prefetch = 0 : i64, scratch_operands = 0 : i64, tpu.core_type = #tpu.core_type<tc>, window_params = [{transform_indices = @transform_0, window_bounds = array<i64: 256, 16>}, {pipeline_mode = #tpu.pipeline_mode<synchronous>, transform_indices = @transform_1, window_bounds = array<i64: 16, 32>}, {transform_indices = @transform_2, window_bounds = array<i64: 256, 32>}]} {
    %c0 = arith.constant 0 : index
    %c0_0 = arith.constant 0 : index
    %0 = vector.load %arg1[%c0, %c0_0] : memref<256x16xbf16, #tpu.memory_space<vmem>>, vector<256x16xbf16>
    %1 = arith.extf %0 : vector<256x16xbf16> to vector<256x16xf32>
    %c0_1 = arith.constant 0 : index
    %c0_2 = arith.constant 0 : index
    %2 = vector.load %arg2[%c0_1, %c0_2] : memref<16x32xf32, #tpu.memory_space<vmem>>, vector<16x32xf32>
    %cst = arith.constant dense<0.000000e+00> : vector<256x32xf32>
    %3 = tpu.matmul %1, %2, %cst {dimension_numbers = #tpu.dot_dimension_numbers<[1], [0], [0], [1], [0, 0, 1, 1], [], []>} : vector<256x16xf32>, vector<16x32xf32>, vector<256x32xf32> -> vector<256x32xf32>
    %4 = arith.truncf %3 : vector<256x32xf32> to vector<256x32xbf16>
    %c0_3 = arith.constant 0 : index
    %c0_4 = arith.constant 0 : index
    %5 = vector.load %arg3[%c0_3, %c0_4] : memref<256x32xbf16, #tpu.memory_space<vmem>>, vector<256x32xbf16>
    tpu.vector_store %arg3[%c0_3, %c0_4], %4 {strides = array<i32>} : memref<256x32xbf16, #tpu.memory_space<vmem>>, vector<256x32xbf16>,
    return
  }
  func.func @transform_0(%arg0: i32) -> (i32, i32) {
    %c0_i32 = arith.constant 0 : i32
    %c0_i32_0 = arith.constant 0 : i32
    return %arg0, %c0_i32 : i32, i32
  }
  func.func @transform_1(%arg0: i32) -> (i32, i32) {
    %c0_i32 = arith.constant 0 : i32
    %c0_i32_0 = arith.constant 0 : i32
    %c0_i32_1 = arith.constant 0 : i32
    return %c0_i32, %c0_i32_0 : i32, i32
  }
  func.func @transform_2(%arg0: i32) -> (i32, i32) {
    %c0_i32 = arith.constant 0 : i32
    %c0_i32_0 = arith.constant 0 : i32
    return %arg0, %c0_i32 : i32, i32
  }
}

module attributes {stable_mosaic.version = 11 : i64} {
  func.func @_xw_kernel(%arg0: i32, %arg1: memref<256x32xbf16, #tpu.memory_space<vmem>>, %arg2: memref<32x16xf32, #tpu.memory_space<vmem>>, %arg3: memref<256x16xbf16, #tpu.memory_space<vmem>>) attributes {dimension_semantics = [#tpu.dimension_semantics<parallel>], iteration_bounds = array<i64: 1>, scalar_prefetch = 0 : i64, scratch_operands = 0 : i64, tpu.core_type = #tpu.core_type<tc>, window_params = [{transform_indices = @transform_0, window_bounds = array<i64: 256, 32>}, {pipeline_mode = #tpu.pipeline_mode<synchronous>, transform_indices = @transform_1, window_bounds = array<i64: 32, 16>}, {transform_indices = @transform_2, window_bounds = array<i64: 256, 16>}]} {
    %c0 = arith.constant 0 : index
    %c0_0 = arith.constant 0 : index
    %0 = vector.load %arg1[%c0, %c0_0] : memref<256x32xbf16, #tpu.memory_space<vmem>>, vector<256x32xbf16>
    %1 = arith.extf %0 : vector<256x32xbf16> to vector<256x32xf32>
    %c0_1 = arith.constant 0 : index
    %c0_2 = arith.constant 0 : index
    %2 = vector.load %arg2[%c0_1, %c0_2] : memref<32x16xf32, #tpu.memory_space<vmem>>, vector<32x16xf32>
    %cst = arith.constant dense<0.000000e+00> : vector<256x16xf32>
    %3 = tpu.matmul %1, %2, %cst {dimension_numbers = #tpu.dot_dimension_numbers<[1], [0], [0], [1], [0, 0, 1, 1], [], []>} : vector<256x32xf32>, vector<32x16xf32>, vector<256x16xf32> -> vector<256x16xf32>
    %4 = arith.truncf %3 : vector<256x16xf32> to vector<256x16xbf16>
    %c0_3 = arith.constant 0 : index
    %c0_4 = arith.constant 0 : index
    %5 = vector.load %arg3[%c0_3, %c0_4] : memref<256x16xbf16, #tpu.memory_space<vmem>>, vector<256x16xbf16>
    tpu.vector_store %arg3[%c0_3, %c0_4], %4 {strides = array<i32>} : memref<256x16xbf16, #tpu.memory_space<vmem>>, vector<256x16xbf16>,
    return
  }
  func.func @transform_0(%arg0: i32) -> (i32, i32) {
    %c0_i32 = arith.constant 0 : i32
    %c0_i32_0 = arith.constant 0 : i32
    return %arg0, %c0_i32 : i32, i32
  }
  func.func @transform_1(%arg0: i32) -> (i32, i32) {
    %c0_i32 = arith.constant 0 : i32
    %c0_i32_0 = arith.constant 0 : i32
    %c0_i32_1 = arith.constant 0 : i32
    return %c0_i32, %c0_i32_0 : i32, i32
  }
  func.func @transform_2(%arg0: i32) -> (i32, i32) {
    %c0_i32 = arith.constant 0 : i32
    %c0_i32_0 = arith.constant 0 : i32
    return %arg0, %c0_i32 : i32, i32
  }
}

module attributes {stable_mosaic.version = 11 : i64} {
  func.func @_gcn_agg_kernel(%arg0: i32, %arg1: i32, %arg2: memref<256x256xbf16, #tpu.memory_space<vmem>>, %arg3: memref<256x32xbf16, #tpu.memory_space<vmem>>, %arg4: memref<256x32xf32, #tpu.memory_space<vmem>>, %arg5: memref<256x32xf32, #tpu.memory_space<vmem>>) attributes {dimension_semantics = [#tpu.dimension_semantics<parallel>, #tpu.dimension_semantics<arbitrary>], iteration_bounds = array<i64: 1, 1>, scalar_prefetch = 0 : i64, scratch_operands = 1 : i64, tpu.core_type = #tpu.core_type<tc>, window_params = [{transform_indices = @transform_0, window_bounds = array<i64: 256, 256>}, {pipeline_mode = #tpu.pipeline_mode<synchronous>, transform_indices = @transform_1, window_bounds = array<i64: 256, 32>}, {transform_indices = @transform_2, window_bounds = array<i64: 256, 32>}]} {
    %c0_i32 = arith.constant 0 : i32
    %0 = arith.cmpi eq, %arg1, %c0_i32 : i32
    %1 = arith.extui %0 : i1 to i32
    %c0_i32_0 = arith.constant 0 : i32
    %2 = arith.cmpi ne, %1, %c0_i32_0 : i32
    scf.if %2 {
      %cst_9 = arith.constant 0.000000e+00 : f32
      %15 = vector.broadcast %cst_9 : f32 to vector<256x32xf32>
      %c0_10 = arith.constant 0 : index
      %c0_11 = arith.constant 0 : index
      %16 = vector.load %arg5[%c0_10, %c0_11] : memref<256x32xf32, #tpu.memory_space<vmem>>, vector<256x32xf32>
      tpu.vector_store %arg5[%c0_10, %c0_11], %15 {strides = array<i32>} : memref<256x32xf32, #tpu.memory_space<vmem>>, vector<256x32xf32>,
    } else {
    }
    %c256_i32 = arith.constant 256 : i32
    %3 = arith.muli %arg1, %c256_i32 : i32
    %4 = tpu.assume_multiple %3, 256 : i32
    %c0 = arith.constant 0 : index
    %c0_1 = arith.constant 0 : index
    %5 = vector.load %arg5[%c0, %c0_1] : memref<256x32xf32, #tpu.memory_space<vmem>>, vector<256x32xf32>
    %c0_2 = arith.constant 0 : index
    %c0_3 = arith.constant 0 : index
    %6 = vector.load %arg2[%c0_2, %c0_3] : memref<256x256xbf16, #tpu.memory_space<vmem>>, vector<256x256xbf16>
    %7 = arith.index_cast %4 : i32 to index
    %c0_4 = arith.constant 0 : index
    %8 = vector.load %arg3[%7, %c0_4] : memref<256x32xbf16, #tpu.memory_space<vmem>>, vector<256x32xbf16>
    %cst = arith.constant dense<0.000000e+00> : vector<256x32xf32>
    %9 = tpu.matmul %6, %8, %cst {dimension_numbers = #tpu.dot_dimension_numbers<[1], [0], [0], [1], [0, 0, 1, 1], [], []>} : vector<256x256xbf16>, vector<256x32xbf16>, vector<256x32xf32> -> vector<256x32xf32>
    %10 = arith.addf %5, %9 : vector<256x32xf32>
    %c0_5 = arith.constant 0 : index
    %c0_6 = arith.constant 0 : index
    %11 = vector.load %arg5[%c0_5, %c0_6] : memref<256x32xf32, #tpu.memory_space<vmem>>, vector<256x32xf32>
    tpu.vector_store %arg5[%c0_5, %c0_6], %10 {strides = array<i32>} : memref<256x32xf32, #tpu.memory_space<vmem>>, vector<256x32xf32>,
    %c0_i32_7 = arith.constant 0 : i32
    %12 = arith.cmpi eq, %arg1, %c0_i32_7 : i32
    %13 = arith.extui %12 : i1 to i32
    %c0_i32_8 = arith.constant 0 : i32
    %14 = arith.cmpi ne, %13, %c0_i32_8 : i32
    scf.if %14 {
      %c0_9 = arith.constant 0 : index
      %c0_10 = arith.constant 0 : index
      %15 = vector.load %arg5[%c0_9, %c0_10] : memref<256x32xf32, #tpu.memory_space<vmem>>, vector<256x32xf32>
      %cst_11 = arith.constant 0.000000e+00 : f32
      %16 = vector.broadcast %cst_11 : f32 to vector<256x32xf32>
      %17 = arith.maximumf %15, %16 : vector<256x32xf32>
      %c0_12 = arith.constant 0 : index
      %c0_13 = arith.constant 0 : index
      %18 = vector.load %arg4[%c0_12, %c0_13] : memref<256x32xf32, #tpu.memory_space<vmem>>, vector<256x32xf32>
      tpu.vector_store %arg4[%c0_12, %c0_13], %17 {strides = array<i32>} : memref<256x32xf32, #tpu.memory_space<vmem>>, vector<256x32xf32>,
    } else {
    }
    return
  }
  func.func @transform_0(%arg0: i32, %arg1: i32) -> (i32, i32) {
    %c0_i32 = arith.constant 0 : i32
    return %arg0, %arg1 : i32, i32
  }
  func.func @transform_1(%arg0: i32, %arg1: i32) -> (i32, i32) {
    %c0_i32 = arith.constant 0 : i32
    %c0_i32_0 = arith.constant 0 : i32
    %c0_i32_1 = arith.constant 0 : i32
    return %c0_i32, %c0_i32_0 : i32, i32
  }
  func.func @transform_2(%arg0: i32, %arg1: i32) -> (i32, i32) {
    %c0_i32 = arith.constant 0 : i32
    %c0_i32_0 = arith.constant 0 : i32
    return %arg0, %c0_i32 : i32, i32
  }
}

module attributes {stable_mosaic.version = 11 : i64} {
  func.func @_struct_decoder_kernel(%arg0: i32, %arg1: i32, %arg2: memref<256x16xbf16, #tpu.memory_space<vmem>>, %arg3: memref<16x256xbf16, #tpu.memory_space<vmem>>, %arg4: memref<256x256xbf16, #tpu.memory_space<vmem>>) attributes {dimension_semantics = [#tpu.dimension_semantics<parallel>, #tpu.dimension_semantics<parallel>], iteration_bounds = array<i64: 1, 1>, scalar_prefetch = 0 : i64, scratch_operands = 0 : i64, tpu.core_type = #tpu.core_type<tc>, window_params = [{transform_indices = @transform_0, window_bounds = array<i64: 256, 16>}, {transform_indices = @transform_1, window_bounds = array<i64: 16, 256>}, {transform_indices = @transform_2, window_bounds = array<i64: 256, 256>}]} {
    %c0 = arith.constant 0 : index
    %c0_0 = arith.constant 0 : index
    %0 = vector.load %arg2[%c0, %c0_0] : memref<256x16xbf16, #tpu.memory_space<vmem>>, vector<256x16xbf16>
    %c0_1 = arith.constant 0 : index
    %c0_2 = arith.constant 0 : index
    %1 = vector.load %arg3[%c0_1, %c0_2] : memref<16x256xbf16, #tpu.memory_space<vmem>>, vector<16x256xbf16>
    %cst = arith.constant dense<0.000000e+00> : vector<256x256xf32>
    %2 = tpu.matmul %0, %1, %cst {dimension_numbers = #tpu.dot_dimension_numbers<[1], [0], [0], [1], [0, 0, 1, 1], [], []>} : vector<256x16xbf16>, vector<16x256xbf16>, vector<256x256xf32> -> vector<256x256xf32>
    %cst_3 = arith.constant 0.000000e+00 : f32
    %3 = vector.broadcast %cst_3 : f32 to vector<256x256xf32>
    %4 = arith.subf %3, %2 : vector<256x256xf32>
    %5 = math.exp %4 : vector<256x256xf32>
    %cst_4 = arith.constant 1.000000e+00 : f32
    %6 = vector.broadcast %cst_4 : f32 to vector<256x256xf32>
    %7 = arith.addf %6, %5 : vector<256x256xf32>
    %8 = tpu.reciprocal %7 {approx = true} : vector<256x256xf32> -> vector<256x256xf32>
    %9 = arith.truncf %8 : vector<256x256xf32> to vector<256x256xbf16>
    %c0_5 = arith.constant 0 : index
    %c0_6 = arith.constant 0 : index
    %10 = vector.load %arg4[%c0_5, %c0_6] : memref<256x256xbf16, #tpu.memory_space<vmem>>, vector<256x256xbf16>
    tpu.vector_store %arg4[%c0_5, %c0_6], %9 {strides = array<i32>} : memref<256x256xbf16, #tpu.memory_space<vmem>>, vector<256x256xbf16>,
    return
  }
  func.func @transform_0(%arg0: i32, %arg1: i32) -> (i32, i32) {
    %c0_i32 = arith.constant 0 : i32
    %c0_i32_0 = arith.constant 0 : i32
    return %arg0, %c0_i32 : i32, i32
  }
  func.func @transform_1(%arg0: i32, %arg1: i32) -> (i32, i32) {
    %c0_i32 = arith.constant 0 : i32
    %c0_i32_0 = arith.constant 0 : i32
    return %c0_i32, %arg1 : i32, i32
  }
  func.func @transform_2(%arg0: i32, %arg1: i32) -> (i32, i32) {
    %c0_i32 = arith.constant 0 : i32
    return %arg0, %arg1 : i32, i32
  }
}

</mosaic_0001>

<bundles_post_ra>
// kernel: dominant_forward.11
= control target key start
LH: loop header
LB: loop body
LE: loop exit
PB: predicated region body
PF: predicated region fallthrough
CT: control target
= control target key end

     0   :  { %vm83_vm0 = vcmask 523264   ;;  %vm533_vm1 = vcmask 257024   ;;  %s1120_s1 = inlined_call_operand.vmem [shape: f32[64,32], index: 1, kind: input, shape index: {}]   ;;  %s1121_s0 = inlined_call_operand.vmem [shape: bf16[256,64], index: 0, kind: input, shape index: {}]   ;;  %s1122_s2 = inlined_call_operand.vmem [shape: bf16[256,32], index: 2, kind: output, shape index: {}]  }
   0x1   :  { %v75_v0 = vld [vmem:[%s1120_s1] sm:$0xff]  ;;  %v76_v1 = vld [vmem:[%s1120_s1 + $0x8] sm:$0xff]  ;;  %v77_v2 = vld [vmem:[%s1120_s1 + $0x10] sm:$0xff] }
   0x2   :  { %v849_v3 = vpack.c.bf16 %v76_v1, %v75_v0  ;;  %v78_v4 = vld [vmem:[%s1120_s1 + $0x18] sm:$0xff]  ;;  %v79_v6 = vld [vmem:[%s1120_s1 + $0x20] sm:$0xff]  ;;  %v80_v7 = vld [vmem:[%s1120_s1 + $0x28] sm:$0xff] }
   0x3   :  { %v853_v5 = vpack.c.bf16 %v78_v4, %v77_v2  ;;  %v667_v8 = vld [vmem:[%s1121_s0] sm:$0xff]   ;;  %v857_v12 = vpack.c.bf16 %v80_v7, %v79_v6  ;;  %v81_v13 = vld [vmem:[%s1120_s1 + $0x30] sm:$0xff]  ;;  %v82_v14 = vld [vmem:[%s1120_s1 + $0x38] sm:$0xff] }
   0x4   :  { %850 = vmatprep.subr.bf16.mxu0 %v849_v3  ;;  %865 = vmatprep.subr.bf16.mxu1 %v849_v3  ;;  %v668_v9 = vunpack.c.l.bf16 %v667_v8  ;;  %v737_v10 = vld [vmem:[%s1121_s0 + $0x40] sm:$0xff]   ;;  %v861_v15 = vpack.c.bf16 %v82_v14, %v81_v13  ;;  %v730_v16 = vld [vmem:[%s1121_s0 + $0x8] sm:$0xff]   ;;  %v669_v18 = vunpack.c.h.bf16 %v667_v8  ;;  %v731_v22 = vld [vmem:[%s1121_s0 + $0x10] sm:$0xff]  }
   0x5   :  { %852 = vmatpush3.bf16.msra.mxu0 %v849_v3  ;;  %869 = vmatpush3.bf16.msra.mxu1 %v849_v3  ;;  %v700_v11 = vunpack.c.l.bf16 %v737_v10  ;;  %v738_v17 = vld [vmem:[%s1121_s0 + $0x48] sm:$0xff]   ;;  %v701_v19 = vunpack.c.h.bf16 %v737_v10  ;;  %v672_v20 = vunpack.c.l.bf16 %v730_v16  ;;  %v739_v23 = vld [vmem:[%s1121_s0 + $0x50] sm:$0xff]   ;;  %v673_v24 = vunpack.c.h.bf16 %v730_v16  ;;  %v732_v28 = vld [vmem:[%s1121_s0 + $0x18] sm:$0xff]  }
   0x6   :  { %854 = vmatprep.subr.bf16.mxu0 %v853_v5  ;;  %866 = vmatprep.subr.bf16.mxu1 %v853_v5  ;;  %v704_v21 = vunpack.c.l.bf16 %v738_v17  ;;  %v705_v25 = vunpack.c.h.bf16 %v738_v17  ;;  %v676_v26 = vunpack.c.l.bf16 %v731_v22  ;;  %v708_v27 = vunpack.c.l.bf16 %v739_v23  ;;  %v740_v29 = vld [vmem:[%s1121_s0 + $0x58] sm:$0xff]   ;;  %v733_v34 = vld [vmem:[%s1121_s0 + $0x20] sm:$0xff]   ;;  %v734_v40 = vld [vmem:[%s1121_s0 + $0x28] sm:$0xff]  }
   0x7   :  { %801 = vmatprep.mubr.msk.f32.mxu0 %vm83_vm0, %v668_v9  ;;  %825 = vmatprep.mubr.msk.f32.mxu1 %vm83_vm0, %v700_v11  ;;  %v677_v30 = vunpack.c.h.bf16 %v731_v22  ;;  %v709_v31 = vunpack.c.h.bf16 %v739_v23  ;;  %v680_v32 = vunpack.c.l.bf16 %v732_v28  ;;  %v712_v33 = vunpack.c.l.bf16 %v740_v29  ;;  %v741_v35 = vld [vmem:[%s1121_s0 + $0x60] sm:$0xff]   ;;  %v742_v41 = vld [vmem:[%s1121_s0 + $0x68] sm:$0xff]   ;;  %v735_v46 = vld [vmem:[%s1121_s0 + $0x30] sm:$0xff]  }
   0x8   :  { %v681_v36 = vunpack.c.h.bf16 %v732_v28  ;;  %v713_v37 = vunpack.c.h.bf16 %v740_v29  ;;  %v684_v38 = vunpack.c.l.bf16 %v733_v34  ;;  %v716_v39 = vunpack.c.l.bf16 %v741_v35  ;;  %v743_v47 = vld [vmem:[%s1121_s0 + $0x70] sm:$0xff]   ;;  %v736_v52 = vld [vmem:[%s1121_s0 + $0x38] sm:$0xff]  }
   0x9   :  { %856 = vmatpush3.bf16.msra.mxu0 %v853_v5  ;;  %870 = vmatpush3.bf16.msra.mxu1 %v853_v5  ;;  %v685_v42 = vunpack.c.h.bf16 %v733_v34  ;;  %v717_v43 = vunpack.c.h.bf16 %v741_v35  ;;  %v688_v44 = vunpack.c.l.bf16 %v734_v40  ;;  %v720_v45 = vunpack.c.l.bf16 %v742_v41  ;;  %v744_v53 = vld [vmem:[%s1121_s0 + $0x78] sm:$0xff]  }
   0xa   :  { %858 = vmatprep.subr.bf16.mxu0 %v857_v12  ;;  %867 = vmatprep.subr.bf16.mxu1 %v857_v12  ;;  %v689_v48 = vunpack.c.h.bf16 %v734_v40  ;;  %v721_v49 = vunpack.c.h.bf16 %v742_v41  ;;  %v692_v50 = vunpack.c.l.bf16 %v735_v46  ;;  %v724_v51 = vunpack.c.l.bf16 %v743_v47 }
   0xb   :  { %v693_v54 = vunpack.c.h.bf16 %v735_v46  ;;  %v725_v55 = vunpack.c.h.bf16 %v743_v47  ;;  %v696_v56 = vunpack.c.l.bf16 %v736_v52  ;;  %v728_v57 = vunpack.c.l.bf16 %v744_v53 }
   0xc   :  { %v697_v58 = vunpack.c.h.bf16 %v736_v52  ;;  %v729_v59 = vunpack.c.h.bf16 %v744_v53 }
   0xd   :  { %860 = vmatpush3.bf16.msra.mxu0 %v857_v12  ;;  %871 = vmatpush3.bf16.msra.mxu1 %v857_v12 }
   0xe   :  { %862 = vmatprep.subr.bf16.mxu0 %v861_v15  ;;  %868 = vmatprep.subr.bf16.mxu1 %v861_v15 }
  0x11   :  { %864 = vmatpush3.bf16.msra.mxu0 %v861_v15  ;;  %872 = vmatpush3.bf16.msra.mxu1 %v861_v15 }
  0x14   :  { %802 = vmatmul.mubr.msk.f32.vlgmr.msra.gmra.mrb[0].mxu0 %vm83_vm0, %v669_v18  ;;  %826 = vmatmul.mubr.msk.f32.vlgmr.msra.gmra.mrb[0].mxu1 %vm83_vm0, %v701_v19 }
  0x15   :  { %804 = vmatprep.mubr.msk.f32.mxu0 %vm83_vm0, %v672_v20  ;;  %828 = vmatprep.mubr.msk.f32.mxu1 %vm83_vm0, %v704_v21 }
  0x18   :  { %805 = vmatmul.mubr.msk.f32.gmra.mrb[2].mxu0 %vm83_vm0, %v673_v24  ;;  %829 = vmatmul.mubr.msk.f32.gmra.mrb[2].mxu1 %vm83_vm0, %v705_v25 }
  0x19   :  { %807 = vmatprep.mubr.msk.f32.mxu0 %vm83_vm0, %v676_v26  ;;  %831 = vmatprep.mubr.msk.f32.mxu1 %vm83_vm0, %v708_v27 }
  0x1c   :  { %808 = vmatmul.mubr.msk.f32.gmra.mrb[4].mxu0 %vm83_vm0, %v677_v30  ;;  %832 = vmatmul.mubr.msk.f32.gmra.mrb[4].mxu1 %vm83_vm0, %v709_v31 }
  0x1d   :  { %810 = vmatprep.mubr.msk.f32.mxu0 %vm83_vm0, %v680_v32  ;;  %834 = vmatprep.mubr.msk.f32.mxu1 %vm83_vm0, %v712_v33 }
  0x20   :  { %811 = vmatmul.mubr.msk.f32.gmra.mrb[6].mxu0 %vm83_vm0, %v681_v36  ;;  %835 = vmatmul.mubr.msk.f32.gmra.mrb[6].mxu1 %vm83_vm0, %v713_v37 }
  0x21   :  { %813 = vmatprep.mubr.msk.f32.mxu0 %vm83_vm0, %v684_v38  ;;  %837 = vmatprep.mubr.msk.f32.mxu1 %vm83_vm0, %v716_v39 }
  0x24   :  { %814 = vmatmul.mubr.msk.f32.gmra.mrb[8].mxu0 %vm83_vm0, %v685_v42  ;;  %838 = vmatmul.mubr.msk.f32.gmra.mrb[8].mxu1 %vm83_vm0, %v717_v43 }
  0x25   :  { %816 = vmatprep.mubr.msk.f32.mxu0 %vm83_vm0, %v688_v44  ;;  %840 = vmatprep.mubr.msk.f32.mxu1 %vm83_vm0, %v720_v45 }
  0x28   :  { %817 = vmatmul.mubr.msk.f32.gmra.mrb[10].mxu0 %vm83_vm0, %v689_v48  ;;  %841 = vmatmul.mubr.msk.f32.gmra.mrb[10].mxu1 %vm83_vm0, %v721_v49 }
  0x29   :  { %819 = vmatprep.mubr.msk.f32.mxu0 %vm83_vm0, %v692_v50  ;;  %843 = vmatprep.mubr.msk.f32.mxu1 %vm83_vm0, %v724_v51 }
  0x2c   :  { %820 = vmatmul.mubr.msk.f32.gmra.mrb[12].mxu0 %vm83_vm0, %v693_v54  ;;  %844 = vmatmul.mubr.msk.f32.gmra.mrb[12].mxu1 %vm83_vm0, %v725_v55 }
  0x2d   :  { %822 = vmatprep.mubr.msk.f32.mxu0 %vm83_vm0, %v696_v56  ;;  %846 = vmatprep.mubr.msk.f32.mxu1 %vm83_vm0, %v728_v57 }
  0x30   :  { %823 = vmatmul.mubr.msk.f32.gmra.mrb[14].mxu0 %vm83_vm0, %v697_v58  ;;  %847 = vmatmul.mubr.msk.f32.gmra.mrb[14].mxu1 %vm83_vm0, %v729_v59 }
  0xe7   :  { %v803_v60 = vpop.f32.mrb[0].mxu0  ;;  %v827_v61 = vpop.f32.mrb[0].mxu1 }
  0xe8   :  { %v635_v62 = vpack.c.bf16 %v803_v60, %v803_v60  ;;  %v651_v63 = vpack.c.bf16 %v827_v61, %v827_v61  ;;  %v246_v0 = vpop.f32.mrb[1].mxu0  ;;  %v326_v1 = vpop.f32.mrb[1].mxu1 }
  0xe9   :  { %v634_v2 = vpack.c.bf16 %v246_v0, %v246_v0  ;;  %v650_v3 = vpack.c.bf16 %v326_v1, %v326_v1 }
  0xea   :  { %535 = vst.msk [vmem:[%s1122_s2 + $0x4] sm:$0xf] %vm533_vm1, %v635_v62  ;;  %551 = vst.msk [vmem:[%s1122_s2 + $0x44] sm:$0xf] %vm533_vm1, %v651_v63 }
  0xeb   :  { %534 = vst.msk [vmem:[%s1122_s2] sm:$0xf] %vm533_vm1, %v634_v2  ;;  %550 = vst.msk [vmem:[%s1122_s2 + $0x40] sm:$0xf] %vm533_vm1, %v650_v3  ;;  %v806_v4 = vpop.f32.mrb[2].mxu0  ;;  %v830_v5 = vpop.f32.mrb[2].mxu1 }
  0xec   :  { %v637_v6 = vpack.c.bf16 %v806_v4, %v806_v4  ;;  %v653_v7 = vpack.c.bf16 %v830_v5, %v830_v5  ;;  %v256_v8 = vpop.f32.mrb[3].mxu0  ;;  %v336_v9 = vpop.f32.mrb[3].mxu1 }
  0xed   :  { %v636_v10 = vpack.c.bf16 %v256_v8, %v256_v8  ;;  %v652_v11 = vpack.c.bf16 %v336_v9, %v336_v9 }
  0xee   :  { %537 = vst.msk [vmem:[%s1122_s2 + $0xc] sm:$0xf] %vm533_vm1, %v637_v6  ;;  %553 = vst.msk [vmem:[%s1122_s2 + $0x4c] sm:$0xf] %vm533_vm1, %v653_v7 }
  0xef   :  { %536 = vst.msk [vmem:[%s1122_s2 + $0x8] sm:$0xf] %vm533_vm1, %v636_v10  ;;  %552 = vst.msk [vmem:[%s1122_s2 + $0x48] sm:$0xf] %vm533_vm1, %v652_v11  ;;  %v809_v12 = vpop.f32.mrb[4].mxu0  ;;  %v833_v13 = vpop.f32.mrb[4].mxu1 }
  0xf0   :  { %v639_v14 = vpack.c.bf16 %v809_v12, %v809_v12  ;;  %v655_v15 = vpack.c.bf16 %v833_v13, %v833_v13  ;;  %v266_v16 = vpop.f32.mrb[5].mxu0  ;;  %v346_v17 = vpop.f32.mrb[5].mxu1 }
  0xf1   :  { %v638_v18 = vpack.c.bf16 %v266_v16, %v266_v16  ;;  %v654_v19 = vpack.c.bf16 %v346_v17, %v346_v17 }
  0xf2   :  { %539 = vst.msk [vmem:[%s1122_s2 + $0x14] sm:$0xf] %vm533_vm1, %v639_v14  ;;  %555 = vst.msk [vmem:[%s1122_s2 + $0x54] sm:$0xf] %vm533_vm1, %v655_v15 }
  0xf3   :  { %538 = vst.msk [vmem:[%s1122_s2 + $0x10] sm:$0xf] %vm533_vm1, %v638_v18  ;;  %554 = vst.msk [vmem:[%s1122_s2 + $0x50] sm:$0xf] %vm533_vm1, %v654_v19  ;;  %v812_v20 = vpop.f32.mrb[6].mxu0  ;;  %v836_v21 = vpop.f32.mrb[6].mxu1 }
  0xf4   :  { %v641_v22 = vpack.c.bf16 %v812_v20, %v812_v20  ;;  %v657_v23 = vpack.c.bf16 %v836_v21, %v836_v21  ;;  %v276_v24 = vpop.f32.mrb[7].mxu0  ;;  %v356_v25 = vpop.f32.mrb[7].mxu1 }
  0xf5   :  { %v640_v26 = vpack.c.bf16 %v276_v24, %v276_v24  ;;  %v656_v27 = vpack.c.bf16 %v356_v25, %v356_v25 }
  0xf6   :  { %541 = vst.msk [vmem:[%s1122_s2 + $0x1c] sm:$0xf] %vm533_vm1, %v641_v22  ;;  %557 = vst.msk [vmem:[%s1122_s2 + $0x5c] sm:$0xf] %vm533_vm1, %v657_v23 }
  0xf7   :  { %540 = vst.msk [vmem:[%s1122_s2 + $0x18] sm:$0xf] %vm533_vm1, %v640_v26  ;;  %556 = vst.msk [vmem:[%s1122_s2 + $0x58] sm:$0xf] %vm533_vm1, %v656_v27  ;;  %v815_v28 = vpop.f32.mrb[8].mxu0  ;;  %v839_v29 = vpop.f32.mrb[8].mxu1 }
  0xf8   :  { %v643_v30 = vpack.c.bf16 %v815_v28, %v815_v28  ;;  %v659_v31 = vpack.c.bf16 %v839_v29, %v839_v29  ;;  %v286_v32 = vpop.f32.mrb[9].mxu0  ;;  %v366_v33 = vpop.f32.mrb[9].mxu1 }
  0xf9   :  { %v642_v34 = vpack.c.bf16 %v286_v32, %v286_v32  ;;  %v658_v35 = vpack.c.bf16 %v366_v33, %v366_v33 }
  0xfa   :  { %543 = vst.msk [vmem:[%s1122_s2 + $0x24] sm:$0xf] %vm533_vm1, %v643_v30  ;;  %559 = vst.msk [vmem:[%s1122_s2 + $0x64] sm:$0xf] %vm533_vm1, %v659_v31 }
  0xfb   :  { %542 = vst.msk [vmem:[%s1122_s2 + $0x20] sm:$0xf] %vm533_vm1, %v642_v34  ;;  %558 = vst.msk [vmem:[%s1122_s2 + $0x60] sm:$0xf] %vm533_vm1, %v658_v35  ;;  %v818_v36 = vpop.f32.mrb[10].mxu0  ;;  %v842_v37 = vpop.f32.mrb[10].mxu1 }
  0xfc   :  { %v645_v38 = vpack.c.bf16 %v818_v36, %v818_v36  ;;  %v661_v39 = vpack.c.bf16 %v842_v37, %v842_v37  ;;  %v296_v40 = vpop.f32.mrb[11].mxu0  ;;  %v376_v41 = vpop.f32.mrb[11].mxu1 }
  0xfd   :  { %v644_v42 = vpack.c.bf16 %v296_v40, %v296_v40  ;;  %v660_v43 = vpack.c.bf16 %v376_v41, %v376_v41 }
  0xfe   :  { %545 = vst.msk [vmem:[%s1122_s2 + $0x2c] sm:$0xf] %vm533_vm1, %v645_v38  ;;  %561 = vst.msk [vmem:[%s1122_s2 + $0x6c] sm:$0xf] %vm533_vm1, %v661_v39 }
  0xff   :  { %544 = vst.msk [vmem:[%s1122_s2 + $0x28] sm:$0xf] %vm533_vm1, %v644_v42  ;;  %560 = vst.msk [vmem:[%s1122_s2 + $0x68] sm:$0xf] %vm533_vm1, %v660_v43  ;;  %v821_v44 = vpop.f32.mrb[12].mxu0  ;;  %v845_v45 = vpop.f32.mrb[12].mxu1 }
 0x100   :  { %v647_v46 = vpack.c.bf16 %v821_v44, %v821_v44  ;;  %v663_v47 = vpack.c.bf16 %v845_v45, %v845_v45  ;;  %v306_v48 = vpop.f32.mrb[13].mxu0  ;;  %v386_v49 = vpop.f32.mrb[13].mxu1 }
 0x101   :  { %v646_v50 = vpack.c.bf16 %v306_v48, %v306_v48  ;;  %v662_v51 = vpack.c.bf16 %v386_v49, %v386_v49 }
 0x102   :  { %547 = vst.msk [vmem:[%s1122_s2 + $0x34] sm:$0xf] %vm533_vm1, %v647_v46  ;;  %563 = vst.msk [vmem:[%s1122_s2 + $0x74] sm:$0xf] %vm533_vm1, %v663_v47 }
 0x103   :  { %546 = vst.msk [vmem:[%s1122_s2 + $0x30] sm:$0xf] %vm533_vm1, %v646_v50  ;;  %562 = vst.msk [vmem:[%s1122_s2 + $0x70] sm:$0xf] %vm533_vm1, %v662_v51  ;;  %v824_v52 = vpop.f32.mrb[14].mxu0  ;;  %v848_v53 = vpop.f32.mrb[14].mxu1 }
 0x104   :  { %v649_v54 = vpack.c.bf16 %v824_v52, %v824_v52  ;;  %v665_v55 = vpack.c.bf16 %v848_v53, %v848_v53  ;;  %v316_v56 = vpop.f32.mrb[15].mxu0  ;;  %v396_v57 = vpop.f32.mrb[15].mxu1 }
 0x105   :  { %v648_v58 = vpack.c.bf16 %v316_v56, %v316_v56  ;;  %v664_v59 = vpack.c.bf16 %v396_v57, %v396_v57 }
 0x106   :  { %549 = vst.msk [vmem:[%s1122_s2 + $0x3c] sm:$0xf] %vm533_vm1, %v649_v54  ;;  %565 = vst.msk [vmem:[%s1122_s2 + $0x7c] sm:$0xf] %vm533_vm1, %v665_v55 }
 0x107   :  { %548 = vst.msk [vmem:[%s1122_s2 + $0x38] sm:$0xf] %vm533_vm1, %v648_v58  ;;  %564 = vst.msk [vmem:[%s1122_s2 + $0x78] sm:$0xf] %vm533_vm1, %v664_v59 }

// kernel: dominant_forward.9
= control target key start
LH: loop header
LB: loop body
LE: loop exit
PB: predicated region body
PF: predicated region fallthrough
CT: control target
= control target key end

     0   :  { %vm47_vm0 = vcmask 261120   ;;  %vm497_vm1 = vcmask 519168   ;;  %s1017_s1 = inlined_call_operand.vmem [shape: f32[32,64], index: 1, kind: input, shape index: {}]   ;;  %s1018_s0 = inlined_call_operand.vmem [shape: f32[256,32], index: 0, kind: input, shape index: {}]   ;;  %s1019_s2 = inlined_call_operand.vmem [shape: bf16[256,64], index: 2, kind: output, shape index: {}]  }
   0x1   :  { %v43_v0 = vld [vmem:[%s1017_s1] sm:$0xff]  ;;  %v44_v1 = vld [vmem:[%s1017_s1 + $0x8] sm:$0xff]  ;;  %v45_v2 = vld [vmem:[%s1017_s1 + $0x10] sm:$0xff] }
   0x2   :  { %v722_v3 = vpack.c.bf16 %v44_v1, %v43_v0  ;;  %v46_v4 = vld [vmem:[%s1017_s1 + $0x18] sm:$0xff]  ;;  %v11_v5 = vld [vmem:[%s1018_s0] sm:$0xff]  ;;  %v12_v8 = vld [vmem:[%s1018_s0 + $0x8] sm:$0xff] }
   0x3   :  { %v27_v6 = vld [vmem:[%s1018_s0 + $0x80] sm:$0xff]  ;;  %v726_v7 = vpack.c.bf16 %v46_v4, %v45_v2  ;;  %674 = vmatprep.mubr.msk.f32.mxu0 %vm47_vm0, %v11_v5  ;;  %v28_v9 = vld [vmem:[%s1018_s0 + $0x88] sm:$0xff]  ;;  %v13_v10 = vld [vmem:[%s1018_s0 + $0x10] sm:$0xff] }
   0x4   :  { %698 = vmatprep.mubr.msk.f32.mxu1 %vm47_vm0, %v27_v6  ;;  %723 = vmatprep.subr.bf16.mxu0 %v722_v3  ;;  %v29_v11 = vld [vmem:[%s1018_s0 + $0x90] sm:$0xff]  ;;  %v14_v12 = vld [vmem:[%s1018_s0 + $0x18] sm:$0xff]  ;;  %v15_v14 = vld [vmem:[%s1018_s0 + $0x20] sm:$0xff] }
   0x5   :  { %730 = vmatprep.subr.bf16.mxu1 %v722_v3  ;;  %725 = vmatpush3.bf16.msra.mxu0 %v722_v3  ;;  %v30_v13 = vld [vmem:[%s1018_s0 + $0x98] sm:$0xff]  ;;  %v31_v15 = vld [vmem:[%s1018_s0 + $0xa0] sm:$0xff]  ;;  %v16_v16 = vld [vmem:[%s1018_s0 + $0x28] sm:$0xff] }
   0x6   :  { %732 = vmatpush3.bf16.msra.mxu1 %v722_v3  ;;  %727 = vmatprep.subr.bf16.mxu0 %v726_v7  ;;  %v32_v17 = vld [vmem:[%s1018_s0 + $0xa8] sm:$0xff]  ;;  %v17_v18 = vld [vmem:[%s1018_s0 + $0x30] sm:$0xff]  ;;  %v18_v20 = vld [vmem:[%s1018_s0 + $0x38] sm:$0xff] }
   0x7   :  { %731 = vmatprep.subr.bf16.mxu1 %v726_v7  ;;  %v33_v19 = vld [vmem:[%s1018_s0 + $0xb0] sm:$0xff]  ;;  %v34_v21 = vld [vmem:[%s1018_s0 + $0xb8] sm:$0xff]  ;;  %v19_v22 = vld [vmem:[%s1018_s0 + $0x40] sm:$0xff] }
   0x8   :  { %v35_v23 = vld [vmem:[%s1018_s0 + $0xc0] sm:$0xff]  ;;  %v20_v24 = vld [vmem:[%s1018_s0 + $0x48] sm:$0xff]  ;;  %v21_v26 = vld [vmem:[%s1018_s0 + $0x50] sm:$0xff] }
   0x9   :  { %729 = vmatpush3.bf16.msra.mxu0 %v726_v7  ;;  %v36_v25 = vld [vmem:[%s1018_s0 + $0xc8] sm:$0xff]  ;;  %v37_v27 = vld [vmem:[%s1018_s0 + $0xd0] sm:$0xff]  ;;  %v22_v28 = vld [vmem:[%s1018_s0 + $0x58] sm:$0xff] }
   0xa   :  { %733 = vmatpush3.bf16.msra.mxu1 %v726_v7  ;;  %v38_v29 = vld [vmem:[%s1018_s0 + $0xd8] sm:$0xff]  ;;  %v23_v30 = vld [vmem:[%s1018_s0 + $0x60] sm:$0xff]  ;;  %v24_v32 = vld [vmem:[%s1018_s0 + $0x68] sm:$0xff] }
   0xb   :  { %v39_v31 = vld [vmem:[%s1018_s0 + $0xe0] sm:$0xff]  ;;  %v40_v33 = vld [vmem:[%s1018_s0 + $0xe8] sm:$0xff]  ;;  %v25_v34 = vld [vmem:[%s1018_s0 + $0x70] sm:$0xff] }
   0xc   :  { %675 = vmatmul.mubr.msk.f32.vlgmr.msra.gmra.mrb[0].mxu0 %vm47_vm0, %v12_v8  ;;  %v41_v35 = vld [vmem:[%s1018_s0 + $0xf0] sm:$0xff]  ;;  %v26_v36 = vld [vmem:[%s1018_s0 + $0x78] sm:$0xff] }
   0xd   :  { %699 = vmatmul.mubr.msk.f32.vlgmr.msra.gmra.mrb[0].mxu1 %vm47_vm0, %v28_v9  ;;  %677 = vmatprep.mubr.msk.f32.mxu0 %vm47_vm0, %v13_v10  ;;  %v42_v37 = vld [vmem:[%s1018_s0 + $0xf8] sm:$0xff] }
   0xe   :  { %701 = vmatprep.mubr.msk.f32.mxu1 %vm47_vm0, %v29_v11 }
  0x10   :  { %678 = vmatmul.mubr.msk.f32.gmra.mrb[2].mxu0 %vm47_vm0, %v14_v12 }
  0x11   :  { %702 = vmatmul.mubr.msk.f32.gmra.mrb[2].mxu1 %vm47_vm0, %v30_v13  ;;  %680 = vmatprep.mubr.msk.f32.mxu0 %vm47_vm0, %v15_v14 }
  0x12   :  { %704 = vmatprep.mubr.msk.f32.mxu1 %vm47_vm0, %v31_v15 }
  0x14   :  { %681 = vmatmul.mubr.msk.f32.gmra.mrb[4].mxu0 %vm47_vm0, %v16_v16 }
  0x15   :  { %705 = vmatmul.mubr.msk.f32.gmra.mrb[4].mxu1 %vm47_vm0, %v32_v17  ;;  %683 = vmatprep.mubr.msk.f32.mxu0 %vm47_vm0, %v17_v18 }
  0x16   :  { %707 = vmatprep.mubr.msk.f32.mxu1 %vm47_vm0, %v33_v19 }
  0x18   :  { %684 = vmatmul.mubr.msk.f32.gmra.mrb[6].mxu0 %vm47_vm0, %v18_v20 }
  0x19   :  { %708 = vmatmul.mubr.msk.f32.gmra.mrb[6].mxu1 %vm47_vm0, %v34_v21  ;;  %686 = vmatprep.mubr.msk.f32.mxu0 %vm47_vm0, %v19_v22 }
  0x1a   :  { %710 = vmatprep.mubr.msk.f32.mxu1 %vm47_vm0, %v35_v23 }
  0x1c   :  { %687 = vmatmul.mubr.msk.f32.gmra.mrb[8].mxu0 %vm47_vm0, %v20_v24 }
  0x1d   :  { %711 = vmatmul.mubr.msk.f32.gmra.mrb[8].mxu1 %vm47_vm0, %v36_v25  ;;  %689 = vmatprep.mubr.msk.f32.mxu0 %vm47_vm0, %v21_v26 }
  0x1e   :  { %713 = vmatprep.mubr.msk.f32.mxu1 %vm47_vm0, %v37_v27 }
  0x20   :  { %690 = vmatmul.mubr.msk.f32.gmra.mrb[10].mxu0 %vm47_vm0, %v22_v28 }
  0x21   :  { %714 = vmatmul.mubr.msk.f32.gmra.mrb[10].mxu1 %vm47_vm0, %v38_v29  ;;  %692 = vmatprep.mubr.msk.f32.mxu0 %vm47_vm0, %v23_v30 }
  0x22   :  { %716 = vmatprep.mubr.msk.f32.mxu1 %vm47_vm0, %v39_v31 }
  0x24   :  { %693 = vmatmul.mubr.msk.f32.gmra.mrb[12].mxu0 %vm47_vm0, %v24_v32 }
  0x25   :  { %717 = vmatmul.mubr.msk.f32.gmra.mrb[12].mxu1 %vm47_vm0, %v40_v33  ;;  %695 = vmatprep.mubr.msk.f32.mxu0 %vm47_vm0, %v25_v34 }
  0x26   :  { %719 = vmatprep.mubr.msk.f32.mxu1 %vm47_vm0, %v41_v35 }
  0x28   :  { %696 = vmatmul.mubr.msk.f32.gmra.mrb[14].mxu0 %vm47_vm0, %v26_v36 }
  0x29   :  { %720 = vmatmul.mubr.msk.f32.gmra.mrb[14].mxu1 %vm47_vm0, %v42_v37 }
  0xdf   :  { %v676_v38 = vpop.f32.mrb[0].mxu0 }
  0xe0   :  { %v700_v39 = vpop.f32.mrb[0].mxu1  ;;  %v599_v40 = vpack.c.bf16 %v676_v38, %v676_v38  ;;  %v210_v42 = vpop.f32.mrb[1].mxu0 }
  0xe1   :  { %v615_v41 = vpack.c.bf16 %v700_v39, %v700_v39  ;;  %v290_v43 = vpop.f32.mrb[1].mxu1  ;;  %v598_v44 = vpack.c.bf16 %v210_v42, %v210_v42 }
  0xe2   :  { %v614_v45 = vpack.c.bf16 %v290_v43, %v290_v43  ;;  %499 = vst.msk [vmem:[%s1019_s2 + $0x4] sm:$0xf] %vm497_vm1, %v599_v40 }
  0xe3   :  { %515 = vst.msk [vmem:[%s1019_s2 + $0x44] sm:$0xf] %vm497_vm1, %v615_v41  ;;  %498 = vst.msk [vmem:[%s1019_s2] sm:$0xf] %vm497_vm1, %v598_v44  ;;  %v679_v46 = vpop.f32.mrb[2].mxu0 }
  0xe4   :  { %514 = vst.msk [vmem:[%s1019_s2 + $0x40] sm:$0xf] %vm497_vm1, %v614_v45  ;;  %v703_v47 = vpop.f32.mrb[2].mxu1  ;;  %v601_v48 = vpack.c.bf16 %v679_v46, %v679_v46  ;;  %v220_v50 = vpop.f32.mrb[3].mxu0 }
  0xe5   :  { %v617_v49 = vpack.c.bf16 %v703_v47, %v703_v47  ;;  %v300_v51 = vpop.f32.mrb[3].mxu1  ;;  %v600_v52 = vpack.c.bf16 %v220_v50, %v220_v50 }
  0xe6   :  { %v616_v53 = vpack.c.bf16 %v300_v51, %v300_v51  ;;  %501 = vst.msk [vmem:[%s1019_s2 + $0xc] sm:$0xf] %vm497_vm1, %v601_v48 }
  0xe7   :  { %517 = vst.msk [vmem:[%s1019_s2 + $0x4c] sm:$0xf] %vm497_vm1, %v617_v49  ;;  %500 = vst.msk [vmem:[%s1019_s2 + $0x8] sm:$0xf] %vm497_vm1, %v600_v52  ;;  %v682_v54 = vpop.f32.mrb[4].mxu0 }
  0xe8   :  { %516 = vst.msk [vmem:[%s1019_s2 + $0x48] sm:$0xf] %vm497_vm1, %v616_v53  ;;  %v706_v55 = vpop.f32.mrb[4].mxu1  ;;  %v603_v56 = vpack.c.bf16 %v682_v54, %v682_v54  ;;  %v230_v58 = vpop.f32.mrb[5].mxu0 }
  0xe9   :  { %v619_v57 = vpack.c.bf16 %v706_v55, %v706_v55  ;;  %v310_v59 = vpop.f32.mrb[5].mxu1  ;;  %v602_v60 = vpack.c.bf16 %v230_v58, %v230_v58 }
  0xea   :  { %v618_v61 = vpack.c.bf16 %v310_v59, %v310_v59  ;;  %503 = vst.msk [vmem:[%s1019_s2 + $0x14] sm:$0xf] %vm497_vm1, %v603_v56 }
  0xeb   :  { %519 = vst.msk [vmem:[%s1019_s2 + $0x54] sm:$0xf] %vm497_vm1, %v619_v57  ;;  %502 = vst.msk [vmem:[%s1019_s2 + $0x10] sm:$0xf] %vm497_vm1, %v602_v60  ;;  %v685_v62 = vpop.f32.mrb[6].mxu0 }
  0xec   :  { %518 = vst.msk [vmem:[%s1019_s2 + $0x50] sm:$0xf] %vm497_vm1, %v618_v61  ;;  %v709_v63 = vpop.f32.mrb[6].mxu1  ;;  %v605_v0 = vpack.c.bf16 %v685_v62, %v685_v62  ;;  %v240_v2 = vpop.f32.mrb[7].mxu0 }
  0xed   :  { %v621_v1 = vpack.c.bf16 %v709_v63, %v709_v63  ;;  %v320_v3 = vpop.f32.mrb[7].mxu1  ;;  %v604_v4 = vpack.c.bf16 %v240_v2, %v240_v2 }
  0xee   :  { %v620_v5 = vpack.c.bf16 %v320_v3, %v320_v3  ;;  %505 = vst.msk [vmem:[%s1019_s2 + $0x1c] sm:$0xf] %vm497_vm1, %v605_v0 }
  0xef   :  { %521 = vst.msk [vmem:[%s1019_s2 + $0x5c] sm:$0xf] %vm497_vm1, %v621_v1  ;;  %504 = vst.msk [vmem:[%s1019_s2 + $0x18] sm:$0xf] %vm497_vm1, %v604_v4  ;;  %v688_v6 = vpop.f32.mrb[8].mxu0 }
  0xf0   :  { %520 = vst.msk [vmem:[%s1019_s2 + $0x58] sm:$0xf] %vm497_vm1, %v620_v5  ;;  %v712_v7 = vpop.f32.mrb[8].mxu1  ;;  %v607_v8 = vpack.c.bf16 %v688_v6, %v688_v6  ;;  %v250_v10 = vpop.f32.mrb[9].mxu0 }
  0xf1   :  { %v623_v9 = vpack.c.bf16 %v712_v7, %v712_v7  ;;  %v330_v11 = vpop.f32.mrb[9].mxu1  ;;  %v606_v12 = vpack.c.bf16 %v250_v10, %v250_v10 }
  0xf2   :  { %v622_v13 = vpack.c.bf16 %v330_v11, %v330_v11  ;;  %507 = vst.msk [vmem:[%s1019_s2 + $0x24] sm:$0xf] %vm497_vm1, %v607_v8 }
  0xf3   :  { %523 = vst.msk [vmem:[%s1019_s2 + $0x64] sm:$0xf] %vm497_vm1, %v623_v9  ;;  %506 = vst.msk [vmem:[%s1019_s2 + $0x20] sm:$0xf] %vm497_vm1, %v606_v12  ;;  %v691_v14 = vpop.f32.mrb[10].mxu0 }
  0xf4   :  { %522 = vst.msk [vmem:[%s1019_s2 + $0x60] sm:$0xf] %vm497_vm1, %v622_v13  ;;  %v715_v15 = vpop.f32.mrb[10].mxu1  ;;  %v609_v16 = vpack.c.bf16 %v691_v14, %v691_v14  ;;  %v260_v18 = vpop.f32.mrb[11].mxu0 }
  0xf5   :  { %v625_v17 = vpack.c.bf16 %v715_v15, %v715_v15  ;;  %v340_v19 = vpop.f32.mrb[11].mxu1  ;;  %v608_v20 = vpack.c.bf16 %v260_v18, %v260_v18 }
  0xf6   :  { %v624_v21 = vpack.c.bf16 %v340_v19, %v340_v19  ;;  %509 = vst.msk [vmem:[%s1019_s2 + $0x2c] sm:$0xf] %vm497_vm1, %v609_v16 }
  0xf7   :  { %525 = vst.msk [vmem:[%s1019_s2 + $0x6c] sm:$0xf] %vm497_vm1, %v625_v17  ;;  %508 = vst.msk [vmem:[%s1019_s2 + $0x28] sm:$0xf] %vm497_vm1, %v608_v20  ;;  %v694_v22 = vpop.f32.mrb[12].mxu0 }
  0xf8   :  { %524 = vst.msk [vmem:[%s1019_s2 + $0x68] sm:$0xf] %vm497_vm1, %v624_v21  ;;  %v718_v23 = vpop.f32.mrb[12].mxu1  ;;  %v611_v24 = vpack.c.bf16 %v694_v22, %v694_v22  ;;  %v270_v26 = vpop.f32.mrb[13].mxu0 }
  0xf9   :  { %v627_v25 = vpack.c.bf16 %v718_v23, %v718_v23  ;;  %v350_v27 = vpop.f32.mrb[13].mxu1  ;;  %v610_v28 = vpack.c.bf16 %v270_v26, %v270_v26 }
  0xfa   :  { %v626_v29 = vpack.c.bf16 %v350_v27, %v350_v27  ;;  %511 = vst.msk [vmem:[%s1019_s2 + $0x34] sm:$0xf] %vm497_vm1, %v611_v24 }
  0xfb   :  { %527 = vst.msk [vmem:[%s1019_s2 + $0x74] sm:$0xf] %vm497_vm1, %v627_v25  ;;  %510 = vst.msk [vmem:[%s1019_s2 + $0x30] sm:$0xf] %vm497_vm1, %v610_v28  ;;  %v697_v30 = vpop.f32.mrb[14].mxu0 }
  0xfc   :  { %526 = vst.msk [vmem:[%s1019_s2 + $0x70] sm:$0xf] %vm497_vm1, %v626_v29  ;;  %v721_v31 = vpop.f32.mrb[14].mxu1  ;;  %v613_v32 = vpack.c.bf16 %v697_v30, %v697_v30  ;;  %v280_v34 = vpop.f32.mrb[15].mxu0 }
  0xfd   :  { %v629_v33 = vpack.c.bf16 %v721_v31, %v721_v31  ;;  %v360_v35 = vpop.f32.mrb[15].mxu1  ;;  %v612_v36 = vpack.c.bf16 %v280_v34, %v280_v34 }
  0xfe   :  { %v628_v37 = vpack.c.bf16 %v360_v35, %v360_v35  ;;  %513 = vst.msk [vmem:[%s1019_s2 + $0x3c] sm:$0xf] %vm497_vm1, %v613_v32 }
  0xff   :  { %529 = vst.msk [vmem:[%s1019_s2 + $0x7c] sm:$0xf] %vm497_vm1, %v629_v33  ;;  %512 = vst.msk [vmem:[%s1019_s2 + $0x38] sm:$0xf] %vm497_vm1, %v612_v36 }
 0x100   :  { %528 = vst.msk [vmem:[%s1019_s2 + $0x78] sm:$0xf] %vm497_vm1, %v628_v37 }

// kernel: dominant_forward.10
= control target key start
LH: loop header
LB: loop body
LE: loop exit
PB: predicated region body
PF: predicated region fallthrough
CT: control target
= control target key end

     0   :  { %vm16_vm0 = vcmask 523264   ;;  %v1171_v48 = vmov 0.0   ;;  %vm827_vm1 = vcmask 519168   ;;  %s1523_s1 = inlined_call_operand.vmem [shape: bf16[256,64], index: 1, kind: input, shape index: {}]   ;;  %s1524_s0 = inlined_call_operand.vmem [shape: bf16[256,256], index: 0, kind: input, shape index: {}]   ;;  %s1525_s2 = inlined_call_operand.vmem [shape: bf16[256,64], index: 2, kind: output, shape index: {}]  }
   0x1   :  { %v1107_v0 = vld [vmem:[%s1523_s1 + $0x40] sm:$0xff]   ;;  %v1109_v2 = vld [vmem:[%s1523_s1 + $0x48] sm:$0xff]   ;;  %v1111_v4 = vld [vmem:[%s1523_s1 + $0x50] sm:$0xff]   ;;  %17 = vst.msk [vmem:[#allocation2] sm:$0xff] %vm16_vm0, %v1171_v48 }
   0x2   :  { %v1108_v1 = vld [vmem:[%s1523_s1] sm:$0xff]   ;;  %978 = vmatprep.subr.bf16.mxu0 %v1107_v0  ;;  %1090 = vmatprep.subr.bf16.mxu1 %v1107_v0  ;;  %v1110_v3 = vld [vmem:[%s1523_s1 + $0x8] sm:$0xff]   ;;  %v1112_v5 = vld [vmem:[%s1523_s1 + $0x10] sm:$0xff]   ;;  %18 = vst.msk [vmem:[#allocation2 + $0x8] sm:$0xff] %vm16_vm0, %v1171_v48 }
   0x3   :  { %979 = vmatpush3.bf16.msra.mxu0 %v1108_v1  ;;  %1098 = vmatpush3.bf16.msra.mxu1 %v1108_v1  ;;  %v1113_v6 = vld [vmem:[%s1523_s1 + $0x58] sm:$0xff]   ;;  %v1115_v8 = vld [vmem:[%s1523_s1 + $0x60] sm:$0xff]   ;;  %v1117_v10 = vld [vmem:[%s1523_s1 + $0x68] sm:$0xff]   ;;  %19 = vst.msk [vmem:[#allocation2 + $0x10] sm:$0xff] %vm16_vm0, %v1171_v48 }
   0x4   :  { %980 = vmatprep.subr.bf16.mxu0 %v1109_v2  ;;  %1091 = vmatprep.subr.bf16.mxu1 %v1109_v2  ;;  %v1114_v7 = vld [vmem:[%s1523_s1 + $0x18] sm:$0xff]   ;;  %v1116_v9 = vld [vmem:[%s1523_s1 + $0x20] sm:$0xff]   ;;  %v1118_v13 = vld [vmem:[%s1523_s1 + $0x28] sm:$0xff]   ;;  %20 = vst.msk [vmem:[#allocation2 + $0x18] sm:$0xff] %vm16_vm0, %v1171_v48 }
   0x5   :  { %v1125_v11 = vld [vmem:[%s1524_s0 + $0x4] ss:$8 sps:$4 sm:$0xff]   ;;  %v1119_v14 = vld [vmem:[%s1523_s1 + $0x70] sm:$0xff]   ;;  %v1121_v16 = vld [vmem:[%s1523_s1 + $0x78] sm:$0xff]   ;;  %21 = vst.msk [vmem:[#allocation2 + $0x20] sm:$0xff] %vm16_vm0, %v1171_v48 }
   0x6   :  { %v1128_v12 = vld [vmem:[%s1524_s0 + $0x84] ss:$8 sps:$4 sm:$0xff]   ;;  %438 = vmatprep.mubr.bf16.mxu0 %v1125_v11  ;;  %v1120_v15 = vld [vmem:[%s1523_s1 + $0x30] sm:$0xff]   ;;  %v1122_v17 = vld [vmem:[%s1523_s1 + $0x38] sm:$0xff]   ;;  %22 = vst.msk [vmem:[#allocation2 + $0x28] sm:$0xff] %vm16_vm0, %v1171_v48 }
   0x7   :  { %981 = vmatpush3.bf16.msra.mxu0 %v1110_v3  ;;  %1099 = vmatpush3.bf16.msra.mxu1 %v1110_v3  ;;  %v1123_v18 = vld [vmem:[%s1524_s0] ss:$8 sps:$4 sm:$0xff]   ;;  %v1129_v20 = vld [vmem:[%s1524_s0 + $0x14] ss:$8 sps:$4 sm:$0xff]   ;;  %v1133_v22 = vld [vmem:[%s1524_s0 + $0x10] ss:$8 sps:$4 sm:$0xff]  }
   0x8   :  { %982 = vmatprep.subr.bf16.mxu0 %v1111_v4  ;;  %1092 = vmatprep.subr.bf16.mxu1 %v1111_v4  ;;  %v1126_v19 = vld [vmem:[%s1524_s0 + $0x80] ss:$8 sps:$4 sm:$0xff]   ;;  %v1131_v21 = vld [vmem:[%s1524_s0 + $0x94] ss:$8 sps:$4 sm:$0xff]   ;;  %v1134_v23 = vld [vmem:[%s1524_s0 + $0x90] ss:$8 sps:$4 sm:$0xff]  }
   0x9   :  { %502 = vmatprep.mubr.bf16.mxu1 %v1128_v12  ;;  %v1135_v24 = vld [vmem:[%s1524_s0 + $0x24] ss:$8 sps:$4 sm:$0xff]   ;;  %v1139_v26 = vld [vmem:[%s1524_s0 + $0x20] ss:$8 sps:$4 sm:$0xff]   ;;  %v1141_v28 = vld [vmem:[%s1524_s0 + $0x34] ss:$8 sps:$4 sm:$0xff]  }
   0xa   :  { %v1137_v25 = vld [vmem:[%s1524_s0 + $0xa4] ss:$8 sps:$4 sm:$0xff]   ;;  %v1140_v27 = vld [vmem:[%s1524_s0 + $0xa0] ss:$8 sps:$4 sm:$0xff]   ;;  %v1143_v29 = vld [vmem:[%s1524_s0 + $0xb4] ss:$8 sps:$4 sm:$0xff]  }
   0xb   :  { %983 = vmatpush3.bf16.msra.mxu0 %v1112_v5  ;;  %1100 = vmatpush3.bf16.msra.mxu1 %v1112_v5  ;;  %v1145_v30 = vld [vmem:[%s1524_s0 + $0x30] ss:$8 sps:$4 sm:$0xff]   ;;  %v1147_v32 = vld [vmem:[%s1524_s0 + $0x44] ss:$8 sps:$4 sm:$0xff]   ;;  %v1151_v34 = vld [vmem:[%s1524_s0 + $0x40] ss:$8 sps:$4 sm:$0xff]  }
   0xc   :  { %984 = vmatprep.subr.bf16.mxu0 %v1113_v6  ;;  %1093 = vmatprep.subr.bf16.mxu1 %v1113_v6  ;;  %v1146_v31 = vld [vmem:[%s1524_s0 + $0xb0] ss:$8 sps:$4 sm:$0xff]   ;;  %v1149_v33 = vld [vmem:[%s1524_s0 + $0xc4] ss:$8 sps:$4 sm:$0xff]   ;;  %v1152_v35 = vld [vmem:[%s1524_s0 + $0xc0] ss:$8 sps:$4 sm:$0xff]  }
   0xd   :  { %v1153_v36 = vld [vmem:[%s1524_s0 + $0x54] ss:$8 sps:$4 sm:$0xff]   ;;  %v1157_v38 = vld [vmem:[%s1524_s0 + $0x50] ss:$8 sps:$4 sm:$0xff]   ;;  %v1159_v40 = vld [vmem:[%s1524_s0 + $0x64] ss:$8 sps:$4 sm:$0xff]  }
   0xe   :  { %v1155_v37 = vld [vmem:[%s1524_s0 + $0xd4] ss:$8 sps:$4 sm:$0xff]   ;;  %v1158_v39 = vld [vmem:[%s1524_s0 + $0xd0] ss:$8 sps:$4 sm:$0xff]   ;;  %v1161_v41 = vld [vmem:[%s1524_s0 + $0xe4] ss:$8 sps:$4 sm:$0xff]  }
   0xf   :  { %985 = vmatpush3.bf16.msra.mxu0 %v1114_v7  ;;  %1101 = vmatpush3.bf16.msra.mxu1 %v1114_v7  ;;  %v1163_v42 = vld [vmem:[%s1524_s0 + $0x60] ss:$8 sps:$4 sm:$0xff]   ;;  %v1165_v44 = vld [vmem:[%s1524_s0 + $0x74] ss:$8 sps:$4 sm:$0xff]   ;;  %v1169_v46 = vld [vmem:[%s1524_s0 + $0x70] ss:$8 sps:$4 sm:$0xff]  }
  0x10   :  { %986 = vmatprep.subr.bf16.mxu0 %v1115_v8  ;;  %1094 = vmatprep.subr.bf16.mxu1 %v1115_v8  ;;  %v1164_v43 = vld [vmem:[%s1524_s0 + $0xe0] ss:$8 sps:$4 sm:$0xff]   ;;  %v1167_v45 = vld [vmem:[%s1524_s0 + $0xf4] ss:$8 sps:$4 sm:$0xff]   ;;  %v1170_v47 = vld [vmem:[%s1524_s0 + $0xf0] ss:$8 sps:$4 sm:$0xff]  }
  0x11   :  { %23 = vst.msk [vmem:[#allocation2 + $0x30] sm:$0xff] %vm16_vm0, %v1171_v48  ;;  %24 = vst.msk [vmem:[#allocation2 + $0x38] sm:$0xff] %vm16_vm0, %v1171_v48  ;;  %v50_v51 = vld [vmem:[#allocation2] sm:$0xff]  ;;  %v51_v59 = vld [vmem:[#allocation2 + $0x8] sm:$0xff] }
  0x12   :  { %25 = vst.msk [vmem:[#allocation2 + $0x40] sm:$0xff] %vm16_vm0, %v1171_v48  ;;  %26 = vst.msk [vmem:[#allocation2 + $0x48] sm:$0xff] %vm16_vm0, %v1171_v48  ;;  %v52_v7 = vld [vmem:[#allocation2 + $0x10] sm:$0xff] }
  0x13   :  { %987 = vmatpush3.bf16.msra.mxu0 %v1116_v9  ;;  %1102 = vmatpush3.bf16.msra.mxu1 %v1116_v9  ;;  %27 = vst.msk [vmem:[#allocation2 + $0x50] sm:$0xff] %vm16_vm0, %v1171_v48  ;;  %28 = vst.msk [vmem:[#allocation2 + $0x58] sm:$0xff] %vm16_vm0, %v1171_v48 }
  0x14   :  { %988 = vmatprep.subr.bf16.mxu0 %v1117_v10  ;;  %1095 = vmatprep.subr.bf16.mxu1 %v1117_v10  ;;  %29 = vst.msk [vmem:[#allocation2 + $0x60] sm:$0xff] %vm16_vm0, %v1171_v48  ;;  %30 = vst.msk [vmem:[#allocation2 + $0x68] sm:$0xff] %vm16_vm0, %v1171_v48 }
  0x15   :  { %31 = vst.msk [vmem:[#allocation2 + $0x70] sm:$0xff] %vm16_vm0, %v1171_v48  ;;  %32 = vst.msk [vmem:[#allocation2 + $0x78] sm:$0xff] %vm16_vm0, %v1171_v48 }
  0x16   :  { %33 = vst.msk [vmem:[#allocation2 + $0x80] sm:$0xff] %vm16_vm0, %v1171_v48  ;;  %34 = vst.msk [vmem:[#allocation2 + $0x88] sm:$0xff] %vm16_vm0, %v1171_v48 }
  0x17   :  { %989 = vmatpush3.bf16.msra.mxu0 %v1118_v13  ;;  %1103 = vmatpush3.bf16.msra.mxu1 %v1118_v13  ;;  %35 = vst.msk [vmem:[#allocation2 + $0x90] sm:$0xff] %vm16_vm0, %v1171_v48  ;;  %36 = vst.msk [vmem:[#allocation2 + $0x98] sm:$0xff] %vm16_vm0, %v1171_v48 }
  0x18   :  { %990 = vmatprep.subr.bf16.mxu0 %v1119_v14  ;;  %1096 = vmatprep.subr.bf16.mxu1 %v1119_v14  ;;  %37 = vst.msk [vmem:[#allocation2 + $0xa0] sm:$0xff] %vm16_vm0, %v1171_v48  ;;  %38 = vst.msk [vmem:[#allocation2 + $0xa8] sm:$0xff] %vm16_vm0, %v1171_v48 }
  0x19   :  { %39 = vst.msk [vmem:[#allocation2 + $0xb0] sm:$0xff] %vm16_vm0, %v1171_v48  ;;  %40 = vst.msk [vmem:[#allocation2 + $0xb8] sm:$0xff] %vm16_vm0, %v1171_v48 }
  0x1a   :  { %41 = vst.msk [vmem:[#allocation2 + $0xc0] sm:$0xff] %vm16_vm0, %v1171_v48  ;;  %42 = vst.msk [vmem:[#allocation2 + $0xc8] sm:$0xff] %vm16_vm0, %v1171_v48 }
  0x1b   :  { %991 = vmatpush3.bf16.msra.mxu0 %v1120_v15  ;;  %1104 = vmatpush3.bf16.msra.mxu1 %v1120_v15  ;;  %43 = vst.msk [vmem:[#allocation2 + $0xd0] sm:$0xff] %vm16_vm0, %v1171_v48  ;;  %44 = vst.msk [vmem:[#allocation2 + $0xd8] sm:$0xff] %vm16_vm0, %v1171_v48  ;;  %v53_v15 = vld [vmem:[#allocation2 + $0x18] sm:$0xff] }
  0x1c   :  { %992 = vmatprep.subr.bf16.mxu0 %v1121_v16  ;;  %1097 = vmatprep.subr.bf16.mxu1 %v1121_v16  ;;  %45 = vst.msk [vmem:[#allocation2 + $0xe0] sm:$0xff] %vm16_vm0, %v1171_v48  ;;  %46 = vst.msk [vmem:[#allocation2 + $0xe8] sm:$0xff] %vm16_vm0, %v1171_v48 }
  0x1d   :  { %47 = vst.msk [vmem:[#allocation2 + $0xf0] sm:$0xff] %vm16_vm0, %v1171_v48  ;;  %48 = vst.msk [vmem:[#allocation2 + $0xf8] sm:$0xff] %vm16_vm0, %v1171_v48  ;;  %v66_v53 = vld [vmem:[#allocation2 + $0x80] sm:$0xff]  ;;  %v67_v61 = vld [vmem:[#allocation2 + $0x88] sm:$0xff] }
  0x1e   :  { %v68_v9 = vld [vmem:[#allocation2 + $0x90] sm:$0xff] }
  0x1f   :  { %993 = vmatpush3.bf16.msra.mxu0 %v1122_v17  ;;  %1105 = vmatpush3.bf16.msra.mxu1 %v1122_v17  ;;  %v69_v17 = vld [vmem:[#allocation2 + $0x98] sm:$0xff] }
  0x22   :  { %439 = vmatmul.mubr.bf16.vlgmr.msra.gmra.mrb[0].mxu0 %v1123_v18  ;;  %503 = vmatmul.mubr.bf16.vlgmr.msra.gmra.mrb[0].mxu1 %v1126_v19 }
  0x23   :  { %446 = vmatprep.mubr.bf16.mxu0 %v1129_v20  ;;  %510 = vmatprep.mubr.bf16.mxu1 %v1131_v21 }
  0x2a   :  { %447 = vmatmul.mubr.bf16.gmra.mrb[4].mxu0 %v1133_v22  ;;  %511 = vmatmul.mubr.bf16.gmra.mrb[4].mxu1 %v1134_v23 }
  0x2b   :  { %454 = vmatprep.mubr.bf16.mxu0 %v1135_v24  ;;  %518 = vmatprep.mubr.bf16.mxu1 %v1137_v25 }
  0x32   :  { %455 = vmatmul.mubr.bf16.gmra.mrb[8].mxu0 %v1139_v26  ;;  %519 = vmatmul.mubr.bf16.gmra.mrb[8].mxu1 %v1140_v27 }
  0x33   :  { %462 = vmatprep.mubr.bf16.mxu0 %v1141_v28  ;;  %526 = vmatprep.mubr.bf16.mxu1 %v1143_v29 }
  0x3a   :  { %463 = vmatmul.mubr.bf16.gmra.mrb[12].mxu0 %v1145_v30  ;;  %527 = vmatmul.mubr.bf16.gmra.mrb[12].mxu1 %v1146_v31 }
  0x3b   :  { %470 = vmatprep.mubr.bf16.mxu0 %v1147_v32  ;;  %534 = vmatprep.mubr.bf16.mxu1 %v1149_v33 }
  0x42   :  { %471 = vmatmul.mubr.bf16.gmra.mrb[16].mxu0 %v1151_v34  ;;  %535 = vmatmul.mubr.bf16.gmra.mrb[16].mxu1 %v1152_v35 }
  0x43   :  { %478 = vmatprep.mubr.bf16.mxu0 %v1153_v36  ;;  %542 = vmatprep.mubr.bf16.mxu1 %v1155_v37  ;;  %v54_v37 = vld [vmem:[#allocation2 + $0x20] sm:$0xff] }
  0x4a   :  { %479 = vmatmul.mubr.bf16.gmra.mrb[20].mxu0 %v1157_v38  ;;  %543 = vmatmul.mubr.bf16.gmra.mrb[20].mxu1 %v1158_v39  ;;  %v70_v39 = vld [vmem:[#allocation2 + $0xa0] sm:$0xff] }
  0x4b   :  { %486 = vmatprep.mubr.bf16.mxu0 %v1159_v40  ;;  %550 = vmatprep.mubr.bf16.mxu1 %v1161_v41 }
  0x52   :  { %487 = vmatmul.mubr.bf16.gmra.mrb[24].mxu0 %v1163_v42  ;;  %551 = vmatmul.mubr.bf16.gmra.mrb[24].mxu1 %v1164_v43 }
  0x53   :  { %494 = vmatprep.mubr.bf16.mxu0 %v1165_v44  ;;  %558 = vmatprep.mubr.bf16.mxu1 %v1167_v45 }
  0x5a   :  { %495 = vmatmul.mubr.bf16.gmra.mrb[28].mxu0 %v1169_v46  ;;  %559 = vmatmul.mubr.bf16.gmra.mrb[28].mxu1 %v1170_v47  ;;  %v55_v47 = vld [vmem:[#allocation2 + $0x28] sm:$0xff] }
  0xf5   :  { %v994_v49 = vpop.f32.mrb[0].mxu0  ;;  %v1042_v50 = vpop.f32.mrb[0].mxu1 }
  0xf6   :  { %v995_v52 = vpop.f32.mrb[1].mxu0  ;;  %v1043_v54 = vpop.f32.mrb[1].mxu1 }
  0xf7   :  { %v996_v55 = vadd.f32 %v995_v52, %v994_v49  ;;  %v1044_v56 = vadd.f32 %v1043_v54, %v1042_v50  ;;  %v997_v57 = vpop.f32.mrb[2].mxu0  ;;  %v1045_v58 = vpop.f32.mrb[2].mxu1  ;;  %v71_v49 = vld [vmem:[#allocation2 + $0xa8] sm:$0xff] }
  0xf8   :  { %v998_v60 = vpop.f32.mrb[3].mxu0  ;;  %v1046_v62 = vpop.f32.mrb[3].mxu1 }
  0xf9   :  { %v567_v63 = vadd.f32 %v996_v55, %v50_v51  ;;  %v583_v0 = vadd.f32 %v1044_v56, %v66_v53  ;;  %v999_v1 = vadd.f32 %v998_v60, %v997_v57  ;;  %v1047_v2 = vadd.f32 %v1046_v62, %v1045_v58 }
  0xfb   :  { %600 = vst.msk [vmem:[#allocation2] sm:$0xff] %vm16_vm0, %v567_v63  ;;  %616 = vst.msk [vmem:[#allocation2 + $0x80] sm:$0xff] %vm16_vm0, %v583_v0  ;;  %v568_v3 = vadd.f32 %v999_v1, %v51_v59  ;;  %v584_v4 = vadd.f32 %v1047_v2, %v67_v61 }
  0xfd   :  { %601 = vst.msk [vmem:[#allocation2 + $0x8] sm:$0xff] %vm16_vm0, %v568_v3  ;;  %617 = vst.msk [vmem:[#allocation2 + $0x88] sm:$0xff] %vm16_vm0, %v584_v4  ;;  %v1000_v5 = vpop.f32.mrb[4].mxu0  ;;  %v1048_v6 = vpop.f32.mrb[4].mxu1 }
  0xfe   :  { %v1001_v8 = vpop.f32.mrb[5].mxu0  ;;  %v1049_v10 = vpop.f32.mrb[5].mxu1 }
  0xff   :  { %v1002_v11 = vadd.f32 %v1001_v8, %v1000_v5  ;;  %v1050_v12 = vadd.f32 %v1049_v10, %v1048_v6  ;;  %v1003_v13 = vpop.f32.mrb[6].mxu0  ;;  %v1051_v14 = vpop.f32.mrb[6].mxu1  ;;  %v56_v5 = vld [vmem:[#allocation2 + $0x30] sm:$0xff] }
 0x100   :  { %v1004_v16 = vpop.f32.mrb[7].mxu0  ;;  %v1052_v18 = vpop.f32.mrb[7].mxu1 }
 0x101   :  { %v569_v19 = vadd.f32 %v1002_v11, %v52_v7  ;;  %v585_v20 = vadd.f32 %v1050_v12, %v68_v9  ;;  %v1005_v21 = vadd.f32 %v1004_v16, %v1003_v13  ;;  %v1053_v22 = vadd.f32 %v1052_v18, %v1051_v14  ;;  %v72_v7 = vld [vmem:[#allocation2 + $0xb0] sm:$0xff] }
 0x102   :  { %v635_v23 = vld [vmem:[#allocation2] sm:$0xff] }
 0x103   :  { %v651_v24 = vld [vmem:[#allocation2 + $0x80] sm:$0xff]  ;;  %v667_v25 = vmax.f32 %v635_v23, 0.0  ;;  %602 = vst.msk [vmem:[#allocation2 + $0x10] sm:$0xff] %vm16_vm0, %v569_v19  ;;  %618 = vst.msk [vmem:[#allocation2 + $0x90] sm:$0xff] %vm16_vm0, %v585_v20  ;;  %v570_v27 = vadd.f32 %v1005_v21, %v53_v15  ;;  %v586_v28 = vadd.f32 %v1053_v22, %v69_v17  ;;  %v57_v15 = vld [vmem:[#allocation2 + $0x38] sm:$0xff] }
 0x104   :  { %v683_v26 = vmax.f32 %v651_v24, 0.0  ;;  %v636_v29 = vld [vmem:[#allocation2 + $0x8] sm:$0xff]  ;;  %v73_v17 = vld [vmem:[#allocation2 + $0xb8] sm:$0xff] }
 0x105   :  { %v652_v30 = vld [vmem:[#allocation2 + $0x88] sm:$0xff]  ;;  %v946_v31 = vpack.c.bf16 %v667_v25, %v667_v25  ;;  %v668_v33 = vmax.f32 %v636_v29, 0.0  ;;  %603 = vst.msk [vmem:[#allocation2 + $0x18] sm:$0xff] %vm16_vm0, %v570_v27  ;;  %619 = vst.msk [vmem:[#allocation2 + $0x98] sm:$0xff] %vm16_vm0, %v586_v28  ;;  %v1006_v35 = vpop.f32.mrb[8].mxu0  ;;  %v1054_v36 = vpop.f32.mrb[8].mxu1 }
 0x106   :  { %v962_v32 = vpack.c.bf16 %v683_v26, %v683_v26  ;;  %v684_v34 = vmax.f32 %v652_v30, 0.0  ;;  %v1007_v38 = vpop.f32.mrb[9].mxu0  ;;  %v1055_v40 = vpop.f32.mrb[9].mxu1 }
 0x107   :  { %828 = vst.msk [vmem:[%s1525_s2] sm:$0xf] %vm827_vm1, %v946_v31  ;;  %v947_v41 = vpack.c.bf16 %v668_v33, %v668_v33  ;;  %v1008_v43 = vadd.f32 %v1007_v38, %v1006_v35  ;;  %v1056_v44 = vadd.f32 %v1055_v40, %v1054_v36  ;;  %v1009_v45 = vpop.f32.mrb[10].mxu0  ;;  %v1057_v46 = vpop.f32.mrb[10].mxu1 }
 0x108   :  { %844 = vst.msk [vmem:[%s1525_s2 + $0x40] sm:$0xf] %vm827_vm1, %v962_v32  ;;  %v963_v42 = vpack.c.bf16 %v684_v34, %v684_v34  ;;  %v1010_v48 = vpop.f32.mrb[11].mxu0  ;;  %v1058_v50 = vpop.f32.mrb[11].mxu1 }
 0x109   :  { %829 = vst.msk [vmem:[%s1525_s2 + $0x4] sm:$0xf] %vm827_vm1, %v947_v41  ;;  %v571_v51 = vadd.f32 %v1008_v43, %v54_v37  ;;  %v587_v52 = vadd.f32 %v1056_v44, %v70_v39  ;;  %v1011_v53 = vadd.f32 %v1010_v48, %v1009_v45  ;;  %v1059_v54 = vadd.f32 %v1058_v50, %v1057_v46  ;;  %v58_v37 = vld [vmem:[#allocation2 + $0x40] sm:$0xff] }
 0x10a   :  { %845 = vst.msk [vmem:[%s1525_s2 + $0x44] sm:$0xf] %vm827_vm1, %v963_v42  ;;  %v637_v55 = vld [vmem:[#allocation2 + $0x10] sm:$0xff]  ;;  %v74_v39 = vld [vmem:[#allocation2 + $0xc0] sm:$0xff] }
 0x10b   :  { %v653_v56 = vld [vmem:[#allocation2 + $0x90] sm:$0xff]  ;;  %v669_v57 = vmax.f32 %v637_v55, 0.0  ;;  %604 = vst.msk [vmem:[#allocation2 + $0x20] sm:$0xff] %vm16_vm0, %v571_v51  ;;  %620 = vst.msk [vmem:[#allocation2 + $0xa0] sm:$0xff] %vm16_vm0, %v587_v52  ;;  %v572_v59 = vadd.f32 %v1011_v53, %v55_v47  ;;  %v588_v60 = vadd.f32 %v1059_v54, %v71_v49  ;;  %v59_v47 = vld [vmem:[#allocation2 + $0x48] sm:$0xff] }
 0x10c   :  { %v685_v58 = vmax.f32 %v653_v56, 0.0  ;;  %v638_v61 = vld [vmem:[#allocation2 + $0x18] sm:$0xff]  ;;  %v75_v49 = vld [vmem:[#allocation2 + $0xc8] sm:$0xff] }
 0x10d   :  { %v654_v62 = vld [vmem:[#allocation2 + $0x98] sm:$0xff]  ;;  %v948_v63 = vpack.c.bf16 %v669_v57, %v669_v57  ;;  %v670_v1 = vmax.f32 %v638_v61, 0.0  ;;  %605 = vst.msk [vmem:[#allocation2 + $0x28] sm:$0xff] %vm16_vm0, %v572_v59  ;;  %621 = vst.msk [vmem:[#allocation2 + $0xa8] sm:$0xff] %vm16_vm0, %v588_v60  ;;  %v1012_v3 = vpop.f32.mrb[12].mxu0  ;;  %v1060_v4 = vpop.f32.mrb[12].mxu1 }
 0x10e   :  { %v964_v0 = vpack.c.bf16 %v685_v58, %v685_v58  ;;  %v686_v2 = vmax.f32 %v654_v62, 0.0  ;;  %v1013_v6 = vpop.f32.mrb[13].mxu0  ;;  %v1061_v8 = vpop.f32.mrb[13].mxu1 }
 0x10f   :  { %830 = vst.msk [vmem:[%s1525_s2 + $0x8] sm:$0xf] %vm827_vm1, %v948_v63  ;;  %v949_v9 = vpack.c.bf16 %v670_v1, %v670_v1  ;;  %v1014_v11 = vadd.f32 %v1013_v6, %v1012_v3  ;;  %v1062_v12 = vadd.f32 %v1061_v8, %v1060_v4  ;;  %v1015_v13 = vpop.f32.mrb[14].mxu0  ;;  %v1063_v14 = vpop.f32.mrb[14].mxu1 }
 0x110   :  { %846 = vst.msk [vmem:[%s1525_s2 + $0x48] sm:$0xf] %vm827_vm1, %v964_v0  ;;  %v965_v10 = vpack.c.bf16 %v686_v2, %v686_v2  ;;  %v1016_v16 = vpop.f32.mrb[15].mxu0  ;;  %v1064_v18 = vpop.f32.mrb[15].mxu1 }
 0x111   :  { %831 = vst.msk [vmem:[%s1525_s2 + $0xc] sm:$0xf] %vm827_vm1, %v949_v9  ;;  %v573_v19 = vadd.f32 %v1014_v11, %v56_v5  ;;  %v589_v20 = vadd.f32 %v1062_v12, %v72_v7  ;;  %v1017_v21 = vadd.f32 %v1016_v16, %v1015_v13  ;;  %v1065_v22 = vadd.f32 %v1064_v18, %v1063_v14  ;;  %v60_v5 = vld [vmem:[#allocation2 + $0x50] sm:$0xff] }
 0x112   :  { %847 = vst.msk [vmem:[%s1525_s2 + $0x4c] sm:$0xf] %vm827_vm1, %v965_v10  ;;  %v639_v23 = vld [vmem:[#allocation2 + $0x20] sm:$0xff]  ;;  %v76_v7 = vld [vmem:[#allocation2 + $0xd0] sm:$0xff] }
 0x113   :  { %v655_v24 = vld [vmem:[#allocation2 + $0xa0] sm:$0xff]  ;;  %v671_v25 = vmax.f32 %v639_v23, 0.0  ;;  %606 = vst.msk [vmem:[#allocation2 + $0x30] sm:$0xff] %vm16_vm0, %v573_v19  ;;  %622 = vst.msk [vmem:[#allocation2 + $0xb0] sm:$0xff] %vm16_vm0, %v589_v20  ;;  %v574_v27 = vadd.f32 %v1017_v21, %v57_v15  ;;  %v590_v28 = vadd.f32 %v1065_v22, %v73_v17  ;;  %v61_v15 = vld [vmem:[#allocation2 + $0x58] sm:$0xff] }
 0x114   :  { %v687_v26 = vmax.f32 %v655_v24, 0.0  ;;  %v640_v29 = vld [vmem:[#allocation2 + $0x28] sm:$0xff]  ;;  %v77_v17 = vld [vmem:[#allocation2 + $0xd8] sm:$0xff] }
 0x115   :  { %v656_v30 = vld [vmem:[#allocation2 + $0xa8] sm:$0xff]  ;;  %v950_v31 = vpack.c.bf16 %v671_v25, %v671_v25  ;;  %v672_v33 = vmax.f32 %v640_v29, 0.0  ;;  %607 = vst.msk [vmem:[#allocation2 + $0x38] sm:$0xff] %vm16_vm0, %v574_v27  ;;  %623 = vst.msk [vmem:[#allocation2 + $0xb8] sm:$0xff] %vm16_vm0, %v590_v28  ;;  %v1018_v35 = vpop.f32.mrb[16].mxu0  ;;  %v1066_v36 = vpop.f32.mrb[16].mxu1 }
 0x116   :  { %v966_v32 = vpack.c.bf16 %v687_v26, %v687_v26  ;;  %v688_v34 = vmax.f32 %v656_v30, 0.0  ;;  %v1019_v38 = vpop.f32.mrb[17].mxu0  ;;  %v1067_v40 = vpop.f32.mrb[17].mxu1 }
 0x117   :  { %832 = vst.msk [vmem:[%s1525_s2 + $0x10] sm:$0xf] %vm827_vm1, %v950_v31  ;;  %v951_v41 = vpack.c.bf16 %v672_v33, %v672_v33  ;;  %v1020_v43 = vadd.f32 %v1019_v38, %v1018_v35  ;;  %v1068_v44 = vadd.f32 %v1067_v40, %v1066_v36  ;;  %v1021_v45 = vpop.f32.mrb[18].mxu0  ;;  %v1069_v46 = vpop.f32.mrb[18].mxu1 }
 0x118   :  { %848 = vst.msk [vmem:[%s1525_s2 + $0x50] sm:$0xf] %vm827_vm1, %v966_v32  ;;  %v967_v42 = vpack.c.bf16 %v688_v34, %v688_v34  ;;  %v1022_v48 = vpop.f32.mrb[19].mxu0  ;;  %v1070_v50 = vpop.f32.mrb[19].mxu1 }
 0x119   :  { %833 = vst.msk [vmem:[%s1525_s2 + $0x14] sm:$0xf] %vm827_vm1, %v951_v41  ;;  %v575_v51 = vadd.f32 %v1020_v43, %v58_v37  ;;  %v591_v52 = vadd.f32 %v1068_v44, %v74_v39  ;;  %v1023_v53 = vadd.f32 %v1022_v48, %v1021_v45  ;;  %v1071_v54 = vadd.f32 %v1070_v50, %v1069_v46  ;;  %v62_v37 = vld [vmem:[#allocation2 + $0x60] sm:$0xff] }
 0x11a   :  { %849 = vst.msk [vmem:[%s1525_s2 + $0x54] sm:$0xf] %vm827_vm1, %v967_v42  ;;  %v641_v55 = vld [vmem:[#allocation2 + $0x30] sm:$0xff]  ;;  %v78_v39 = vld [vmem:[#allocation2 + $0xe0] sm:$0xff] }
 0x11b   :  { %v657_v56 = vld [vmem:[#allocation2 + $0xb0] sm:$0xff]  ;;  %v673_v57 = vmax.f32 %v641_v55, 0.0  ;;  %608 = vst.msk [vmem:[#allocation2 + $0x40] sm:$0xff] %vm16_vm0, %v575_v51  ;;  %624 = vst.msk [vmem:[#allocation2 + $0xc0] sm:$0xff] %vm16_vm0, %v591_v52  ;;  %v576_v59 = vadd.f32 %v1023_v53, %v59_v47  ;;  %v592_v60 = vadd.f32 %v1071_v54, %v75_v49  ;;  %v63_v47 = vld [vmem:[#allocation2 + $0x68] sm:$0xff] }
 0x11c   :  { %v689_v58 = vmax.f32 %v657_v56, 0.0  ;;  %v642_v61 = vld [vmem:[#allocation2 + $0x38] sm:$0xff]  ;;  %v79_v49 = vld [vmem:[#allocation2 + $0xe8] sm:$0xff] }
 0x11d   :  { %v658_v62 = vld [vmem:[#allocation2 + $0xb8] sm:$0xff]  ;;  %v952_v63 = vpack.c.bf16 %v673_v57, %v673_v57  ;;  %v674_v1 = vmax.f32 %v642_v61, 0.0  ;;  %609 = vst.msk [vmem:[#allocation2 + $0x48] sm:$0xff] %vm16_vm0, %v576_v59  ;;  %625 = vst.msk [vmem:[#allocation2 + $0xc8] sm:$0xff] %vm16_vm0, %v592_v60  ;;  %v1024_v3 = vpop.f32.mrb[20].mxu0  ;;  %v1072_v4 = vpop.f32.mrb[20].mxu1 }
 0x11e   :  { %v968_v0 = vpack.c.bf16 %v689_v58, %v689_v58  ;;  %v690_v2 = vmax.f32 %v658_v62, 0.0  ;;  %v1025_v6 = vpop.f32.mrb[21].mxu0  ;;  %v1073_v8 = vpop.f32.mrb[21].mxu1 }
 0x11f   :  { %834 = vst.msk [vmem:[%s1525_s2 + $0x18] sm:$0xf] %vm827_vm1, %v952_v63  ;;  %v953_v9 = vpack.c.bf16 %v674_v1, %v674_v1  ;;  %v1026_v11 = vadd.f32 %v1025_v6, %v1024_v3  ;;  %v1074_v12 = vadd.f32 %v1073_v8, %v1072_v4  ;;  %v1027_v13 = vpop.f32.mrb[22].mxu0  ;;  %v1075_v14 = vpop.f32.mrb[22].mxu1 }
 0x120   :  { %850 = vst.msk [vmem:[%s1525_s2 + $0x58] sm:$0xf] %vm827_vm1, %v968_v0  ;;  %v969_v10 = vpack.c.bf16 %v690_v2, %v690_v2  ;;  %v1028_v16 = vpop.f32.mrb[23].mxu0  ;;  %v1076_v18 = vpop.f32.mrb[23].mxu1 }
 0x121   :  { %835 = vst.msk [vmem:[%s1525_s2 + $0x1c] sm:$0xf] %vm827_vm1, %v953_v9  ;;  %v577_v19 = vadd.f32 %v1026_v11, %v60_v5  ;;  %v593_v20 = vadd.f32 %v1074_v12, %v76_v7  ;;  %v1029_v21 = vadd.f32 %v1028_v16, %v1027_v13  ;;  %v1077_v22 = vadd.f32 %v1076_v18, %v1075_v14  ;;  %v64_v5 = vld [vmem:[#allocation2 + $0x70] sm:$0xff] }
 0x122   :  { %851 = vst.msk [vmem:[%s1525_s2 + $0x5c] sm:$0xf] %vm827_vm1, %v969_v10  ;;  %v643_v23 = vld [vmem:[#allocation2 + $0x40] sm:$0xff]  ;;  %v80_v7 = vld [vmem:[#allocation2 + $0xf0] sm:$0xff] }
 0x123   :  { %v659_v24 = vld [vmem:[#allocation2 + $0xc0] sm:$0xff]  ;;  %v675_v25 = vmax.f32 %v643_v23, 0.0  ;;  %610 = vst.msk [vmem:[#allocation2 + $0x50] sm:$0xff] %vm16_vm0, %v577_v19  ;;  %626 = vst.msk [vmem:[#allocation2 + $0xd0] sm:$0xff] %vm16_vm0, %v593_v20  ;;  %v578_v27 = vadd.f32 %v1029_v21, %v61_v15  ;;  %v594_v28 = vadd.f32 %v1077_v22, %v77_v17  ;;  %v65_v15 = vld [vmem:[#allocation2 + $0x78] sm:$0xff] }
 0x124   :  { %v691_v26 = vmax.f32 %v659_v24, 0.0  ;;  %v644_v29 = vld [vmem:[#allocation2 + $0x48] sm:$0xff]  ;;  %v81_v17 = vld [vmem:[#allocation2 + $0xf8] sm:$0xff] }
 0x125   :  { %v660_v30 = vld [vmem:[#allocation2 + $0xc8] sm:$0xff]  ;;  %v954_v31 = vpack.c.bf16 %v675_v25, %v675_v25  ;;  %v676_v33 = vmax.f32 %v644_v29, 0.0  ;;  %611 = vst.msk [vmem:[#allocation2 + $0x58] sm:$0xff] %vm16_vm0, %v578_v27  ;;  %627 = vst.msk [vmem:[#allocation2 + $0xd8] sm:$0xff] %vm16_vm0, %v594_v28  ;;  %v1030_v35 = vpop.f32.mrb[24].mxu0  ;;  %v1078_v36 = vpop.f32.mrb[24].mxu1 }
 0x126   :  { %v970_v32 = vpack.c.bf16 %v691_v26, %v691_v26  ;;  %v692_v34 = vmax.f32 %v660_v30, 0.0  ;;  %v1031_v38 = vpop.f32.mrb[25].mxu0  ;;  %v1079_v40 = vpop.f32.mrb[25].mxu1 }
 0x127   :  { %836 = vst.msk [vmem:[%s1525_s2 + $0x20] sm:$0xf] %vm827_vm1, %v954_v31  ;;  %v955_v41 = vpack.c.bf16 %v676_v33, %v676_v33  ;;  %v1032_v43 = vadd.f32 %v1031_v38, %v1030_v35  ;;  %v1080_v44 = vadd.f32 %v1079_v40, %v1078_v36  ;;  %v1033_v45 = vpop.f32.mrb[26].mxu0  ;;  %v1081_v46 = vpop.f32.mrb[26].mxu1 }
 0x128   :  { %852 = vst.msk [vmem:[%s1525_s2 + $0x60] sm:$0xf] %vm827_vm1, %v970_v32  ;;  %v971_v42 = vpack.c.bf16 %v692_v34, %v692_v34  ;;  %v1034_v48 = vpop.f32.mrb[27].mxu0  ;;  %v1082_v50 = vpop.f32.mrb[27].mxu1 }
 0x129   :  { %837 = vst.msk [vmem:[%s1525_s2 + $0x24] sm:$0xf] %vm827_vm1, %v955_v41  ;;  %v579_v51 = vadd.f32 %v1032_v43, %v62_v37  ;;  %v595_v52 = vadd.f32 %v1080_v44, %v78_v39  ;;  %v1035_v53 = vadd.f32 %v1034_v48, %v1033_v45  ;;  %v1083_v54 = vadd.f32 %v1082_v50, %v1081_v46 }
 0x12a   :  { %853 = vst.msk [vmem:[%s1525_s2 + $0x64] sm:$0xf] %vm827_vm1, %v971_v42  ;;  %v645_v55 = vld [vmem:[#allocation2 + $0x50] sm:$0xff] }
 0x12b   :  { %v661_v56 = vld [vmem:[#allocation2 + $0xd0] sm:$0xff]  ;;  %v677_v57 = vmax.f32 %v645_v55, 0.0  ;;  %612 = vst.msk [vmem:[#allocation2 + $0x60] sm:$0xff] %vm16_vm0, %v579_v51  ;;  %628 = vst.msk [vmem:[#allocation2 + $0xe0] sm:$0xff] %vm16_vm0, %v595_v52  ;;  %v580_v59 = vadd.f32 %v1035_v53, %v63_v47  ;;  %v596_v60 = vadd.f32 %v1083_v54, %v79_v49 }
 0x12c   :  { %v693_v58 = vmax.f32 %v661_v56, 0.0  ;;  %v646_v61 = vld [vmem:[#allocation2 + $0x58] sm:$0xff] }
 0x12d   :  { %v662_v62 = vld [vmem:[#allocation2 + $0xd8] sm:$0xff]  ;;  %v956_v63 = vpack.c.bf16 %v677_v57, %v677_v57  ;;  %v678_v1 = vmax.f32 %v646_v61, 0.0  ;;  %613 = vst.msk [vmem:[#allocation2 + $0x68] sm:$0xff] %vm16_vm0, %v580_v59  ;;  %629 = vst.msk [vmem:[#allocation2 + $0xe8] sm:$0xff] %vm16_vm0, %v596_v60  ;;  %v1036_v3 = vpop.f32.mrb[28].mxu0  ;;  %v1084_v4 = vpop.f32.mrb[28].mxu1 }
 0x12e   :  { %v972_v0 = vpack.c.bf16 %v693_v58, %v693_v58  ;;  %v694_v2 = vmax.f32 %v662_v62, 0.0  ;;  %v1037_v6 = vpop.f32.mrb[29].mxu0  ;;  %v1085_v8 = vpop.f32.mrb[29].mxu1 }
 0x12f   :  { %838 = vst.msk [vmem:[%s1525_s2 + $0x28] sm:$0xf] %vm827_vm1, %v956_v63  ;;  %v957_v9 = vpack.c.bf16 %v678_v1, %v678_v1  ;;  %v1038_v11 = vadd.f32 %v1037_v6, %v1036_v3  ;;  %v1086_v12 = vadd.f32 %v1085_v8, %v1084_v4  ;;  %v1039_v13 = vpop.f32.mrb[30].mxu0  ;;  %v1087_v14 = vpop.f32.mrb[30].mxu1 }
 0x130   :  { %854 = vst.msk [vmem:[%s1525_s2 + $0x68] sm:$0xf] %vm827_vm1, %v972_v0  ;;  %v973_v10 = vpack.c.bf16 %v694_v2, %v694_v2  ;;  %v1040_v16 = vpop.f32.mrb[31].mxu0  ;;  %v1088_v18 = vpop.f32.mrb[31].mxu1 }
 0x131   :  { %839 = vst.msk [vmem:[%s1525_s2 + $0x2c] sm:$0xf] %vm827_vm1, %v957_v9  ;;  %v581_v19 = vadd.f32 %v1038_v11, %v64_v5  ;;  %v597_v20 = vadd.f32 %v1086_v12, %v80_v7  ;;  %v1041_v21 = vadd.f32 %v1040_v16, %v1039_v13  ;;  %v1089_v22 = vadd.f32 %v1088_v18, %v1087_v14 }
 0x132   :  { %855 = vst.msk [vmem:[%s1525_s2 + $0x6c] sm:$0xf] %vm827_vm1, %v973_v10  ;;  %v647_v23 = vld [vmem:[#allocation2 + $0x60] sm:$0xff] }
 0x133   :  { %v663_v24 = vld [vmem:[#allocation2 + $0xe0] sm:$0xff]  ;;  %v679_v25 = vmax.f32 %v647_v23, 0.0  ;;  %614 = vst.msk [vmem:[#allocation2 + $0x70] sm:$0xff] %vm16_vm0, %v581_v19  ;;  %630 = vst.msk [vmem:[#allocation2 + $0xf0] sm:$0xff] %vm16_vm0, %v597_v20  ;;  %v582_v27 = vadd.f32 %v1041_v21, %v65_v15  ;;  %v598_v28 = vadd.f32 %v1089_v22, %v81_v17 }
 0x134   :  { %v695_v26 = vmax.f32 %v663_v24, 0.0  ;;  %v648_v29 = vld [vmem:[#allocation2 + $0x68] sm:$0xff] }
 0x135   :  { %v664_v30 = vld [vmem:[#allocation2 + $0xe8] sm:$0xff]  ;;  %v958_v31 = vpack.c.bf16 %v679_v25, %v679_v25  ;;  %v680_v33 = vmax.f32 %v648_v29, 0.0  ;;  %615 = vst.msk [vmem:[#allocation2 + $0x78] sm:$0xff] %vm16_vm0, %v582_v27  ;;  %631 = vst.msk [vmem:[#allocation2 + $0xf8] sm:$0xff] %vm16_vm0, %v598_v28 }
 0x136   :  { %v974_v32 = vpack.c.bf16 %v695_v26, %v695_v26  ;;  %v696_v34 = vmax.f32 %v664_v30, 0.0 }
 0x137   :  { %840 = vst.msk [vmem:[%s1525_s2 + $0x30] sm:$0xf] %vm827_vm1, %v958_v31  ;;  %v959_v35 = vpack.c.bf16 %v680_v33, %v680_v33 }
 0x138   :  { %856 = vst.msk [vmem:[%s1525_s2 + $0x70] sm:$0xf] %vm827_vm1, %v974_v32  ;;  %v975_v36 = vpack.c.bf16 %v696_v34, %v696_v34 }
 0x139   :  { %841 = vst.msk [vmem:[%s1525_s2 + $0x34] sm:$0xf] %vm827_vm1, %v959_v35 }
 0x13a   :  { %857 = vst.msk [vmem:[%s1525_s2 + $0x74] sm:$0xf] %vm827_vm1, %v975_v36  ;;  %v649_v37 = vld [vmem:[#allocation2 + $0x70] sm:$0xff] }
 0x13b   :  { %v665_v38 = vld [vmem:[#allocation2 + $0xf0] sm:$0xff]  ;;  %v681_v39 = vmax.f32 %v649_v37, 0.0 }
 0x13c   :  { %v697_v40 = vmax.f32 %v665_v38, 0.0  ;;  %v650_v41 = vld [vmem:[#allocation2 + $0x78] sm:$0xff] }
 0x13d   :  { %v666_v42 = vld [vmem:[#allocation2 + $0xf8] sm:$0xff]  ;;  %v960_v43 = vpack.c.bf16 %v681_v39, %v681_v39  ;;  %v682_v45 = vmax.f32 %v650_v41, 0.0 }
 0x13e   :  { %v976_v44 = vpack.c.bf16 %v697_v40, %v697_v40  ;;  %v698_v46 = vmax.f32 %v666_v42, 0.0 }
 0x13f   :  { %842 = vst.msk [vmem:[%s1525_s2 + $0x38] sm:$0xf] %vm827_vm1, %v960_v43  ;;  %v961_v47 = vpack.c.bf16 %v682_v45, %v682_v45 }
 0x140   :  { %858 = vst.msk [vmem:[%s1525_s2 + $0x78] sm:$0xf] %vm827_vm1, %v976_v44  ;;  %v977_v48 = vpack.c.bf16 %v698_v46, %v698_v46 }
 0x141   :  { %843 = vst.msk [vmem:[%s1525_s2 + $0x3c] sm:$0xf] %vm827_vm1, %v961_v47 }
 0x142   :  { %859 = vst.msk [vmem:[%s1525_s2 + $0x7c] sm:$0xf] %vm827_vm1, %v977_v48 }

// kernel: dominant_forward.12
= control target key start
LH: loop header
LB: loop body
LE: loop exit
PB: predicated region body
PF: predicated region fallthrough
CT: control target
= control target key end

     0   :  { %vm16_vm0 = vcmask 261120   ;;  %v1171_v48 = vmov 0.0   ;;  %vm827_vm1 = vcmask 257024   ;;  %s1523_s1 = inlined_call_operand.vmem [shape: bf16[256,32], index: 1, kind: input, shape index: {}]   ;;  %s1524_s0 = inlined_call_operand.vmem [shape: bf16[256,256], index: 0, kind: input, shape index: {}]   ;;  %s1525_s2 = inlined_call_operand.vmem [shape: bf16[256,32], index: 2, kind: output, shape index: {}]  }
   0x1   :  { %v1107_v0 = vld [vmem:[%s1523_s1 + $0x40] sm:$0xff]   ;;  %v1109_v2 = vld [vmem:[%s1523_s1 + $0x48] sm:$0xff]   ;;  %v1111_v4 = vld [vmem:[%s1523_s1 + $0x50] sm:$0xff]   ;;  %17 = vst.msk [vmem:[#allocation2] sm:$0xff] %vm16_vm0, %v1171_v48 }
   0x2   :  { %v1108_v1 = vld [vmem:[%s1523_s1] sm:$0xff]   ;;  %978 = vmatprep.subr.bf16.mxu0 %v1107_v0  ;;  %1090 = vmatprep.subr.bf16.mxu1 %v1107_v0  ;;  %v1110_v3 = vld [vmem:[%s1523_s1 + $0x8] sm:$0xff]   ;;  %v1112_v5 = vld [vmem:[%s1523_s1 + $0x10] sm:$0xff]   ;;  %18 = vst.msk [vmem:[#allocation2 + $0x8] sm:$0xff] %vm16_vm0, %v1171_v48 }
   0x3   :  { %979 = vmatpush3.bf16.msra.mxu0 %v1108_v1  ;;  %1098 = vmatpush3.bf16.msra.mxu1 %v1108_v1  ;;  %v1113_v6 = vld [vmem:[%s1523_s1 + $0x58] sm:$0xff]   ;;  %v1115_v8 = vld [vmem:[%s1523_s1 + $0x60] sm:$0xff]   ;;  %v1117_v10 = vld [vmem:[%s1523_s1 + $0x68] sm:$0xff]   ;;  %19 = vst.msk [vmem:[#allocation2 + $0x10] sm:$0xff] %vm16_vm0, %v1171_v48 }
   0x4   :  { %980 = vmatprep.subr.bf16.mxu0 %v1109_v2  ;;  %1091 = vmatprep.subr.bf16.mxu1 %v1109_v2  ;;  %v1114_v7 = vld [vmem:[%s1523_s1 + $0x18] sm:$0xff]   ;;  %v1116_v9 = vld [vmem:[%s1523_s1 + $0x20] sm:$0xff]   ;;  %v1118_v13 = vld [vmem:[%s1523_s1 + $0x28] sm:$0xff]   ;;  %20 = vst.msk [vmem:[#allocation2 + $0x18] sm:$0xff] %vm16_vm0, %v1171_v48 }
   0x5   :  { %v1125_v11 = vld [vmem:[%s1524_s0 + $0x4] ss:$8 sps:$4 sm:$0xff]   ;;  %v1119_v14 = vld [vmem:[%s1523_s1 + $0x70] sm:$0xff]   ;;  %v1121_v16 = vld [vmem:[%s1523_s1 + $0x78] sm:$0xff]   ;;  %21 = vst.msk [vmem:[#allocation2 + $0x20] sm:$0xff] %vm16_vm0, %v1171_v48 }
   0x6   :  { %v1128_v12 = vld [vmem:[%s1524_s0 + $0x84] ss:$8 sps:$4 sm:$0xff]   ;;  %438 = vmatprep.mubr.bf16.mxu0 %v1125_v11  ;;  %v1120_v15 = vld [vmem:[%s1523_s1 + $0x30] sm:$0xff]   ;;  %v1122_v17 = vld [vmem:[%s1523_s1 + $0x38] sm:$0xff]   ;;  %22 = vst.msk [vmem:[#allocation2 + $0x28] sm:$0xff] %vm16_vm0, %v1171_v48 }
   0x7   :  { %981 = vmatpush3.bf16.msra.mxu0 %v1110_v3  ;;  %1099 = vmatpush3.bf16.msra.mxu1 %v1110_v3  ;;  %v1123_v18 = vld [vmem:[%s1524_s0] ss:$8 sps:$4 sm:$0xff]   ;;  %v1129_v20 = vld [vmem:[%s1524_s0 + $0x14] ss:$8 sps:$4 sm:$0xff]   ;;  %v1133_v22 = vld [vmem:[%s1524_s0 + $0x10] ss:$8 sps:$4 sm:$0xff]  }
   0x8   :  { %982 = vmatprep.subr.bf16.mxu0 %v1111_v4  ;;  %1092 = vmatprep.subr.bf16.mxu1 %v1111_v4  ;;  %v1126_v19 = vld [vmem:[%s1524_s0 + $0x80] ss:$8 sps:$4 sm:$0xff]   ;;  %v1131_v21 = vld [vmem:[%s1524_s0 + $0x94] ss:$8 sps:$4 sm:$0xff]   ;;  %v1134_v23 = vld [vmem:[%s1524_s0 + $0x90] ss:$8 sps:$4 sm:$0xff]  }
   0x9   :  { %502 = vmatprep.mubr.bf16.mxu1 %v1128_v12  ;;  %v1135_v24 = vld [vmem:[%s1524_s0 + $0x24] ss:$8 sps:$4 sm:$0xff]   ;;  %v1139_v26 = vld [vmem:[%s1524_s0 + $0x20] ss:$8 sps:$4 sm:$0xff]   ;;  %v1141_v28 = vld [vmem:[%s1524_s0 + $0x34] ss:$8 sps:$4 sm:$0xff]  }
   0xa   :  { %v1137_v25 = vld [vmem:[%s1524_s0 + $0xa4] ss:$8 sps:$4 sm:$0xff]   ;;  %v1140_v27 = vld [vmem:[%s1524_s0 + $0xa0] ss:$8 sps:$4 sm:$0xff]   ;;  %v1143_v29 = vld [vmem:[%s1524_s0 + $0xb4] ss:$8 sps:$4 sm:$0xff]  }
   0xb   :  { %983 = vmatpush3.bf16.msra.mxu0 %v1112_v5  ;;  %1100 = vmatpush3.bf16.msra.mxu1 %v1112_v5  ;;  %v1145_v30 = vld [vmem:[%s1524_s0 + $0x30] ss:$8 sps:$4 sm:$0xff]   ;;  %v1147_v32 = vld [vmem:[%s1524_s0 + $0x44] ss:$8 sps:$4 sm:$0xff]   ;;  %v1151_v34 = vld [vmem:[%s1524_s0 + $0x40] ss:$8 sps:$4 sm:$0xff]  }
   0xc   :  { %984 = vmatprep.subr.bf16.mxu0 %v1113_v6  ;;  %1093 = vmatprep.subr.bf16.mxu1 %v1113_v6  ;;  %v1146_v31 = vld [vmem:[%s1524_s0 + $0xb0] ss:$8 sps:$4 sm:$0xff]   ;;  %v1149_v33 = vld [vmem:[%s1524_s0 + $0xc4] ss:$8 sps:$4 sm:$0xff]   ;;  %v1152_v35 = vld [vmem:[%s1524_s0 + $0xc0] ss:$8 sps:$4 sm:$0xff]  }
   0xd   :  { %v1153_v36 = vld [vmem:[%s1524_s0 + $0x54] ss:$8 sps:$4 sm:$0xff]   ;;  %v1157_v38 = vld [vmem:[%s1524_s0 + $0x50] ss:$8 sps:$4 sm:$0xff]   ;;  %v1159_v40 = vld [vmem:[%s1524_s0 + $0x64] ss:$8 sps:$4 sm:$0xff]  }
   0xe   :  { %v1155_v37 = vld [vmem:[%s1524_s0 + $0xd4] ss:$8 sps:$4 sm:$0xff]   ;;  %v1158_v39 = vld [vmem:[%s1524_s0 + $0xd0] ss:$8 sps:$4 sm:$0xff]   ;;  %v1161_v41 = vld [vmem:[%s1524_s0 + $0xe4] ss:$8 sps:$4 sm:$0xff]  }
   0xf   :  { %985 = vmatpush3.bf16.msra.mxu0 %v1114_v7  ;;  %1101 = vmatpush3.bf16.msra.mxu1 %v1114_v7  ;;  %v1163_v42 = vld [vmem:[%s1524_s0 + $0x60] ss:$8 sps:$4 sm:$0xff]   ;;  %v1165_v44 = vld [vmem:[%s1524_s0 + $0x74] ss:$8 sps:$4 sm:$0xff]   ;;  %v1169_v46 = vld [vmem:[%s1524_s0 + $0x70] ss:$8 sps:$4 sm:$0xff]  }
  0x10   :  { %986 = vmatprep.subr.bf16.mxu0 %v1115_v8  ;;  %1094 = vmatprep.subr.bf16.mxu1 %v1115_v8  ;;  %v1164_v43 = vld [vmem:[%s1524_s0 + $0xe0] ss:$8 sps:$4 sm:$0xff]   ;;  %v1167_v45 = vld [vmem:[%s1524_s0 + $0xf4] ss:$8 sps:$4 sm:$0xff]   ;;  %v1170_v47 = vld [vmem:[%s1524_s0 + $0xf0] ss:$8 sps:$4 sm:$0xff]  }
  0x11   :  { %23 = vst.msk [vmem:[#allocation2 + $0x30] sm:$0xff] %vm16_vm0, %v1171_v48  ;;  %24 = vst.msk [vmem:[#allocation2 + $0x38] sm:$0xff] %vm16_vm0, %v1171_v48  ;;  %v50_v51 = vld [vmem:[#allocation2] sm:$0xff]  ;;  %v51_v59 = vld [vmem:[#allocation2 + $0x8] sm:$0xff] }
  0x12   :  { %25 = vst.msk [vmem:[#allocation2 + $0x40] sm:$0xff] %vm16_vm0, %v1171_v48  ;;  %26 = vst.msk [vmem:[#allocation2 + $0x48] sm:$0xff] %vm16_vm0, %v1171_v48  ;;  %v52_v7 = vld [vmem:[#allocation2 + $0x10] sm:$0xff] }
  0x13   :  { %987 = vmatpush3.bf16.msra.mxu0 %v1116_v9  ;;  %1102 = vmatpush3.bf16.msra.mxu1 %v1116_v9  ;;  %27 = vst.msk [vmem:[#allocation2 + $0x50] sm:$0xff] %vm16_vm0, %v1171_v48  ;;  %28 = vst.msk [vmem:[#allocation2 + $0x58] sm:$0xff] %vm16_vm0, %v1171_v48 }
  0x14   :  { %988 = vmatprep.subr.bf16.mxu0 %v1117_v10  ;;  %1095 = vmatprep.subr.bf16.mxu1 %v1117_v10  ;;  %29 = vst.msk [vmem:[#allocation2 + $0x60] sm:$0xff] %vm16_vm0, %v1171_v48  ;;  %30 = vst.msk [vmem:[#allocation2 + $0x68] sm:$0xff] %vm16_vm0, %v1171_v48 }
  0x15   :  { %31 = vst.msk [vmem:[#allocation2 + $0x70] sm:$0xff] %vm16_vm0, %v1171_v48  ;;  %32 = vst.msk [vmem:[#allocation2 + $0x78] sm:$0xff] %vm16_vm0, %v1171_v48 }
  0x16   :  { %33 = vst.msk [vmem:[#allocation2 + $0x80] sm:$0xff] %vm16_vm0, %v1171_v48  ;;  %34 = vst.msk [vmem:[#allocation2 + $0x88] sm:$0xff] %vm16_vm0, %v1171_v48 }
  0x17   :  { %989 = vmatpush3.bf16.msra.mxu0 %v1118_v13  ;;  %1103 = vmatpush3.bf16.msra.mxu1 %v1118_v13  ;;  %35 = vst.msk [vmem:[#allocation2 + $0x90] sm:$0xff] %vm16_vm0, %v1171_v48  ;;  %36 = vst.msk [vmem:[#allocation2 + $0x98] sm:$0xff] %vm16_vm0, %v1171_v48 }
  0x18   :  { %990 = vmatprep.subr.bf16.mxu0 %v1119_v14  ;;  %1096 = vmatprep.subr.bf16.mxu1 %v1119_v14  ;;  %37 = vst.msk [vmem:[#allocation2 + $0xa0] sm:$0xff] %vm16_vm0, %v1171_v48  ;;  %38 = vst.msk [vmem:[#allocation2 + $0xa8] sm:$0xff] %vm16_vm0, %v1171_v48 }
  0x19   :  { %39 = vst.msk [vmem:[#allocation2 + $0xb0] sm:$0xff] %vm16_vm0, %v1171_v48  ;;  %40 = vst.msk [vmem:[#allocation2 + $0xb8] sm:$0xff] %vm16_vm0, %v1171_v48 }
  0x1a   :  { %41 = vst.msk [vmem:[#allocation2 + $0xc0] sm:$0xff] %vm16_vm0, %v1171_v48  ;;  %42 = vst.msk [vmem:[#allocation2 + $0xc8] sm:$0xff] %vm16_vm0, %v1171_v48 }
  0x1b   :  { %991 = vmatpush3.bf16.msra.mxu0 %v1120_v15  ;;  %1104 = vmatpush3.bf16.msra.mxu1 %v1120_v15  ;;  %43 = vst.msk [vmem:[#allocation2 + $0xd0] sm:$0xff] %vm16_vm0, %v1171_v48  ;;  %44 = vst.msk [vmem:[#allocation2 + $0xd8] sm:$0xff] %vm16_vm0, %v1171_v48  ;;  %v53_v15 = vld [vmem:[#allocation2 + $0x18] sm:$0xff] }
  0x1c   :  { %992 = vmatprep.subr.bf16.mxu0 %v1121_v16  ;;  %1097 = vmatprep.subr.bf16.mxu1 %v1121_v16  ;;  %45 = vst.msk [vmem:[#allocation2 + $0xe0] sm:$0xff] %vm16_vm0, %v1171_v48  ;;  %46 = vst.msk [vmem:[#allocation2 + $0xe8] sm:$0xff] %vm16_vm0, %v1171_v48 }
  0x1d   :  { %47 = vst.msk [vmem:[#allocation2 + $0xf0] sm:$0xff] %vm16_vm0, %v1171_v48  ;;  %48 = vst.msk [vmem:[#allocation2 + $0xf8] sm:$0xff] %vm16_vm0, %v1171_v48  ;;  %v66_v53 = vld [vmem:[#allocation2 + $0x80] sm:$0xff]  ;;  %v67_v61 = vld [vmem:[#allocation2 + $0x88] sm:$0xff] }
  0x1e   :  { %v68_v9 = vld [vmem:[#allocation2 + $0x90] sm:$0xff] }
  0x1f   :  { %993 = vmatpush3.bf16.msra.mxu0 %v1122_v17  ;;  %1105 = vmatpush3.bf16.msra.mxu1 %v1122_v17  ;;  %v69_v17 = vld [vmem:[#allocation2 + $0x98] sm:$0xff] }
  0x22   :  { %439 = vmatmul.mubr.bf16.vlgmr.msra.gmra.mrb[0].mxu0 %v1123_v18  ;;  %503 = vmatmul.mubr.bf16.vlgmr.msra.gmra.mrb[0].mxu1 %v1126_v19 }
  0x23   :  { %446 = vmatprep.mubr.bf16.mxu0 %v1129_v20  ;;  %510 = vmatprep.mubr.bf16.mxu1 %v1131_v21 }
  0x2a   :  { %447 = vmatmul.mubr.bf16.gmra.mrb[4].mxu0 %v1133_v22  ;;  %511 = vmatmul.mubr.bf16.gmra.mrb[4].mxu1 %v1134_v23 }
  0x2b   :  { %454 = vmatprep.mubr.bf16.mxu0 %v1135_v24  ;;  %518 = vmatprep.mubr.bf16.mxu1 %v1137_v25 }
  0x32   :  { %455 = vmatmul.mubr.bf16.gmra.mrb[8].mxu0 %v1139_v26  ;;  %519 = vmatmul.mubr.bf16.gmra.mrb[8].mxu1 %v1140_v27 }
  0x33   :  { %462 = vmatprep.mubr.bf16.mxu0 %v1141_v28  ;;  %526 = vmatprep.mubr.bf16.mxu1 %v1143_v29 }
  0x3a   :  { %463 = vmatmul.mubr.bf16.gmra.mrb[12].mxu0 %v1145_v30  ;;  %527 = vmatmul.mubr.bf16.gmra.mrb[12].mxu1 %v1146_v31 }
  0x3b   :  { %470 = vmatprep.mubr.bf16.mxu0 %v1147_v32  ;;  %534 = vmatprep.mubr.bf16.mxu1 %v1149_v33 }
  0x42   :  { %471 = vmatmul.mubr.bf16.gmra.mrb[16].mxu0 %v1151_v34  ;;  %535 = vmatmul.mubr.bf16.gmra.mrb[16].mxu1 %v1152_v35 }
  0x43   :  { %478 = vmatprep.mubr.bf16.mxu0 %v1153_v36  ;;  %542 = vmatprep.mubr.bf16.mxu1 %v1155_v37  ;;  %v54_v37 = vld [vmem:[#allocation2 + $0x20] sm:$0xff] }
  0x4a   :  { %479 = vmatmul.mubr.bf16.gmra.mrb[20].mxu0 %v1157_v38  ;;  %543 = vmatmul.mubr.bf16.gmra.mrb[20].mxu1 %v1158_v39  ;;  %v70_v39 = vld [vmem:[#allocation2 + $0xa0] sm:$0xff] }
  0x4b   :  { %486 = vmatprep.mubr.bf16.mxu0 %v1159_v40  ;;  %550 = vmatprep.mubr.bf16.mxu1 %v1161_v41 }
  0x52   :  { %487 = vmatmul.mubr.bf16.gmra.mrb[24].mxu0 %v1163_v42  ;;  %551 = vmatmul.mubr.bf16.gmra.mrb[24].mxu1 %v1164_v43 }
  0x53   :  { %494 = vmatprep.mubr.bf16.mxu0 %v1165_v44  ;;  %558 = vmatprep.mubr.bf16.mxu1 %v1167_v45 }
  0x5a   :  { %495 = vmatmul.mubr.bf16.gmra.mrb[28].mxu0 %v1169_v46  ;;  %559 = vmatmul.mubr.bf16.gmra.mrb[28].mxu1 %v1170_v47  ;;  %v55_v47 = vld [vmem:[#allocation2 + $0x28] sm:$0xff] }
  0xf5   :  { %v994_v49 = vpop.f32.mrb[0].mxu0  ;;  %v1042_v50 = vpop.f32.mrb[0].mxu1 }
  0xf6   :  { %v995_v52 = vpop.f32.mrb[1].mxu0  ;;  %v1043_v54 = vpop.f32.mrb[1].mxu1 }
  0xf7   :  { %v996_v55 = vadd.f32 %v995_v52, %v994_v49  ;;  %v1044_v56 = vadd.f32 %v1043_v54, %v1042_v50  ;;  %v997_v57 = vpop.f32.mrb[2].mxu0  ;;  %v1045_v58 = vpop.f32.mrb[2].mxu1  ;;  %v71_v49 = vld [vmem:[#allocation2 + $0xa8] sm:$0xff] }
  0xf8   :  { %v998_v60 = vpop.f32.mrb[3].mxu0  ;;  %v1046_v62 = vpop.f32.mrb[3].mxu1 }
  0xf9   :  { %v567_v63 = vadd.f32 %v996_v55, %v50_v51  ;;  %v583_v0 = vadd.f32 %v1044_v56, %v66_v53  ;;  %v999_v1 = vadd.f32 %v998_v60, %v997_v57  ;;  %v1047_v2 = vadd.f32 %v1046_v62, %v1045_v58 }
  0xfb   :  { %600 = vst.msk [vmem:[#allocation2] sm:$0xff] %vm16_vm0, %v567_v63  ;;  %616 = vst.msk [vmem:[#allocation2 + $0x80] sm:$0xff] %vm16_vm0, %v583_v0  ;;  %v568_v3 = vadd.f32 %v999_v1, %v51_v59  ;;  %v584_v4 = vadd.f32 %v1047_v2, %v67_v61 }
  0xfd   :  { %601 = vst.msk [vmem:[#allocation2 + $0x8] sm:$0xff] %vm16_vm0, %v568_v3  ;;  %617 = vst.msk [vmem:[#allocation2 + $0x88] sm:$0xff] %vm16_vm0, %v584_v4  ;;  %v1000_v5 = vpop.f32.mrb[4].mxu0  ;;  %v1048_v6 = vpop.f32.mrb[4].mxu1 }
  0xfe   :  { %v1001_v8 = vpop.f32.mrb[5].mxu0  ;;  %v1049_v10 = vpop.f32.mrb[5].mxu1 }
  0xff   :  { %v1002_v11 = vadd.f32 %v1001_v8, %v1000_v5  ;;  %v1050_v12 = vadd.f32 %v1049_v10, %v1048_v6  ;;  %v1003_v13 = vpop.f32.mrb[6].mxu0  ;;  %v1051_v14 = vpop.f32.mrb[6].mxu1  ;;  %v56_v5 = vld [vmem:[#allocation2 + $0x30] sm:$0xff] }
 0x100   :  { %v1004_v16 = vpop.f32.mrb[7].mxu0  ;;  %v1052_v18 = vpop.f32.mrb[7].mxu1 }
 0x101   :  { %v569_v19 = vadd.f32 %v1002_v11, %v52_v7  ;;  %v585_v20 = vadd.f32 %v1050_v12, %v68_v9  ;;  %v1005_v21 = vadd.f32 %v1004_v16, %v1003_v13  ;;  %v1053_v22 = vadd.f32 %v1052_v18, %v1051_v14  ;;  %v72_v7 = vld [vmem:[#allocation2 + $0xb0] sm:$0xff] }
 0x102   :  { %v635_v23 = vld [vmem:[#allocation2] sm:$0xff] }
 0x103   :  { %v651_v24 = vld [vmem:[#allocation2 + $0x80] sm:$0xff]  ;;  %v667_v25 = vmax.f32 %v635_v23, 0.0  ;;  %602 = vst.msk [vmem:[#allocation2 + $0x10] sm:$0xff] %vm16_vm0, %v569_v19  ;;  %618 = vst.msk [vmem:[#allocation2 + $0x90] sm:$0xff] %vm16_vm0, %v585_v20  ;;  %v570_v27 = vadd.f32 %v1005_v21, %v53_v15  ;;  %v586_v28 = vadd.f32 %v1053_v22, %v69_v17  ;;  %v57_v15 = vld [vmem:[#allocation2 + $0x38] sm:$0xff] }
 0x104   :  { %v683_v26 = vmax.f32 %v651_v24, 0.0  ;;  %v636_v29 = vld [vmem:[#allocation2 + $0x8] sm:$0xff]  ;;  %v73_v17 = vld [vmem:[#allocation2 + $0xb8] sm:$0xff] }
 0x105   :  { %v652_v30 = vld [vmem:[#allocation2 + $0x88] sm:$0xff]  ;;  %v946_v31 = vpack.c.bf16 %v667_v25, %v667_v25  ;;  %v668_v33 = vmax.f32 %v636_v29, 0.0  ;;  %603 = vst.msk [vmem:[#allocation2 + $0x18] sm:$0xff] %vm16_vm0, %v570_v27  ;;  %619 = vst.msk [vmem:[#allocation2 + $0x98] sm:$0xff] %vm16_vm0, %v586_v28  ;;  %v1006_v35 = vpop.f32.mrb[8].mxu0  ;;  %v1054_v36 = vpop.f32.mrb[8].mxu1 }
 0x106   :  { %v962_v32 = vpack.c.bf16 %v683_v26, %v683_v26  ;;  %v684_v34 = vmax.f32 %v652_v30, 0.0  ;;  %v1007_v38 = vpop.f32.mrb[9].mxu0  ;;  %v1055_v40 = vpop.f32.mrb[9].mxu1 }
 0x107   :  { %828 = vst.msk [vmem:[%s1525_s2] sm:$0xf] %vm827_vm1, %v946_v31  ;;  %v947_v41 = vpack.c.bf16 %v668_v33, %v668_v33  ;;  %v1008_v43 = vadd.f32 %v1007_v38, %v1006_v35  ;;  %v1056_v44 = vadd.f32 %v1055_v40, %v1054_v36  ;;  %v1009_v45 = vpop.f32.mrb[10].mxu0  ;;  %v1057_v46 = vpop.f32.mrb[10].mxu1 }
 0x108   :  { %844 = vst.msk [vmem:[%s1525_s2 + $0x40] sm:$0xf] %vm827_vm1, %v962_v32  ;;  %v963_v42 = vpack.c.bf16 %v684_v34, %v684_v34  ;;  %v1010_v48 = vpop.f32.mrb[11].mxu0  ;;  %v1058_v50 = vpop.f32.mrb[11].mxu1 }
 0x109   :  { %829 = vst.msk [vmem:[%s1525_s2 + $0x4] sm:$0xf] %vm827_vm1, %v947_v41  ;;  %v571_v51 = vadd.f32 %v1008_v43, %v54_v37  ;;  %v587_v52 = vadd.f32 %v1056_v44, %v70_v39  ;;  %v1011_v53 = vadd.f32 %v1010_v48, %v1009_v45  ;;  %v1059_v54 = vadd.f32 %v1058_v50, %v1057_v46  ;;  %v58_v37 = vld [vmem:[#allocation2 + $0x40] sm:$0xff] }
 0x10a   :  { %845 = vst.msk [vmem:[%s1525_s2 + $0x44] sm:$0xf] %vm827_vm1, %v963_v42  ;;  %v637_v55 = vld [vmem:[#allocation2 + $0x10] sm:$0xff]  ;;  %v74_v39 = vld [vmem:[#allocation2 + $0xc0] sm:$0xff] }
 0x10b   :  { %v653_v56 = vld [vmem:[#allocation2 + $0x90] sm:$0xff]  ;;  %v669_v57 = vmax.f32 %v637_v55, 0.0  ;;  %604 = vst.msk [vmem:[#allocation2 + $0x20] sm:$0xff] %vm16_vm0, %v571_v51  ;;  %620 = vst.msk [vmem:[#allocation2 + $0xa0] sm:$0xff] %vm16_vm0, %v587_v52  ;;  %v572_v59 = vadd.f32 %v1011_v53, %v55_v47  ;;  %v588_v60 = vadd.f32 %v1059_v54, %v71_v49  ;;  %v59_v47 = vld [vmem:[#allocation2 + $0x48] sm:$0xff] }
 0x10c   :  { %v685_v58 = vmax.f32 %v653_v56, 0.0  ;;  %v638_v61 = vld [vmem:[#allocation2 + $0x18] sm:$0xff]  ;;  %v75_v49 = vld [vmem:[#allocation2 + $0xc8] sm:$0xff] }
 0x10d   :  { %v654_v62 = vld [vmem:[#allocation2 + $0x98] sm:$0xff]  ;;  %v948_v63 = vpack.c.bf16 %v669_v57, %v669_v57  ;;  %v670_v1 = vmax.f32 %v638_v61, 0.0  ;;  %605 = vst.msk [vmem:[#allocation2 + $0x28] sm:$0xff] %vm16_vm0, %v572_v59  ;;  %621 = vst.msk [vmem:[#allocation2 + $0xa8] sm:$0xff] %vm16_vm0, %v588_v60  ;;  %v1012_v3 = vpop.f32.mrb[12].mxu0  ;;  %v1060_v4 = vpop.f32.mrb[12].mxu1 }
 0x10e   :  { %v964_v0 = vpack.c.bf16 %v685_v58, %v685_v58  ;;  %v686_v2 = vmax.f32 %v654_v62, 0.0  ;;  %v1013_v6 = vpop.f32.mrb[13].mxu0  ;;  %v1061_v8 = vpop.f32.mrb[13].mxu1 }
 0x10f   :  { %830 = vst.msk [vmem:[%s1525_s2 + $0x8] sm:$0xf] %vm827_vm1, %v948_v63  ;;  %v949_v9 = vpack.c.bf16 %v670_v1, %v670_v1  ;;  %v1014_v11 = vadd.f32 %v1013_v6, %v1012_v3  ;;  %v1062_v12 = vadd.f32 %v1061_v8, %v1060_v4  ;;  %v1015_v13 = vpop.f32.mrb[14].mxu0  ;;  %v1063_v14 = vpop.f32.mrb[14].mxu1 }
 0x110   :  { %846 = vst.msk [vmem:[%s1525_s2 + $0x48] sm:$0xf] %vm827_vm1, %v964_v0  ;;  %v965_v10 = vpack.c.bf16 %v686_v2, %v686_v2  ;;  %v1016_v16 = vpop.f32.mrb[15].mxu0  ;;  %v1064_v18 = vpop.f32.mrb[15].mxu1 }
 0x111   :  { %831 = vst.msk [vmem:[%s1525_s2 + $0xc] sm:$0xf] %vm827_vm1, %v949_v9  ;;  %v573_v19 = vadd.f32 %v1014_v11, %v56_v5  ;;  %v589_v20 = vadd.f32 %v1062_v12, %v72_v7  ;;  %v1017_v21 = vadd.f32 %v1016_v16, %v1015_v13  ;;  %v1065_v22 = vadd.f32 %v1064_v18, %v1063_v14  ;;  %v60_v5 = vld [vmem:[#allocation2 + $0x50] sm:$0xff] }
 0x112   :  { %847 = vst.msk [vmem:[%s1525_s2 + $0x4c] sm:$0xf] %vm827_vm1, %v965_v10  ;;  %v639_v23 = vld [vmem:[#allocation2 + $0x20] sm:$0xff]  ;;  %v76_v7 = vld [vmem:[#allocation2 + $0xd0] sm:$0xff] }
 0x113   :  { %v655_v24 = vld [vmem:[#allocation2 + $0xa0] sm:$0xff]  ;;  %v671_v25 = vmax.f32 %v639_v23, 0.0  ;;  %606 = vst.msk [vmem:[#allocation2 + $0x30] sm:$0xff] %vm16_vm0, %v573_v19  ;;  %622 = vst.msk [vmem:[#allocation2 + $0xb0] sm:$0xff] %vm16_vm0, %v589_v20  ;;  %v574_v27 = vadd.f32 %v1017_v21, %v57_v15  ;;  %v590_v28 = vadd.f32 %v1065_v22, %v73_v17  ;;  %v61_v15 = vld [vmem:[#allocation2 + $0x58] sm:$0xff] }
 0x114   :  { %v687_v26 = vmax.f32 %v655_v24, 0.0  ;;  %v640_v29 = vld [vmem:[#allocation2 + $0x28] sm:$0xff]  ;;  %v77_v17 = vld [vmem:[#allocation2 + $0xd8] sm:$0xff] }
 0x115   :  { %v656_v30 = vld [vmem:[#allocation2 + $0xa8] sm:$0xff]  ;;  %v950_v31 = vpack.c.bf16 %v671_v25, %v671_v25  ;;  %v672_v33 = vmax.f32 %v640_v29, 0.0  ;;  %607 = vst.msk [vmem:[#allocation2 + $0x38] sm:$0xff] %vm16_vm0, %v574_v27  ;;  %623 = vst.msk [vmem:[#allocation2 + $0xb8] sm:$0xff] %vm16_vm0, %v590_v28  ;;  %v1018_v35 = vpop.f32.mrb[16].mxu0  ;;  %v1066_v36 = vpop.f32.mrb[16].mxu1 }
 0x116   :  { %v966_v32 = vpack.c.bf16 %v687_v26, %v687_v26  ;;  %v688_v34 = vmax.f32 %v656_v30, 0.0  ;;  %v1019_v38 = vpop.f32.mrb[17].mxu0  ;;  %v1067_v40 = vpop.f32.mrb[17].mxu1 }
 0x117   :  { %832 = vst.msk [vmem:[%s1525_s2 + $0x10] sm:$0xf] %vm827_vm1, %v950_v31  ;;  %v951_v41 = vpack.c.bf16 %v672_v33, %v672_v33  ;;  %v1020_v43 = vadd.f32 %v1019_v38, %v1018_v35  ;;  %v1068_v44 = vadd.f32 %v1067_v40, %v1066_v36  ;;  %v1021_v45 = vpop.f32.mrb[18].mxu0  ;;  %v1069_v46 = vpop.f32.mrb[18].mxu1 }
 0x118   :  { %848 = vst.msk [vmem:[%s1525_s2 + $0x50] sm:$0xf] %vm827_vm1, %v966_v32  ;;  %v967_v42 = vpack.c.bf16 %v688_v34, %v688_v34  ;;  %v1022_v48 = vpop.f32.mrb[19].mxu0  ;;  %v1070_v50 = vpop.f32.mrb[19].mxu1 }
 0x119   :  { %833 = vst.msk [vmem:[%s1525_s2 + $0x14] sm:$0xf] %vm827_vm1, %v951_v41  ;;  %v575_v51 = vadd.f32 %v1020_v43, %v58_v37  ;;  %v591_v52 = vadd.f32 %v1068_v44, %v74_v39  ;;  %v1023_v53 = vadd.f32 %v1022_v48, %v1021_v45  ;;  %v1071_v54 = vadd.f32 %v1070_v50, %v1069_v46  ;;  %v62_v37 = vld [vmem:[#allocation2 + $0x60] sm:$0xff] }
 0x11a   :  { %849 = vst.msk [vmem:[%s1525_s2 + $0x54] sm:$0xf] %vm827_vm1, %v967_v42  ;;  %v641_v55 = vld [vmem:[#allocation2 + $0x30] sm:$0xff]  ;;  %v78_v39 = vld [vmem:[#allocation2 + $0xe0] sm:$0xff] }
 0x11b   :  { %v657_v56 = vld [vmem:[#allocation2 + $0xb0] sm:$0xff]  ;;  %v673_v57 = vmax.f32 %v641_v55, 0.0  ;;  %608 = vst.msk [vmem:[#allocation2 + $0x40] sm:$0xff] %vm16_vm0, %v575_v51  ;;  %624 = vst.msk [vmem:[#allocation2 + $0xc0] sm:$0xff] %vm16_vm0, %v591_v52  ;;  %v576_v59 = vadd.f32 %v1023_v53, %v59_v47  ;;  %v592_v60 = vadd.f32 %v1071_v54, %v75_v49  ;;  %v63_v47 = vld [vmem:[#allocation2 + $0x68] sm:$0xff] }
 0x11c   :  { %v689_v58 = vmax.f32 %v657_v56, 0.0  ;;  %v642_v61 = vld [vmem:[#allocation2 + $0x38] sm:$0xff]  ;;  %v79_v49 = vld [vmem:[#allocation2 + $0xe8] sm:$0xff] }
 0x11d   :  { %v658_v62 = vld [vmem:[#allocation2 + $0xb8] sm:$0xff]  ;;  %v952_v63 = vpack.c.bf16 %v673_v57, %v673_v57  ;;  %v674_v1 = vmax.f32 %v642_v61, 0.0  ;;  %609 = vst.msk [vmem:[#allocation2 + $0x48] sm:$0xff] %vm16_vm0, %v576_v59  ;;  %625 = vst.msk [vmem:[#allocation2 + $0xc8] sm:$0xff] %vm16_vm0, %v592_v60  ;;  %v1024_v3 = vpop.f32.mrb[20].mxu0  ;;  %v1072_v4 = vpop.f32.mrb[20].mxu1 }
 0x11e   :  { %v968_v0 = vpack.c.bf16 %v689_v58, %v689_v58  ;;  %v690_v2 = vmax.f32 %v658_v62, 0.0  ;;  %v1025_v6 = vpop.f32.mrb[21].mxu0  ;;  %v1073_v8 = vpop.f32.mrb[21].mxu1 }
 0x11f   :  { %834 = vst.msk [vmem:[%s1525_s2 + $0x18] sm:$0xf] %vm827_vm1, %v952_v63  ;;  %v953_v9 = vpack.c.bf16 %v674_v1, %v674_v1  ;;  %v1026_v11 = vadd.f32 %v1025_v6, %v1024_v3  ;;  %v1074_v12 = vadd.f32 %v1073_v8, %v1072_v4  ;;  %v1027_v13 = vpop.f32.mrb[22].mxu0  ;;  %v1075_v14 = vpop.f32.mrb[22].mxu1 }
 0x120   :  { %850 = vst.msk [vmem:[%s1525_s2 + $0x58] sm:$0xf] %vm827_vm1, %v968_v0  ;;  %v969_v10 = vpack.c.bf16 %v690_v2, %v690_v2  ;;  %v1028_v16 = vpop.f32.mrb[23].mxu0  ;;  %v1076_v18 = vpop.f32.mrb[23].mxu1 }
 0x121   :  { %835 = vst.msk [vmem:[%s1525_s2 + $0x1c] sm:$0xf] %vm827_vm1, %v953_v9  ;;  %v577_v19 = vadd.f32 %v1026_v11, %v60_v5  ;;  %v593_v20 = vadd.f32 %v1074_v12, %v76_v7  ;;  %v1029_v21 = vadd.f32 %v1028_v16, %v1027_v13  ;;  %v1077_v22 = vadd.f32 %v1076_v18, %v1075_v14  ;;  %v64_v5 = vld [vmem:[#allocation2 + $0x70] sm:$0xff] }
 0x122   :  { %851 = vst.msk [vmem:[%s1525_s2 + $0x5c] sm:$0xf] %vm827_vm1, %v969_v10  ;;  %v643_v23 = vld [vmem:[#allocation2 + $0x40] sm:$0xff]  ;;  %v80_v7 = vld [vmem:[#allocation2 + $0xf0] sm:$0xff] }
 0x123   :  { %v659_v24 = vld [vmem:[#allocation2 + $0xc0] sm:$0xff]  ;;  %v675_v25 = vmax.f32 %v643_v23, 0.0  ;;  %610 = vst.msk [vmem:[#allocation2 + $0x50] sm:$0xff] %vm16_vm0, %v577_v19  ;;  %626 = vst.msk [vmem:[#allocation2 + $0xd0] sm:$0xff] %vm16_vm0, %v593_v20  ;;  %v578_v27 = vadd.f32 %v1029_v21, %v61_v15  ;;  %v594_v28 = vadd.f32 %v1077_v22, %v77_v17  ;;  %v65_v15 = vld [vmem:[#allocation2 + $0x78] sm:$0xff] }
 0x124   :  { %v691_v26 = vmax.f32 %v659_v24, 0.0  ;;  %v644_v29 = vld [vmem:[#allocation2 + $0x48] sm:$0xff]  ;;  %v81_v17 = vld [vmem:[#allocation2 + $0xf8] sm:$0xff] }
 0x125   :  { %v660_v30 = vld [vmem:[#allocation2 + $0xc8] sm:$0xff]  ;;  %v954_v31 = vpack.c.bf16 %v675_v25, %v675_v25  ;;  %v676_v33 = vmax.f32 %v644_v29, 0.0  ;;  %611 = vst.msk [vmem:[#allocation2 + $0x58] sm:$0xff] %vm16_vm0, %v578_v27  ;;  %627 = vst.msk [vmem:[#allocation2 + $0xd8] sm:$0xff] %vm16_vm0, %v594_v28  ;;  %v1030_v35 = vpop.f32.mrb[24].mxu0  ;;  %v1078_v36 = vpop.f32.mrb[24].mxu1 }
 0x126   :  { %v970_v32 = vpack.c.bf16 %v691_v26, %v691_v26  ;;  %v692_v34 = vmax.f32 %v660_v30, 0.0  ;;  %v1031_v38 = vpop.f32.mrb[25].mxu0  ;;  %v1079_v40 = vpop.f32.mrb[25].mxu1 }
 0x127   :  { %836 = vst.msk [vmem:[%s1525_s2 + $0x20] sm:$0xf] %vm827_vm1, %v954_v31  ;;  %v955_v41 = vpack.c.bf16 %v676_v33, %v676_v33  ;;  %v1032_v43 = vadd.f32 %v1031_v38, %v1030_v35  ;;  %v1080_v44 = vadd.f32 %v1079_v40, %v1078_v36  ;;  %v1033_v45 = vpop.f32.mrb[26].mxu0  ;;  %v1081_v46 = vpop.f32.mrb[26].mxu1 }
 0x128   :  { %852 = vst.msk [vmem:[%s1525_s2 + $0x60] sm:$0xf] %vm827_vm1, %v970_v32  ;;  %v971_v42 = vpack.c.bf16 %v692_v34, %v692_v34  ;;  %v1034_v48 = vpop.f32.mrb[27].mxu0  ;;  %v1082_v50 = vpop.f32.mrb[27].mxu1 }
 0x129   :  { %837 = vst.msk [vmem:[%s1525_s2 + $0x24] sm:$0xf] %vm827_vm1, %v955_v41  ;;  %v579_v51 = vadd.f32 %v1032_v43, %v62_v37  ;;  %v595_v52 = vadd.f32 %v1080_v44, %v78_v39  ;;  %v1035_v53 = vadd.f32 %v1034_v48, %v1033_v45  ;;  %v1083_v54 = vadd.f32 %v1082_v50, %v1081_v46 }
 0x12a   :  { %853 = vst.msk [vmem:[%s1525_s2 + $0x64] sm:$0xf] %vm827_vm1, %v971_v42  ;;  %v645_v55 = vld [vmem:[#allocation2 + $0x50] sm:$0xff] }
 0x12b   :  { %v661_v56 = vld [vmem:[#allocation2 + $0xd0] sm:$0xff]  ;;  %v677_v57 = vmax.f32 %v645_v55, 0.0  ;;  %612 = vst.msk [vmem:[#allocation2 + $0x60] sm:$0xff] %vm16_vm0, %v579_v51  ;;  %628 = vst.msk [vmem:[#allocation2 + $0xe0] sm:$0xff] %vm16_vm0, %v595_v52  ;;  %v580_v59 = vadd.f32 %v1035_v53, %v63_v47  ;;  %v596_v60 = vadd.f32 %v1083_v54, %v79_v49 }
 0x12c   :  { %v693_v58 = vmax.f32 %v661_v56, 0.0  ;;  %v646_v61 = vld [vmem:[#allocation2 + $0x58] sm:$0xff] }
 0x12d   :  { %v662_v62 = vld [vmem:[#allocation2 + $0xd8] sm:$0xff]  ;;  %v956_v63 = vpack.c.bf16 %v677_v57, %v677_v57  ;;  %v678_v1 = vmax.f32 %v646_v61, 0.0  ;;  %613 = vst.msk [vmem:[#allocation2 + $0x68] sm:$0xff] %vm16_vm0, %v580_v59  ;;  %629 = vst.msk [vmem:[#allocation2 + $0xe8] sm:$0xff] %vm16_vm0, %v596_v60  ;;  %v1036_v3 = vpop.f32.mrb[28].mxu0  ;;  %v1084_v4 = vpop.f32.mrb[28].mxu1 }
 0x12e   :  { %v972_v0 = vpack.c.bf16 %v693_v58, %v693_v58  ;;  %v694_v2 = vmax.f32 %v662_v62, 0.0  ;;  %v1037_v6 = vpop.f32.mrb[29].mxu0  ;;  %v1085_v8 = vpop.f32.mrb[29].mxu1 }
 0x12f   :  { %838 = vst.msk [vmem:[%s1525_s2 + $0x28] sm:$0xf] %vm827_vm1, %v956_v63  ;;  %v957_v9 = vpack.c.bf16 %v678_v1, %v678_v1  ;;  %v1038_v11 = vadd.f32 %v1037_v6, %v1036_v3  ;;  %v1086_v12 = vadd.f32 %v1085_v8, %v1084_v4  ;;  %v1039_v13 = vpop.f32.mrb[30].mxu0  ;;  %v1087_v14 = vpop.f32.mrb[30].mxu1 }
 0x130   :  { %854 = vst.msk [vmem:[%s1525_s2 + $0x68] sm:$0xf] %vm827_vm1, %v972_v0  ;;  %v973_v10 = vpack.c.bf16 %v694_v2, %v694_v2  ;;  %v1040_v16 = vpop.f32.mrb[31].mxu0  ;;  %v1088_v18 = vpop.f32.mrb[31].mxu1 }
 0x131   :  { %839 = vst.msk [vmem:[%s1525_s2 + $0x2c] sm:$0xf] %vm827_vm1, %v957_v9  ;;  %v581_v19 = vadd.f32 %v1038_v11, %v64_v5  ;;  %v597_v20 = vadd.f32 %v1086_v12, %v80_v7  ;;  %v1041_v21 = vadd.f32 %v1040_v16, %v1039_v13  ;;  %v1089_v22 = vadd.f32 %v1088_v18, %v1087_v14 }
 0x132   :  { %855 = vst.msk [vmem:[%s1525_s2 + $0x6c] sm:$0xf] %vm827_vm1, %v973_v10  ;;  %v647_v23 = vld [vmem:[#allocation2 + $0x60] sm:$0xff] }
 0x133   :  { %v663_v24 = vld [vmem:[#allocation2 + $0xe0] sm:$0xff]  ;;  %v679_v25 = vmax.f32 %v647_v23, 0.0  ;;  %614 = vst.msk [vmem:[#allocation2 + $0x70] sm:$0xff] %vm16_vm0, %v581_v19  ;;  %630 = vst.msk [vmem:[#allocation2 + $0xf0] sm:$0xff] %vm16_vm0, %v597_v20  ;;  %v582_v27 = vadd.f32 %v1041_v21, %v65_v15  ;;  %v598_v28 = vadd.f32 %v1089_v22, %v81_v17 }
 0x134   :  { %v695_v26 = vmax.f32 %v663_v24, 0.0  ;;  %v648_v29 = vld [vmem:[#allocation2 + $0x68] sm:$0xff] }
 0x135   :  { %v664_v30 = vld [vmem:[#allocation2 + $0xe8] sm:$0xff]  ;;  %v958_v31 = vpack.c.bf16 %v679_v25, %v679_v25  ;;  %v680_v33 = vmax.f32 %v648_v29, 0.0  ;;  %615 = vst.msk [vmem:[#allocation2 + $0x78] sm:$0xff] %vm16_vm0, %v582_v27  ;;  %631 = vst.msk [vmem:[#allocation2 + $0xf8] sm:$0xff] %vm16_vm0, %v598_v28 }
 0x136   :  { %v974_v32 = vpack.c.bf16 %v695_v26, %v695_v26  ;;  %v696_v34 = vmax.f32 %v664_v30, 0.0 }
 0x137   :  { %840 = vst.msk [vmem:[%s1525_s2 + $0x30] sm:$0xf] %vm827_vm1, %v958_v31  ;;  %v959_v35 = vpack.c.bf16 %v680_v33, %v680_v33 }
 0x138   :  { %856 = vst.msk [vmem:[%s1525_s2 + $0x70] sm:$0xf] %vm827_vm1, %v974_v32  ;;  %v975_v36 = vpack.c.bf16 %v696_v34, %v696_v34 }
 0x139   :  { %841 = vst.msk [vmem:[%s1525_s2 + $0x34] sm:$0xf] %vm827_vm1, %v959_v35 }
 0x13a   :  { %857 = vst.msk [vmem:[%s1525_s2 + $0x74] sm:$0xf] %vm827_vm1, %v975_v36  ;;  %v649_v37 = vld [vmem:[#allocation2 + $0x70] sm:$0xff] }
 0x13b   :  { %v665_v38 = vld [vmem:[#allocation2 + $0xf0] sm:$0xff]  ;;  %v681_v39 = vmax.f32 %v649_v37, 0.0 }
 0x13c   :  { %v697_v40 = vmax.f32 %v665_v38, 0.0  ;;  %v650_v41 = vld [vmem:[#allocation2 + $0x78] sm:$0xff] }
 0x13d   :  { %v666_v42 = vld [vmem:[#allocation2 + $0xf8] sm:$0xff]  ;;  %v960_v43 = vpack.c.bf16 %v681_v39, %v681_v39  ;;  %v682_v45 = vmax.f32 %v650_v41, 0.0 }
 0x13e   :  { %v976_v44 = vpack.c.bf16 %v697_v40, %v697_v40  ;;  %v698_v46 = vmax.f32 %v666_v42, 0.0 }
 0x13f   :  { %842 = vst.msk [vmem:[%s1525_s2 + $0x38] sm:$0xf] %vm827_vm1, %v960_v43  ;;  %v961_v47 = vpack.c.bf16 %v682_v45, %v682_v45 }
 0x140   :  { %858 = vst.msk [vmem:[%s1525_s2 + $0x78] sm:$0xf] %vm827_vm1, %v976_v44  ;;  %v977_v48 = vpack.c.bf16 %v698_v46, %v698_v46 }
 0x141   :  { %843 = vst.msk [vmem:[%s1525_s2 + $0x3c] sm:$0xf] %vm827_vm1, %v961_v47 }
 0x142   :  { %859 = vst.msk [vmem:[%s1525_s2 + $0x7c] sm:$0xf] %vm827_vm1, %v977_v48 }

// kernel: dominant_forward.14
= control target key start
LH: loop header
LB: loop body
LE: loop exit
PB: predicated region body
PF: predicated region fallthrough
CT: control target
= control target key end

     0   :  { %vm16_vm0 = vcmask 130048   ;;  %v1171_v48 = vmov 0.0   ;;  %vm827_vm1 = vcmask 125952   ;;  %s1523_s1 = inlined_call_operand.vmem [shape: bf16[256,16], index: 1, kind: input, shape index: {}]   ;;  %s1524_s0 = inlined_call_operand.vmem [shape: bf16[256,256], index: 0, kind: input, shape index: {}]   ;;  %s1525_s2 = inlined_call_operand.vmem [shape: bf16[256,16], index: 2, kind: output, shape index: {}]  }
   0x1   :  { %v1107_v0 = vld [vmem:[%s1523_s1 + $0x40] sm:$0xff]   ;;  %v1109_v2 = vld [vmem:[%s1523_s1 + $0x48] sm:$0xff]   ;;  %v1111_v4 = vld [vmem:[%s1523_s1 + $0x50] sm:$0xff]   ;;  %17 = vst.msk [vmem:[#allocation2] sm:$0xff] %vm16_vm0, %v1171_v48 }
   0x2   :  { %v1108_v1 = vld [vmem:[%s1523_s1] sm:$0xff]   ;;  %978 = vmatprep.subr.bf16.mxu0 %v1107_v0  ;;  %1090 = vmatprep.subr.bf16.mxu1 %v1107_v0  ;;  %v1110_v3 = vld [vmem:[%s1523_s1 + $0x8] sm:$0xff]   ;;  %v1112_v5 = vld [vmem:[%s1523_s1 + $0x10] sm:$0xff]   ;;  %18 = vst.msk [vmem:[#allocation2 + $0x8] sm:$0xff] %vm16_vm0, %v1171_v48 }
   0x3   :  { %979 = vmatpush3.bf16.msra.mxu0 %v1108_v1  ;;  %1098 = vmatpush3.bf16.msra.mxu1 %v1108_v1  ;;  %v1113_v6 = vld [vmem:[%s1523_s1 + $0x58] sm:$0xff]   ;;  %v1115_v8 = vld [vmem:[%s1523_s1 + $0x60] sm:$0xff]   ;;  %v1117_v10 = vld [vmem:[%s1523_s1 + $0x68] sm:$0xff]   ;;  %19 = vst.msk [vmem:[#allocation2 + $0x10] sm:$0xff] %vm16_vm0, %v1171_v48 }
   0x4   :  { %980 = vmatprep.subr.bf16.mxu0 %v1109_v2  ;;  %1091 = vmatprep.subr.bf16.mxu1 %v1109_v2  ;;  %v1114_v7 = vld [vmem:[%s1523_s1 + $0x18] sm:$0xff]   ;;  %v1116_v9 = vld [vmem:[%s1523_s1 + $0x20] sm:$0xff]   ;;  %v1118_v13 = vld [vmem:[%s1523_s1 + $0x28] sm:$0xff]   ;;  %20 = vst.msk [vmem:[#allocation2 + $0x18] sm:$0xff] %vm16_vm0, %v1171_v48 }
   0x5   :  { %v1125_v11 = vld [vmem:[%s1524_s0 + $0x4] ss:$8 sps:$4 sm:$0xff]   ;;  %v1119_v14 = vld [vmem:[%s1523_s1 + $0x70] sm:$0xff]   ;;  %v1121_v16 = vld [vmem:[%s1523_s1 + $0x78] sm:$0xff]   ;;  %21 = vst.msk [vmem:[#allocation2 + $0x20] sm:$0xff] %vm16_vm0, %v1171_v48 }
   0x6   :  { %v1128_v12 = vld [vmem:[%s1524_s0 + $0x84] ss:$8 sps:$4 sm:$0xff]   ;;  %438 = vmatprep.mubr.bf16.mxu0 %v1125_v11  ;;  %v1120_v15 = vld [vmem:[%s1523_s1 + $0x30] sm:$0xff]   ;;  %v1122_v17 = vld [vmem:[%s1523_s1 + $0x38] sm:$0xff]   ;;  %22 = vst.msk [vmem:[#allocation2 + $0x28] sm:$0xff] %vm16_vm0, %v1171_v48 }
   0x7   :  { %981 = vmatpush3.bf16.msra.mxu0 %v1110_v3  ;;  %1099 = vmatpush3.bf16.msra.mxu1 %v1110_v3  ;;  %v1123_v18 = vld [vmem:[%s1524_s0] ss:$8 sps:$4 sm:$0xff]   ;;  %v1129_v20 = vld [vmem:[%s1524_s0 + $0x14] ss:$8 sps:$4 sm:$0xff]   ;;  %v1133_v22 = vld [vmem:[%s1524_s0 + $0x10] ss:$8 sps:$4 sm:$0xff]  }
   0x8   :  { %982 = vmatprep.subr.bf16.mxu0 %v1111_v4  ;;  %1092 = vmatprep.subr.bf16.mxu1 %v1111_v4  ;;  %v1126_v19 = vld [vmem:[%s1524_s0 + $0x80] ss:$8 sps:$4 sm:$0xff]   ;;  %v1131_v21 = vld [vmem:[%s1524_s0 + $0x94] ss:$8 sps:$4 sm:$0xff]   ;;  %v1134_v23 = vld [vmem:[%s1524_s0 + $0x90] ss:$8 sps:$4 sm:$0xff]  }
   0x9   :  { %502 = vmatprep.mubr.bf16.mxu1 %v1128_v12  ;;  %v1135_v24 = vld [vmem:[%s1524_s0 + $0x24] ss:$8 sps:$4 sm:$0xff]   ;;  %v1139_v26 = vld [vmem:[%s1524_s0 + $0x20] ss:$8 sps:$4 sm:$0xff]   ;;  %v1141_v28 = vld [vmem:[%s1524_s0 + $0x34] ss:$8 sps:$4 sm:$0xff]  }
   0xa   :  { %v1137_v25 = vld [vmem:[%s1524_s0 + $0xa4] ss:$8 sps:$4 sm:$0xff]   ;;  %v1140_v27 = vld [vmem:[%s1524_s0 + $0xa0] ss:$8 sps:$4 sm:$0xff]   ;;  %v1143_v29 = vld [vmem:[%s1524_s0 + $0xb4] ss:$8 sps:$4 sm:$0xff]  }
   0xb   :  { %983 = vmatpush3.bf16.msra.mxu0 %v1112_v5  ;;  %1100 = vmatpush3.bf16.msra.mxu1 %v1112_v5  ;;  %v1145_v30 = vld [vmem:[%s1524_s0 + $0x30] ss:$8 sps:$4 sm:$0xff]   ;;  %v1147_v32 = vld [vmem:[%s1524_s0 + $0x44] ss:$8 sps:$4 sm:$0xff]   ;;  %v1151_v34 = vld [vmem:[%s1524_s0 + $0x40] ss:$8 sps:$4 sm:$0xff]  }
   0xc   :  { %984 = vmatprep.subr.bf16.mxu0 %v1113_v6  ;;  %1093 = vmatprep.subr.bf16.mxu1 %v1113_v6  ;;  %v1146_v31 = vld [vmem:[%s1524_s0 + $0xb0] ss:$8 sps:$4 sm:$0xff]   ;;  %v1149_v33 = vld [vmem:[%s1524_s0 + $0xc4] ss:$8 sps:$4 sm:$0xff]   ;;  %v1152_v35 = vld [vmem:[%s1524_s0 + $0xc0] ss:$8 sps:$4 sm:$0xff]  }
   0xd   :  { %v1153_v36 = vld [vmem:[%s1524_s0 + $0x54] ss:$8 sps:$4 sm:$0xff]   ;;  %v1157_v38 = vld [vmem:[%s1524_s0 + $0x50] ss:$8 sps:$4 sm:$0xff]   ;;  %v1159_v40 = vld [vmem:[%s1524_s0 + $0x64] ss:$8 sps:$4 sm:$0xff]  }
   0xe   :  { %v1155_v37 = vld [vmem:[%s1524_s0 + $0xd4] ss:$8 sps:$4 sm:$0xff]   ;;  %v1158_v39 = vld [vmem:[%s1524_s0 + $0xd0] ss:$8 sps:$4 sm:$0xff]   ;;  %v1161_v41 = vld [vmem:[%s1524_s0 + $0xe4] ss:$8 sps:$4 sm:$0xff]  }
   0xf   :  { %985 = vmatpush3.bf16.msra.mxu0 %v1114_v7  ;;  %1101 = vmatpush3.bf16.msra.mxu1 %v1114_v7  ;;  %v1163_v42 = vld [vmem:[%s1524_s0 + $0x60] ss:$8 sps:$4 sm:$0xff]   ;;  %v1165_v44 = vld [vmem:[%s1524_s0 + $0x74] ss:$8 sps:$4 sm:$0xff]   ;;  %v1169_v46 = vld [vmem:[%s1524_s0 + $0x70] ss:$8 sps:$4 sm:$0xff]  }
  0x10   :  { %986 = vmatprep.subr.bf16.mxu0 %v1115_v8  ;;  %1094 = vmatprep.subr.bf16.mxu1 %v1115_v8  ;;  %v1164_v43 = vld [vmem:[%s1524_s0 + $0xe0] ss:$8 sps:$4 sm:$0xff]   ;;  %v1167_v45 = vld [vmem:[%s1524_s0 + $0xf4] ss:$8 sps:$4 sm:$0xff]   ;;  %v1170_v47 = vld [vmem:[%s1524_s0 + $0xf0] ss:$8 sps:$4 sm:$0xff]  }
  0x11   :  { %23 = vst.msk [vmem:[#allocation2 + $0x30] sm:$0xff] %vm16_vm0, %v1171_v48  ;;  %24 = vst.msk [vmem:[#allocation2 + $0x38] sm:$0xff] %vm16_vm0, %v1171_v48  ;;  %v50_v51 = vld [vmem:[#allocation2] sm:$0xff]  ;;  %v51_v59 = vld [vmem:[#allocation2 + $0x8] sm:$0xff] }
  0x12   :  { %25 = vst.msk [vmem:[#allocation2 + $0x40] sm:$0xff] %vm16_vm0, %v1171_v48  ;;  %26 = vst.msk [vmem:[#allocation2 + $0x48] sm:$0xff] %vm16_vm0, %v1171_v48  ;;  %v52_v7 = vld [vmem:[#allocation2 + $0x10] sm:$0xff] }
  0x13   :  { %987 = vmatpush3.bf16.msra.mxu0 %v1116_v9  ;;  %1102 = vmatpush3.bf16.msra.mxu1 %v1116_v9  ;;  %27 = vst.msk [vmem:[#allocation2 + $0x50] sm:$0xff] %vm16_vm0, %v1171_v48  ;;  %28 = vst.msk [vmem:[#allocation2 + $0x58] sm:$0xff] %vm16_vm0, %v1171_v48 }
  0x14   :  { %988 = vmatprep.subr.bf16.mxu0 %v1117_v10  ;;  %1095 = vmatprep.subr.bf16.mxu1 %v1117_v10  ;;  %29 = vst.msk [vmem:[#allocation2 + $0x60] sm:$0xff] %vm16_vm0, %v1171_v48  ;;  %30 = vst.msk [vmem:[#allocation2 + $0x68] sm:$0xff] %vm16_vm0, %v1171_v48 }
  0x15   :  { %31 = vst.msk [vmem:[#allocation2 + $0x70] sm:$0xff] %vm16_vm0, %v1171_v48  ;;  %32 = vst.msk [vmem:[#allocation2 + $0x78] sm:$0xff] %vm16_vm0, %v1171_v48 }
  0x16   :  { %33 = vst.msk [vmem:[#allocation2 + $0x80] sm:$0xff] %vm16_vm0, %v1171_v48  ;;  %34 = vst.msk [vmem:[#allocation2 + $0x88] sm:$0xff] %vm16_vm0, %v1171_v48 }
  0x17   :  { %989 = vmatpush3.bf16.msra.mxu0 %v1118_v13  ;;  %1103 = vmatpush3.bf16.msra.mxu1 %v1118_v13  ;;  %35 = vst.msk [vmem:[#allocation2 + $0x90] sm:$0xff] %vm16_vm0, %v1171_v48  ;;  %36 = vst.msk [vmem:[#allocation2 + $0x98] sm:$0xff] %vm16_vm0, %v1171_v48 }
  0x18   :  { %990 = vmatprep.subr.bf16.mxu0 %v1119_v14  ;;  %1096 = vmatprep.subr.bf16.mxu1 %v1119_v14  ;;  %37 = vst.msk [vmem:[#allocation2 + $0xa0] sm:$0xff] %vm16_vm0, %v1171_v48  ;;  %38 = vst.msk [vmem:[#allocation2 + $0xa8] sm:$0xff] %vm16_vm0, %v1171_v48 }
  0x19   :  { %39 = vst.msk [vmem:[#allocation2 + $0xb0] sm:$0xff] %vm16_vm0, %v1171_v48  ;;  %40 = vst.msk [vmem:[#allocation2 + $0xb8] sm:$0xff] %vm16_vm0, %v1171_v48 }
  0x1a   :  { %41 = vst.msk [vmem:[#allocation2 + $0xc0] sm:$0xff] %vm16_vm0, %v1171_v48  ;;  %42 = vst.msk [vmem:[#allocation2 + $0xc8] sm:$0xff] %vm16_vm0, %v1171_v48 }
  0x1b   :  { %991 = vmatpush3.bf16.msra.mxu0 %v1120_v15  ;;  %1104 = vmatpush3.bf16.msra.mxu1 %v1120_v15  ;;  %43 = vst.msk [vmem:[#allocation2 + $0xd0] sm:$0xff] %vm16_vm0, %v1171_v48  ;;  %44 = vst.msk [vmem:[#allocation2 + $0xd8] sm:$0xff] %vm16_vm0, %v1171_v48  ;;  %v53_v15 = vld [vmem:[#allocation2 + $0x18] sm:$0xff] }
  0x1c   :  { %992 = vmatprep.subr.bf16.mxu0 %v1121_v16  ;;  %1097 = vmatprep.subr.bf16.mxu1 %v1121_v16  ;;  %45 = vst.msk [vmem:[#allocation2 + $0xe0] sm:$0xff] %vm16_vm0, %v1171_v48  ;;  %46 = vst.msk [vmem:[#allocation2 + $0xe8] sm:$0xff] %vm16_vm0, %v1171_v48 }
  0x1d   :  { %47 = vst.msk [vmem:[#allocation2 + $0xf0] sm:$0xff] %vm16_vm0, %v1171_v48  ;;  %48 = vst.msk [vmem:[#allocation2 + $0xf8] sm:$0xff] %vm16_vm0, %v1171_v48  ;;  %v66_v53 = vld [vmem:[#allocation2 + $0x80] sm:$0xff]  ;;  %v67_v61 = vld [vmem:[#allocation2 + $0x88] sm:$0xff] }
  0x1e   :  { %v68_v9 = vld [vmem:[#allocation2 + $0x90] sm:$0xff] }
  0x1f   :  { %993 = vmatpush3.bf16.msra.mxu0 %v1122_v17  ;;  %1105 = vmatpush3.bf16.msra.mxu1 %v1122_v17  ;;  %v69_v17 = vld [vmem:[#allocation2 + $0x98] sm:$0xff] }
  0x22   :  { %439 = vmatmul.mubr.bf16.vlgmr.msra.gmra.mrb[0].mxu0 %v1123_v18  ;;  %503 = vmatmul.mubr.bf16.vlgmr.msra.gmra.mrb[0].mxu1 %v1126_v19 }
  0x23   :  { %446 = vmatprep.mubr.bf16.mxu0 %v1129_v20  ;;  %510 = vmatprep.mubr.bf16.mxu1 %v1131_v21 }
  0x2a   :  { %447 = vmatmul.mubr.bf16.gmra.mrb[4].mxu0 %v1133_v22  ;;  %511 = vmatmul.mubr.bf16.gmra.mrb[4].mxu1 %v1134_v23 }
  0x2b   :  { %454 = vmatprep.mubr.bf16.mxu0 %v1135_v24  ;;  %518 = vmatprep.mubr.bf16.mxu1 %v1137_v25 }
  0x32   :  { %455 = vmatmul.mubr.bf16.gmra.mrb[8].mxu0 %v1139_v26  ;;  %519 = vmatmul.mubr.bf16.gmra.mrb[8].mxu1 %v1140_v27 }
  0x33   :  { %462 = vmatprep.mubr.bf16.mxu0 %v1141_v28  ;;  %526 = vmatprep.mubr.bf16.mxu1 %v1143_v29 }
  0x3a   :  { %463 = vmatmul.mubr.bf16.gmra.mrb[12].mxu0 %v1145_v30  ;;  %527 = vmatmul.mubr.bf16.gmra.mrb[12].mxu1 %v1146_v31 }
  0x3b   :  { %470 = vmatprep.mubr.bf16.mxu0 %v1147_v32  ;;  %534 = vmatprep.mubr.bf16.mxu1 %v1149_v33 }
  0x42   :  { %471 = vmatmul.mubr.bf16.gmra.mrb[16].mxu0 %v1151_v34  ;;  %535 = vmatmul.mubr.bf16.gmra.mrb[16].mxu1 %v1152_v35 }
  0x43   :  { %478 = vmatprep.mubr.bf16.mxu0 %v1153_v36  ;;  %542 = vmatprep.mubr.bf16.mxu1 %v1155_v37  ;;  %v54_v37 = vld [vmem:[#allocation2 + $0x20] sm:$0xff] }
  0x4a   :  { %479 = vmatmul.mubr.bf16.gmra.mrb[20].mxu0 %v1157_v38  ;;  %543 = vmatmul.mubr.bf16.gmra.mrb[20].mxu1 %v1158_v39  ;;  %v70_v39 = vld [vmem:[#allocation2 + $0xa0] sm:$0xff] }
  0x4b   :  { %486 = vmatprep.mubr.bf16.mxu0 %v1159_v40  ;;  %550 = vmatprep.mubr.bf16.mxu1 %v1161_v41 }
  0x52   :  { %487 = vmatmul.mubr.bf16.gmra.mrb[24].mxu0 %v1163_v42  ;;  %551 = vmatmul.mubr.bf16.gmra.mrb[24].mxu1 %v1164_v43 }
  0x53   :  { %494 = vmatprep.mubr.bf16.mxu0 %v1165_v44  ;;  %558 = vmatprep.mubr.bf16.mxu1 %v1167_v45 }
  0x5a   :  { %495 = vmatmul.mubr.bf16.gmra.mrb[28].mxu0 %v1169_v46  ;;  %559 = vmatmul.mubr.bf16.gmra.mrb[28].mxu1 %v1170_v47  ;;  %v55_v47 = vld [vmem:[#allocation2 + $0x28] sm:$0xff] }
  0xf5   :  { %v994_v49 = vpop.f32.mrb[0].mxu0  ;;  %v1042_v50 = vpop.f32.mrb[0].mxu1 }
  0xf6   :  { %v995_v52 = vpop.f32.mrb[1].mxu0  ;;  %v1043_v54 = vpop.f32.mrb[1].mxu1 }
  0xf7   :  { %v996_v55 = vadd.f32 %v995_v52, %v994_v49  ;;  %v1044_v56 = vadd.f32 %v1043_v54, %v1042_v50  ;;  %v997_v57 = vpop.f32.mrb[2].mxu0  ;;  %v1045_v58 = vpop.f32.mrb[2].mxu1  ;;  %v71_v49 = vld [vmem:[#allocation2 + $0xa8] sm:$0xff] }
  0xf8   :  { %v998_v60 = vpop.f32.mrb[3].mxu0  ;;  %v1046_v62 = vpop.f32.mrb[3].mxu1 }
  0xf9   :  { %v567_v63 = vadd.f32 %v996_v55, %v50_v51  ;;  %v583_v0 = vadd.f32 %v1044_v56, %v66_v53  ;;  %v999_v1 = vadd.f32 %v998_v60, %v997_v57  ;;  %v1047_v2 = vadd.f32 %v1046_v62, %v1045_v58 }
  0xfb   :  { %600 = vst.msk [vmem:[#allocation2] sm:$0xff] %vm16_vm0, %v567_v63  ;;  %616 = vst.msk [vmem:[#allocation2 + $0x80] sm:$0xff] %vm16_vm0, %v583_v0  ;;  %v568_v3 = vadd.f32 %v999_v1, %v51_v59  ;;  %v584_v4 = vadd.f32 %v1047_v2, %v67_v61 }
  0xfd   :  { %601 = vst.msk [vmem:[#allocation2 + $0x8] sm:$0xff] %vm16_vm0, %v568_v3  ;;  %617 = vst.msk [vmem:[#allocation2 + $0x88] sm:$0xff] %vm16_vm0, %v584_v4  ;;  %v1000_v5 = vpop.f32.mrb[4].mxu0  ;;  %v1048_v6 = vpop.f32.mrb[4].mxu1 }
  0xfe   :  { %v1001_v8 = vpop.f32.mrb[5].mxu0  ;;  %v1049_v10 = vpop.f32.mrb[5].mxu1 }
  0xff   :  { %v1002_v11 = vadd.f32 %v1001_v8, %v1000_v5  ;;  %v1050_v12 = vadd.f32 %v1049_v10, %v1048_v6  ;;  %v1003_v13 = vpop.f32.mrb[6].mxu0  ;;  %v1051_v14 = vpop.f32.mrb[6].mxu1  ;;  %v56_v5 = vld [vmem:[#allocation2 + $0x30] sm:$0xff] }
 0x100   :  { %v1004_v16 = vpop.f32.mrb[7].mxu0  ;;  %v1052_v18 = vpop.f32.mrb[7].mxu1 }
 0x101   :  { %v569_v19 = vadd.f32 %v1002_v11, %v52_v7  ;;  %v585_v20 = vadd.f32 %v1050_v12, %v68_v9  ;;  %v1005_v21 = vadd.f32 %v1004_v16, %v1003_v13  ;;  %v1053_v22 = vadd.f32 %v1052_v18, %v1051_v14  ;;  %v72_v7 = vld [vmem:[#allocation2 + $0xb0] sm:$0xff] }
 0x102   :  { %v635_v23 = vld [vmem:[#allocation2] sm:$0xff] }
 0x103   :  { %v651_v24 = vld [vmem:[#allocation2 + $0x80] sm:$0xff]  ;;  %v667_v25 = vmax.f32 %v635_v23, 0.0  ;;  %602 = vst.msk [vmem:[#allocation2 + $0x10] sm:$0xff] %vm16_vm0, %v569_v19  ;;  %618 = vst.msk [vmem:[#allocation2 + $0x90] sm:$0xff] %vm16_vm0, %v585_v20  ;;  %v570_v27 = vadd.f32 %v1005_v21, %v53_v15  ;;  %v586_v28 = vadd.f32 %v1053_v22, %v69_v17  ;;  %v57_v15 = vld [vmem:[#allocation2 + $0x38] sm:$0xff] }
 0x104   :  { %v683_v26 = vmax.f32 %v651_v24, 0.0  ;;  %v636_v29 = vld [vmem:[#allocation2 + $0x8] sm:$0xff]  ;;  %v73_v17 = vld [vmem:[#allocation2 + $0xb8] sm:$0xff] }
 0x105   :  { %v652_v30 = vld [vmem:[#allocation2 + $0x88] sm:$0xff]  ;;  %v946_v31 = vpack.c.bf16 %v667_v25, %v667_v25  ;;  %v668_v33 = vmax.f32 %v636_v29, 0.0  ;;  %603 = vst.msk [vmem:[#allocation2 + $0x18] sm:$0xff] %vm16_vm0, %v570_v27  ;;  %619 = vst.msk [vmem:[#allocation2 + $0x98] sm:$0xff] %vm16_vm0, %v586_v28  ;;  %v1006_v35 = vpop.f32.mrb[8].mxu0  ;;  %v1054_v36 = vpop.f32.mrb[8].mxu1 }
 0x106   :  { %v962_v32 = vpack.c.bf16 %v683_v26, %v683_v26  ;;  %v684_v34 = vmax.f32 %v652_v30, 0.0  ;;  %v1007_v38 = vpop.f32.mrb[9].mxu0  ;;  %v1055_v40 = vpop.f32.mrb[9].mxu1 }
 0x107   :  { %828 = vst.msk [vmem:[%s1525_s2] sm:$0xf] %vm827_vm1, %v946_v31  ;;  %v947_v41 = vpack.c.bf16 %v668_v33, %v668_v33  ;;  %v1008_v43 = vadd.f32 %v1007_v38, %v1006_v35  ;;  %v1056_v44 = vadd.f32 %v1055_v40, %v1054_v36  ;;  %v1009_v45 = vpop.f32.mrb[10].mxu0  ;;  %v1057_v46 = vpop.f32.mrb[10].mxu1 }
 0x108   :  { %844 = vst.msk [vmem:[%s1525_s2 + $0x40] sm:$0xf] %vm827_vm1, %v962_v32  ;;  %v963_v42 = vpack.c.bf16 %v684_v34, %v684_v34  ;;  %v1010_v48 = vpop.f32.mrb[11].mxu0  ;;  %v1058_v50 = vpop.f32.mrb[11].mxu1 }
 0x109   :  { %829 = vst.msk [vmem:[%s1525_s2 + $0x4] sm:$0xf] %vm827_vm1, %v947_v41  ;;  %v571_v51 = vadd.f32 %v1008_v43, %v54_v37  ;;  %v587_v52 = vadd.f32 %v1056_v44, %v70_v39  ;;  %v1011_v53 = vadd.f32 %v1010_v48, %v1009_v45  ;;  %v1059_v54 = vadd.f32 %v1058_v50, %v1057_v46  ;;  %v58_v37 = vld [vmem:[#allocation2 + $0x40] sm:$0xff] }
 0x10a   :  { %845 = vst.msk [vmem:[%s1525_s2 + $0x44] sm:$0xf] %vm827_vm1, %v963_v42  ;;  %v637_v55 = vld [vmem:[#allocation2 + $0x10] sm:$0xff]  ;;  %v74_v39 = vld [vmem:[#allocation2 + $0xc0] sm:$0xff] }
 0x10b   :  { %v653_v56 = vld [vmem:[#allocation2 + $0x90] sm:$0xff]  ;;  %v669_v57 = vmax.f32 %v637_v55, 0.0  ;;  %604 = vst.msk [vmem:[#allocation2 + $0x20] sm:$0xff] %vm16_vm0, %v571_v51  ;;  %620 = vst.msk [vmem:[#allocation2 + $0xa0] sm:$0xff] %vm16_vm0, %v587_v52  ;;  %v572_v59 = vadd.f32 %v1011_v53, %v55_v47  ;;  %v588_v60 = vadd.f32 %v1059_v54, %v71_v49  ;;  %v59_v47 = vld [vmem:[#allocation2 + $0x48] sm:$0xff] }
 0x10c   :  { %v685_v58 = vmax.f32 %v653_v56, 0.0  ;;  %v638_v61 = vld [vmem:[#allocation2 + $0x18] sm:$0xff]  ;;  %v75_v49 = vld [vmem:[#allocation2 + $0xc8] sm:$0xff] }
 0x10d   :  { %v654_v62 = vld [vmem:[#allocation2 + $0x98] sm:$0xff]  ;;  %v948_v63 = vpack.c.bf16 %v669_v57, %v669_v57  ;;  %v670_v1 = vmax.f32 %v638_v61, 0.0  ;;  %605 = vst.msk [vmem:[#allocation2 + $0x28] sm:$0xff] %vm16_vm0, %v572_v59  ;;  %621 = vst.msk [vmem:[#allocation2 + $0xa8] sm:$0xff] %vm16_vm0, %v588_v60  ;;  %v1012_v3 = vpop.f32.mrb[12].mxu0  ;;  %v1060_v4 = vpop.f32.mrb[12].mxu1 }
 0x10e   :  { %v964_v0 = vpack.c.bf16 %v685_v58, %v685_v58  ;;  %v686_v2 = vmax.f32 %v654_v62, 0.0  ;;  %v1013_v6 = vpop.f32.mrb[13].mxu0  ;;  %v1061_v8 = vpop.f32.mrb[13].mxu1 }
 0x10f   :  { %830 = vst.msk [vmem:[%s1525_s2 + $0x8] sm:$0xf] %vm827_vm1, %v948_v63  ;;  %v949_v9 = vpack.c.bf16 %v670_v1, %v670_v1  ;;  %v1014_v11 = vadd.f32 %v1013_v6, %v1012_v3  ;;  %v1062_v12 = vadd.f32 %v1061_v8, %v1060_v4  ;;  %v1015_v13 = vpop.f32.mrb[14].mxu0  ;;  %v1063_v14 = vpop.f32.mrb[14].mxu1 }
 0x110   :  { %846 = vst.msk [vmem:[%s1525_s2 + $0x48] sm:$0xf] %vm827_vm1, %v964_v0  ;;  %v965_v10 = vpack.c.bf16 %v686_v2, %v686_v2  ;;  %v1016_v16 = vpop.f32.mrb[15].mxu0  ;;  %v1064_v18 = vpop.f32.mrb[15].mxu1 }
 0x111   :  { %831 = vst.msk [vmem:[%s1525_s2 + $0xc] sm:$0xf] %vm827_vm1, %v949_v9  ;;  %v573_v19 = vadd.f32 %v1014_v11, %v56_v5  ;;  %v589_v20 = vadd.f32 %v1062_v12, %v72_v7  ;;  %v1017_v21 = vadd.f32 %v1016_v16, %v1015_v13  ;;  %v1065_v22 = vadd.f32 %v1064_v18, %v1063_v14  ;;  %v60_v5 = vld [vmem:[#allocation2 + $0x50] sm:$0xff] }
 0x112   :  { %847 = vst.msk [vmem:[%s1525_s2 + $0x4c] sm:$0xf] %vm827_vm1, %v965_v10  ;;  %v639_v23 = vld [vmem:[#allocation2 + $0x20] sm:$0xff]  ;;  %v76_v7 = vld [vmem:[#allocation2 + $0xd0] sm:$0xff] }
 0x113   :  { %v655_v24 = vld [vmem:[#allocation2 + $0xa0] sm:$0xff]  ;;  %v671_v25 = vmax.f32 %v639_v23, 0.0  ;;  %606 = vst.msk [vmem:[#allocation2 + $0x30] sm:$0xff] %vm16_vm0, %v573_v19  ;;  %622 = vst.msk [vmem:[#allocation2 + $0xb0] sm:$0xff] %vm16_vm0, %v589_v20  ;;  %v574_v27 = vadd.f32 %v1017_v21, %v57_v15  ;;  %v590_v28 = vadd.f32 %v1065_v22, %v73_v17  ;;  %v61_v15 = vld [vmem:[#allocation2 + $0x58] sm:$0xff] }
 0x114   :  { %v687_v26 = vmax.f32 %v655_v24, 0.0  ;;  %v640_v29 = vld [vmem:[#allocation2 + $0x28] sm:$0xff]  ;;  %v77_v17 = vld [vmem:[#allocation2 + $0xd8] sm:$0xff] }
 0x115   :  { %v656_v30 = vld [vmem:[#allocation2 + $0xa8] sm:$0xff]  ;;  %v950_v31 = vpack.c.bf16 %v671_v25, %v671_v25  ;;  %v672_v33 = vmax.f32 %v640_v29, 0.0  ;;  %607 = vst.msk [vmem:[#allocation2 + $0x38] sm:$0xff] %vm16_vm0, %v574_v27  ;;  %623 = vst.msk [vmem:[#allocation2 + $0xb8] sm:$0xff] %vm16_vm0, %v590_v28  ;;  %v1018_v35 = vpop.f32.mrb[16].mxu0  ;;  %v1066_v36 = vpop.f32.mrb[16].mxu1 }
 0x116   :  { %v966_v32 = vpack.c.bf16 %v687_v26, %v687_v26  ;;  %v688_v34 = vmax.f32 %v656_v30, 0.0  ;;  %v1019_v38 = vpop.f32.mrb[17].mxu0  ;;  %v1067_v40 = vpop.f32.mrb[17].mxu1 }
 0x117   :  { %832 = vst.msk [vmem:[%s1525_s2 + $0x10] sm:$0xf] %vm827_vm1, %v950_v31  ;;  %v951_v41 = vpack.c.bf16 %v672_v33, %v672_v33  ;;  %v1020_v43 = vadd.f32 %v1019_v38, %v1018_v35  ;;  %v1068_v44 = vadd.f32 %v1067_v40, %v1066_v36  ;;  %v1021_v45 = vpop.f32.mrb[18].mxu0  ;;  %v1069_v46 = vpop.f32.mrb[18].mxu1 }
 0x118   :  { %848 = vst.msk [vmem:[%s1525_s2 + $0x50] sm:$0xf] %vm827_vm1, %v966_v32  ;;  %v967_v42 = vpack.c.bf16 %v688_v34, %v688_v34  ;;  %v1022_v48 = vpop.f32.mrb[19].mxu0  ;;  %v1070_v50 = vpop.f32.mrb[19].mxu1 }
 0x119   :  { %833 = vst.msk [vmem:[%s1525_s2 + $0x14] sm:$0xf] %vm827_vm1, %v951_v41  ;;  %v575_v51 = vadd.f32 %v1020_v43, %v58_v37  ;;  %v591_v52 = vadd.f32 %v1068_v44, %v74_v39  ;;  %v1023_v53 = vadd.f32 %v1022_v48, %v1021_v45  ;;  %v1071_v54 = vadd.f32 %v1070_v50, %v1069_v46  ;;  %v62_v37 = vld [vmem:[#allocation2 + $0x60] sm:$0xff] }
 0x11a   :  { %849 = vst.msk [vmem:[%s1525_s2 + $0x54] sm:$0xf] %vm827_vm1, %v967_v42  ;;  %v641_v55 = vld [vmem:[#allocation2 + $0x30] sm:$0xff]  ;;  %v78_v39 = vld [vmem:[#allocation2 + $0xe0] sm:$0xff] }
 0x11b   :  { %v657_v56 = vld [vmem:[#allocation2 + $0xb0] sm:$0xff]  ;;  %v673_v57 = vmax.f32 %v641_v55, 0.0  ;;  %608 = vst.msk [vmem:[#allocation2 + $0x40] sm:$0xff] %vm16_vm0, %v575_v51  ;;  %624 = vst.msk [vmem:[#allocation2 + $0xc0] sm:$0xff] %vm16_vm0, %v591_v52  ;;  %v576_v59 = vadd.f32 %v1023_v53, %v59_v47  ;;  %v592_v60 = vadd.f32 %v1071_v54, %v75_v49  ;;  %v63_v47 = vld [vmem:[#allocation2 + $0x68] sm:$0xff] }
 0x11c   :  { %v689_v58 = vmax.f32 %v657_v56, 0.0  ;;  %v642_v61 = vld [vmem:[#allocation2 + $0x38] sm:$0xff]  ;;  %v79_v49 = vld [vmem:[#allocation2 + $0xe8] sm:$0xff] }
 0x11d   :  { %v658_v62 = vld [vmem:[#allocation2 + $0xb8] sm:$0xff]  ;;  %v952_v63 = vpack.c.bf16 %v673_v57, %v673_v57  ;;  %v674_v1 = vmax.f32 %v642_v61, 0.0  ;;  %609 = vst.msk [vmem:[#allocation2 + $0x48] sm:$0xff] %vm16_vm0, %v576_v59  ;;  %625 = vst.msk [vmem:[#allocation2 + $0xc8] sm:$0xff] %vm16_vm0, %v592_v60  ;;  %v1024_v3 = vpop.f32.mrb[20].mxu0  ;;  %v1072_v4 = vpop.f32.mrb[20].mxu1 }
 0x11e   :  { %v968_v0 = vpack.c.bf16 %v689_v58, %v689_v58  ;;  %v690_v2 = vmax.f32 %v658_v62, 0.0  ;;  %v1025_v6 = vpop.f32.mrb[21].mxu0  ;;  %v1073_v8 = vpop.f32.mrb[21].mxu1 }
 0x11f   :  { %834 = vst.msk [vmem:[%s1525_s2 + $0x18] sm:$0xf] %vm827_vm1, %v952_v63  ;;  %v953_v9 = vpack.c.bf16 %v674_v1, %v674_v1  ;;  %v1026_v11 = vadd.f32 %v1025_v6, %v1024_v3  ;;  %v1074_v12 = vadd.f32 %v1073_v8, %v1072_v4  ;;  %v1027_v13 = vpop.f32.mrb[22].mxu0  ;;  %v1075_v14 = vpop.f32.mrb[22].mxu1 }
 0x120   :  { %850 = vst.msk [vmem:[%s1525_s2 + $0x58] sm:$0xf] %vm827_vm1, %v968_v0  ;;  %v969_v10 = vpack.c.bf16 %v690_v2, %v690_v2  ;;  %v1028_v16 = vpop.f32.mrb[23].mxu0  ;;  %v1076_v18 = vpop.f32.mrb[23].mxu1 }
 0x121   :  { %835 = vst.msk [vmem:[%s1525_s2 + $0x1c] sm:$0xf] %vm827_vm1, %v953_v9  ;;  %v577_v19 = vadd.f32 %v1026_v11, %v60_v5  ;;  %v593_v20 = vadd.f32 %v1074_v12, %v76_v7  ;;  %v1029_v21 = vadd.f32 %v1028_v16, %v1027_v13  ;;  %v1077_v22 = vadd.f32 %v1076_v18, %v1075_v14  ;;  %v64_v5 = vld [vmem:[#allocation2 + $0x70] sm:$0xff] }
 0x122   :  { %851 = vst.msk [vmem:[%s1525_s2 + $0x5c] sm:$0xf] %vm827_vm1, %v969_v10  ;;  %v643_v23 = vld [vmem:[#allocation2 + $0x40] sm:$0xff]  ;;  %v80_v7 = vld [vmem:[#allocation2 + $0xf0] sm:$0xff] }
 0x123   :  { %v659_v24 = vld [vmem:[#allocation2 + $0xc0] sm:$0xff]  ;;  %v675_v25 = vmax.f32 %v643_v23, 0.0  ;;  %610 = vst.msk [vmem:[#allocation2 + $0x50] sm:$0xff] %vm16_vm0, %v577_v19  ;;  %626 = vst.msk [vmem:[#allocation2 + $0xd0] sm:$0xff] %vm16_vm0, %v593_v20  ;;  %v578_v27 = vadd.f32 %v1029_v21, %v61_v15  ;;  %v594_v28 = vadd.f32 %v1077_v22, %v77_v17  ;;  %v65_v15 = vld [vmem:[#allocation2 + $0x78] sm:$0xff] }
 0x124   :  { %v691_v26 = vmax.f32 %v659_v24, 0.0  ;;  %v644_v29 = vld [vmem:[#allocation2 + $0x48] sm:$0xff]  ;;  %v81_v17 = vld [vmem:[#allocation2 + $0xf8] sm:$0xff] }
 0x125   :  { %v660_v30 = vld [vmem:[#allocation2 + $0xc8] sm:$0xff]  ;;  %v954_v31 = vpack.c.bf16 %v675_v25, %v675_v25  ;;  %v676_v33 = vmax.f32 %v644_v29, 0.0  ;;  %611 = vst.msk [vmem:[#allocation2 + $0x58] sm:$0xff] %vm16_vm0, %v578_v27  ;;  %627 = vst.msk [vmem:[#allocation2 + $0xd8] sm:$0xff] %vm16_vm0, %v594_v28  ;;  %v1030_v35 = vpop.f32.mrb[24].mxu0  ;;  %v1078_v36 = vpop.f32.mrb[24].mxu1 }
 0x126   :  { %v970_v32 = vpack.c.bf16 %v691_v26, %v691_v26  ;;  %v692_v34 = vmax.f32 %v660_v30, 0.0  ;;  %v1031_v38 = vpop.f32.mrb[25].mxu0  ;;  %v1079_v40 = vpop.f32.mrb[25].mxu1 }
 0x127   :  { %836 = vst.msk [vmem:[%s1525_s2 + $0x20] sm:$0xf] %vm827_vm1, %v954_v31  ;;  %v955_v41 = vpack.c.bf16 %v676_v33, %v676_v33  ;;  %v1032_v43 = vadd.f32 %v1031_v38, %v1030_v35  ;;  %v1080_v44 = vadd.f32 %v1079_v40, %v1078_v36  ;;  %v1033_v45 = vpop.f32.mrb[26].mxu0  ;;  %v1081_v46 = vpop.f32.mrb[26].mxu1 }
 0x128   :  { %852 = vst.msk [vmem:[%s1525_s2 + $0x60] sm:$0xf] %vm827_vm1, %v970_v32  ;;  %v971_v42 = vpack.c.bf16 %v692_v34, %v692_v34  ;;  %v1034_v48 = vpop.f32.mrb[27].mxu0  ;;  %v1082_v50 = vpop.f32.mrb[27].mxu1 }
 0x129   :  { %837 = vst.msk [vmem:[%s1525_s2 + $0x24] sm:$0xf] %vm827_vm1, %v955_v41  ;;  %v579_v51 = vadd.f32 %v1032_v43, %v62_v37  ;;  %v595_v52 = vadd.f32 %v1080_v44, %v78_v39  ;;  %v1035_v53 = vadd.f32 %v1034_v48, %v1033_v45  ;;  %v1083_v54 = vadd.f32 %v1082_v50, %v1081_v46 }
 0x12a   :  { %853 = vst.msk [vmem:[%s1525_s2 + $0x64] sm:$0xf] %vm827_vm1, %v971_v42  ;;  %v645_v55 = vld [vmem:[#allocation2 + $0x50] sm:$0xff] }
 0x12b   :  { %v661_v56 = vld [vmem:[#allocation2 + $0xd0] sm:$0xff]  ;;  %v677_v57 = vmax.f32 %v645_v55, 0.0  ;;  %612 = vst.msk [vmem:[#allocation2 + $0x60] sm:$0xff] %vm16_vm0, %v579_v51  ;;  %628 = vst.msk [vmem:[#allocation2 + $0xe0] sm:$0xff] %vm16_vm0, %v595_v52  ;;  %v580_v59 = vadd.f32 %v1035_v53, %v63_v47  ;;  %v596_v60 = vadd.f32 %v1083_v54, %v79_v49 }
 0x12c   :  { %v693_v58 = vmax.f32 %v661_v56, 0.0  ;;  %v646_v61 = vld [vmem:[#allocation2 + $0x58] sm:$0xff] }
 0x12d   :  { %v662_v62 = vld [vmem:[#allocation2 + $0xd8] sm:$0xff]  ;;  %v956_v63 = vpack.c.bf16 %v677_v57, %v677_v57  ;;  %v678_v1 = vmax.f32 %v646_v61, 0.0  ;;  %613 = vst.msk [vmem:[#allocation2 + $0x68] sm:$0xff] %vm16_vm0, %v580_v59  ;;  %629 = vst.msk [vmem:[#allocation2 + $0xe8] sm:$0xff] %vm16_vm0, %v596_v60  ;;  %v1036_v3 = vpop.f32.mrb[28].mxu0  ;;  %v1084_v4 = vpop.f32.mrb[28].mxu1 }
 0x12e   :  { %v972_v0 = vpack.c.bf16 %v693_v58, %v693_v58  ;;  %v694_v2 = vmax.f32 %v662_v62, 0.0  ;;  %v1037_v6 = vpop.f32.mrb[29].mxu0  ;;  %v1085_v8 = vpop.f32.mrb[29].mxu1 }
 0x12f   :  { %838 = vst.msk [vmem:[%s1525_s2 + $0x28] sm:$0xf] %vm827_vm1, %v956_v63  ;;  %v957_v9 = vpack.c.bf16 %v678_v1, %v678_v1  ;;  %v1038_v11 = vadd.f32 %v1037_v6, %v1036_v3  ;;  %v1086_v12 = vadd.f32 %v1085_v8, %v1084_v4  ;;  %v1039_v13 = vpop.f32.mrb[30].mxu0  ;;  %v1087_v14 = vpop.f32.mrb[30].mxu1 }
 0x130   :  { %854 = vst.msk [vmem:[%s1525_s2 + $0x68] sm:$0xf] %vm827_vm1, %v972_v0  ;;  %v973_v10 = vpack.c.bf16 %v694_v2, %v694_v2  ;;  %v1040_v16 = vpop.f32.mrb[31].mxu0  ;;  %v1088_v18 = vpop.f32.mrb[31].mxu1 }
 0x131   :  { %839 = vst.msk [vmem:[%s1525_s2 + $0x2c] sm:$0xf] %vm827_vm1, %v957_v9  ;;  %v581_v19 = vadd.f32 %v1038_v11, %v64_v5  ;;  %v597_v20 = vadd.f32 %v1086_v12, %v80_v7  ;;  %v1041_v21 = vadd.f32 %v1040_v16, %v1039_v13  ;;  %v1089_v22 = vadd.f32 %v1088_v18, %v1087_v14 }
 0x132   :  { %855 = vst.msk [vmem:[%s1525_s2 + $0x6c] sm:$0xf] %vm827_vm1, %v973_v10  ;;  %v647_v23 = vld [vmem:[#allocation2 + $0x60] sm:$0xff] }
 0x133   :  { %v663_v24 = vld [vmem:[#allocation2 + $0xe0] sm:$0xff]  ;;  %v679_v25 = vmax.f32 %v647_v23, 0.0  ;;  %614 = vst.msk [vmem:[#allocation2 + $0x70] sm:$0xff] %vm16_vm0, %v581_v19  ;;  %630 = vst.msk [vmem:[#allocation2 + $0xf0] sm:$0xff] %vm16_vm0, %v597_v20  ;;  %v582_v27 = vadd.f32 %v1041_v21, %v65_v15  ;;  %v598_v28 = vadd.f32 %v1089_v22, %v81_v17 }
 0x134   :  { %v695_v26 = vmax.f32 %v663_v24, 0.0  ;;  %v648_v29 = vld [vmem:[#allocation2 + $0x68] sm:$0xff] }
 0x135   :  { %v664_v30 = vld [vmem:[#allocation2 + $0xe8] sm:$0xff]  ;;  %v958_v31 = vpack.c.bf16 %v679_v25, %v679_v25  ;;  %v680_v33 = vmax.f32 %v648_v29, 0.0  ;;  %615 = vst.msk [vmem:[#allocation2 + $0x78] sm:$0xff] %vm16_vm0, %v582_v27  ;;  %631 = vst.msk [vmem:[#allocation2 + $0xf8] sm:$0xff] %vm16_vm0, %v598_v28 }
 0x136   :  { %v974_v32 = vpack.c.bf16 %v695_v26, %v695_v26  ;;  %v696_v34 = vmax.f32 %v664_v30, 0.0 }
 0x137   :  { %840 = vst.msk [vmem:[%s1525_s2 + $0x30] sm:$0xf] %vm827_vm1, %v958_v31  ;;  %v959_v35 = vpack.c.bf16 %v680_v33, %v680_v33 }
 0x138   :  { %856 = vst.msk [vmem:[%s1525_s2 + $0x70] sm:$0xf] %vm827_vm1, %v974_v32  ;;  %v975_v36 = vpack.c.bf16 %v696_v34, %v696_v34 }
 0x139   :  { %841 = vst.msk [vmem:[%s1525_s2 + $0x34] sm:$0xf] %vm827_vm1, %v959_v35 }
 0x13a   :  { %857 = vst.msk [vmem:[%s1525_s2 + $0x74] sm:$0xf] %vm827_vm1, %v975_v36  ;;  %v649_v37 = vld [vmem:[#allocation2 + $0x70] sm:$0xff] }
 0x13b   :  { %v665_v38 = vld [vmem:[#allocation2 + $0xf0] sm:$0xff]  ;;  %v681_v39 = vmax.f32 %v649_v37, 0.0 }
 0x13c   :  { %v697_v40 = vmax.f32 %v665_v38, 0.0  ;;  %v650_v41 = vld [vmem:[#allocation2 + $0x78] sm:$0xff] }
 0x13d   :  { %v666_v42 = vld [vmem:[#allocation2 + $0xf8] sm:$0xff]  ;;  %v960_v43 = vpack.c.bf16 %v681_v39, %v681_v39  ;;  %v682_v45 = vmax.f32 %v650_v41, 0.0 }
 0x13e   :  { %v976_v44 = vpack.c.bf16 %v697_v40, %v697_v40  ;;  %v698_v46 = vmax.f32 %v666_v42, 0.0 }
 0x13f   :  { %842 = vst.msk [vmem:[%s1525_s2 + $0x38] sm:$0xf] %vm827_vm1, %v960_v43  ;;  %v961_v47 = vpack.c.bf16 %v682_v45, %v682_v45 }
 0x140   :  { %858 = vst.msk [vmem:[%s1525_s2 + $0x78] sm:$0xf] %vm827_vm1, %v976_v44  ;;  %v977_v48 = vpack.c.bf16 %v698_v46, %v698_v46 }
 0x141   :  { %843 = vst.msk [vmem:[%s1525_s2 + $0x3c] sm:$0xf] %vm827_vm1, %v961_v47 }
 0x142   :  { %859 = vst.msk [vmem:[%s1525_s2 + $0x7c] sm:$0xf] %vm827_vm1, %v977_v48 }

// kernel: dominant_forward.16
= control target key start
LH: loop header
LB: loop body
LE: loop exit
PB: predicated region body
PF: predicated region fallthrough
CT: control target
= control target key end

     0   :  { %vm77_vm0 = vcmask 130048   ;;  %vm527_vm1 = vcmask 257024   ;;  %s1060_s1 = inlined_call_operand.vmem [shape: f32[16,32], index: 1, kind: input, shape index: {}]   ;;  %s1061_s0 = inlined_call_operand.vmem [shape: bf16[256,16], index: 0, kind: input, shape index: {}]   ;;  %s1062_s2 = inlined_call_operand.vmem [shape: bf16[256,32], index: 2, kind: output, shape index: {}]  }
   0x1   :  { %v75_v0 = vld [vmem:[%s1060_s1] sm:$0xff]  ;;  %v76_v1 = vld [vmem:[%s1060_s1 + $0x8] sm:$0xff]  ;;  %v725_v13 = vld [vmem:[%s1061_s0 + $0x10] sm:$0xff]  }
   0x2   :  { %v661_v2 = vld [vmem:[%s1061_s0] sm:$0xff]   ;;  %v825_v3 = vpack.c.bf16 %v76_v1, %v75_v0  ;;  %v724_v6 = vld [vmem:[%s1061_s0 + $0x8] sm:$0xff]   ;;  %v733_v14 = vld [vmem:[%s1061_s0 + $0x50] sm:$0xff]   ;;  %v670_v17 = vunpack.c.l.bf16 %v725_v13  ;;  %v671_v21 = vunpack.c.h.bf16 %v725_v13 }
   0x3   :  { %v662_v4 = vunpack.c.l.bf16 %v661_v2  ;;  %v731_v5 = vld [vmem:[%s1061_s0 + $0x40] sm:$0xff]   ;;  %v732_v7 = vld [vmem:[%s1061_s0 + $0x48] sm:$0xff]   ;;  %v663_v9 = vunpack.c.h.bf16 %v661_v2  ;;  %v666_v11 = vunpack.c.l.bf16 %v724_v6  ;;  %v667_v15 = vunpack.c.h.bf16 %v724_v6  ;;  %v726_v19 = vld [vmem:[%s1061_s0 + $0x18] sm:$0xff]  }
   0x4   :  { %v694_v8 = vunpack.c.l.bf16 %v731_v5  ;;  %826 = vmatprep.subr.bf16.mxu0 %v825_v3  ;;  %829 = vmatprep.subr.bf16.mxu1 %v825_v3  ;;  %v695_v10 = vunpack.c.h.bf16 %v731_v5  ;;  %v698_v12 = vunpack.c.l.bf16 %v732_v7  ;;  %v699_v16 = vunpack.c.h.bf16 %v732_v7  ;;  %v734_v20 = vld [vmem:[%s1061_s0 + $0x58] sm:$0xff]   ;;  %v727_v25 = vld [vmem:[%s1061_s0 + $0x20] sm:$0xff]   ;;  %v728_v31 = vld [vmem:[%s1061_s0 + $0x28] sm:$0xff]  }
   0x5   :  { %828 = vmatpush3.bf16.msra.mxu0 %v825_v3  ;;  %830 = vmatpush3.bf16.msra.mxu1 %v825_v3  ;;  %v702_v18 = vunpack.c.l.bf16 %v733_v14  ;;  %v703_v22 = vunpack.c.h.bf16 %v733_v14  ;;  %v674_v23 = vunpack.c.l.bf16 %v726_v19  ;;  %v706_v24 = vunpack.c.l.bf16 %v734_v20  ;;  %v735_v26 = vld [vmem:[%s1061_s0 + $0x60] sm:$0xff]   ;;  %v736_v32 = vld [vmem:[%s1061_s0 + $0x68] sm:$0xff]   ;;  %v729_v37 = vld [vmem:[%s1061_s0 + $0x30] sm:$0xff]  }
   0x6   :  { %777 = vmatprep.mubr.msk.f32.mxu0 %vm77_vm0, %v662_v4  ;;  %801 = vmatprep.mubr.msk.f32.mxu1 %vm77_vm0, %v694_v8  ;;  %v675_v27 = vunpack.c.h.bf16 %v726_v19  ;;  %v707_v28 = vunpack.c.h.bf16 %v734_v20  ;;  %v678_v29 = vunpack.c.l.bf16 %v727_v25  ;;  %v710_v30 = vunpack.c.l.bf16 %v735_v26  ;;  %v737_v38 = vld [vmem:[%s1061_s0 + $0x70] sm:$0xff]   ;;  %v730_v43 = vld [vmem:[%s1061_s0 + $0x38] sm:$0xff]  }
   0x7   :  { %v679_v33 = vunpack.c.h.bf16 %v727_v25  ;;  %v711_v34 = vunpack.c.h.bf16 %v735_v26  ;;  %v682_v35 = vunpack.c.l.bf16 %v728_v31  ;;  %v714_v36 = vunpack.c.l.bf16 %v736_v32  ;;  %v738_v44 = vld [vmem:[%s1061_s0 + $0x78] sm:$0xff]  }
   0x8   :  { %778 = vmatmul.mubr.msk.f32.vlgmr.msra.gmra.mrb[0].mxu0 %vm77_vm0, %v663_v9  ;;  %802 = vmatmul.mubr.msk.f32.vlgmr.msra.gmra.mrb[0].mxu1 %vm77_vm0, %v695_v10  ;;  %v683_v39 = vunpack.c.h.bf16 %v728_v31  ;;  %v715_v40 = vunpack.c.h.bf16 %v736_v32  ;;  %v686_v41 = vunpack.c.l.bf16 %v729_v37  ;;  %v718_v42 = vunpack.c.l.bf16 %v737_v38 }
   0x9   :  { %780 = vmatprep.mubr.msk.f32.mxu0 %vm77_vm0, %v666_v11  ;;  %804 = vmatprep.mubr.msk.f32.mxu1 %vm77_vm0, %v698_v12  ;;  %v687_v45 = vunpack.c.h.bf16 %v729_v37  ;;  %v719_v46 = vunpack.c.h.bf16 %v737_v38  ;;  %v690_v47 = vunpack.c.l.bf16 %v730_v43  ;;  %v722_v48 = vunpack.c.l.bf16 %v738_v44 }
   0xa   :  { %v691_v49 = vunpack.c.h.bf16 %v730_v43  ;;  %v723_v50 = vunpack.c.h.bf16 %v738_v44 }
   0xc   :  { %781 = vmatmul.mubr.msk.f32.gmra.mrb[2].mxu0 %vm77_vm0, %v667_v15  ;;  %805 = vmatmul.mubr.msk.f32.gmra.mrb[2].mxu1 %vm77_vm0, %v699_v16 }
   0xd   :  { %783 = vmatprep.mubr.msk.f32.mxu0 %vm77_vm0, %v670_v17  ;;  %807 = vmatprep.mubr.msk.f32.mxu1 %vm77_vm0, %v702_v18 }
  0x10   :  { %784 = vmatmul.mubr.msk.f32.gmra.mrb[4].mxu0 %vm77_vm0, %v671_v21  ;;  %808 = vmatmul.mubr.msk.f32.gmra.mrb[4].mxu1 %vm77_vm0, %v703_v22 }
  0x11   :  { %786 = vmatprep.mubr.msk.f32.mxu0 %vm77_vm0, %v674_v23  ;;  %810 = vmatprep.mubr.msk.f32.mxu1 %vm77_vm0, %v706_v24 }
  0x14   :  { %787 = vmatmul.mubr.msk.f32.gmra.mrb[6].mxu0 %vm77_vm0, %v675_v27  ;;  %811 = vmatmul.mubr.msk.f32.gmra.mrb[6].mxu1 %vm77_vm0, %v707_v28 }
  0x15   :  { %789 = vmatprep.mubr.msk.f32.mxu0 %vm77_vm0, %v678_v29  ;;  %813 = vmatprep.mubr.msk.f32.mxu1 %vm77_vm0, %v710_v30 }
  0x18   :  { %790 = vmatmul.mubr.msk.f32.gmra.mrb[8].mxu0 %vm77_vm0, %v679_v33  ;;  %814 = vmatmul.mubr.msk.f32.gmra.mrb[8].mxu1 %vm77_vm0, %v711_v34 }
  0x19   :  { %792 = vmatprep.mubr.msk.f32.mxu0 %vm77_vm0, %v682_v35  ;;  %816 = vmatprep.mubr.msk.f32.mxu1 %vm77_vm0, %v714_v36 }
  0x1c   :  { %793 = vmatmul.mubr.msk.f32.gmra.mrb[10].mxu0 %vm77_vm0, %v683_v39  ;;  %817 = vmatmul.mubr.msk.f32.gmra.mrb[10].mxu1 %vm77_vm0, %v715_v40 }
  0x1d   :  { %795 = vmatprep.mubr.msk.f32.mxu0 %vm77_vm0, %v686_v41  ;;  %819 = vmatprep.mubr.msk.f32.mxu1 %vm77_vm0, %v718_v42 }
  0x20   :  { %796 = vmatmul.mubr.msk.f32.gmra.mrb[12].mxu0 %vm77_vm0, %v687_v45  ;;  %820 = vmatmul.mubr.msk.f32.gmra.mrb[12].mxu1 %vm77_vm0, %v719_v46 }
  0x21   :  { %798 = vmatprep.mubr.msk.f32.mxu0 %vm77_vm0, %v690_v47  ;;  %822 = vmatprep.mubr.msk.f32.mxu1 %vm77_vm0, %v722_v48 }
  0x24   :  { %799 = vmatmul.mubr.msk.f32.gmra.mrb[14].mxu0 %vm77_vm0, %v691_v49  ;;  %823 = vmatmul.mubr.msk.f32.gmra.mrb[14].mxu1 %vm77_vm0, %v723_v50 }
  0xdb   :  { %v779_v51 = vpop.f32.mrb[0].mxu0  ;;  %v803_v52 = vpop.f32.mrb[0].mxu1 }
  0xdc   :  { %v629_v53 = vpack.c.bf16 %v779_v51, %v779_v51  ;;  %v645_v54 = vpack.c.bf16 %v803_v52, %v803_v52  ;;  %v240_v55 = vpop.f32.mrb[1].mxu0  ;;  %v320_v56 = vpop.f32.mrb[1].mxu1 }
  0xdd   :  { %v628_v57 = vpack.c.bf16 %v240_v55, %v240_v55  ;;  %v644_v58 = vpack.c.bf16 %v320_v56, %v320_v56 }
  0xde   :  { %529 = vst.msk [vmem:[%s1062_s2 + $0x4] sm:$0xf] %vm527_vm1, %v629_v53  ;;  %545 = vst.msk [vmem:[%s1062_s2 + $0x44] sm:$0xf] %vm527_vm1, %v645_v54 }
  0xdf   :  { %528 = vst.msk [vmem:[%s1062_s2] sm:$0xf] %vm527_vm1, %v628_v57  ;;  %544 = vst.msk [vmem:[%s1062_s2 + $0x40] sm:$0xf] %vm527_vm1, %v644_v58  ;;  %v782_v59 = vpop.f32.mrb[2].mxu0  ;;  %v806_v60 = vpop.f32.mrb[2].mxu1 }
  0xe0   :  { %v631_v61 = vpack.c.bf16 %v782_v59, %v782_v59  ;;  %v647_v62 = vpack.c.bf16 %v806_v60, %v806_v60  ;;  %v250_v63 = vpop.f32.mrb[3].mxu0  ;;  %v330_v0 = vpop.f32.mrb[3].mxu1 }
  0xe1   :  { %v630_v1 = vpack.c.bf16 %v250_v63, %v250_v63  ;;  %v646_v2 = vpack.c.bf16 %v330_v0, %v330_v0 }
  0xe2   :  { %531 = vst.msk [vmem:[%s1062_s2 + $0xc] sm:$0xf] %vm527_vm1, %v631_v61  ;;  %547 = vst.msk [vmem:[%s1062_s2 + $0x4c] sm:$0xf] %vm527_vm1, %v647_v62 }
  0xe3   :  { %530 = vst.msk [vmem:[%s1062_s2 + $0x8] sm:$0xf] %vm527_vm1, %v630_v1  ;;  %546 = vst.msk [vmem:[%s1062_s2 + $0x48] sm:$0xf] %vm527_vm1, %v646_v2  ;;  %v785_v3 = vpop.f32.mrb[4].mxu0  ;;  %v809_v4 = vpop.f32.mrb[4].mxu1 }
  0xe4   :  { %v633_v5 = vpack.c.bf16 %v785_v3, %v785_v3  ;;  %v649_v6 = vpack.c.bf16 %v809_v4, %v809_v4  ;;  %v260_v7 = vpop.f32.mrb[5].mxu0  ;;  %v340_v8 = vpop.f32.mrb[5].mxu1 }
  0xe5   :  { %v632_v9 = vpack.c.bf16 %v260_v7, %v260_v7  ;;  %v648_v10 = vpack.c.bf16 %v340_v8, %v340_v8 }
  0xe6   :  { %533 = vst.msk [vmem:[%s1062_s2 + $0x14] sm:$0xf] %vm527_vm1, %v633_v5  ;;  %549 = vst.msk [vmem:[%s1062_s2 + $0x54] sm:$0xf] %vm527_vm1, %v649_v6 }
  0xe7   :  { %532 = vst.msk [vmem:[%s1062_s2 + $0x10] sm:$0xf] %vm527_vm1, %v632_v9  ;;  %548 = vst.msk [vmem:[%s1062_s2 + $0x50] sm:$0xf] %vm527_vm1, %v648_v10  ;;  %v788_v11 = vpop.f32.mrb[6].mxu0  ;;  %v812_v12 = vpop.f32.mrb[6].mxu1 }
  0xe8   :  { %v635_v13 = vpack.c.bf16 %v788_v11, %v788_v11  ;;  %v651_v14 = vpack.c.bf16 %v812_v12, %v812_v12  ;;  %v270_v15 = vpop.f32.mrb[7].mxu0  ;;  %v350_v16 = vpop.f32.mrb[7].mxu1 }
  0xe9   :  { %v634_v17 = vpack.c.bf16 %v270_v15, %v270_v15  ;;  %v650_v18 = vpack.c.bf16 %v350_v16, %v350_v16 }
  0xea   :  { %535 = vst.msk [vmem:[%s1062_s2 + $0x1c] sm:$0xf] %vm527_vm1, %v635_v13  ;;  %551 = vst.msk [vmem:[%s1062_s2 + $0x5c] sm:$0xf] %vm527_vm1, %v651_v14 }
  0xeb   :  { %534 = vst.msk [vmem:[%s1062_s2 + $0x18] sm:$0xf] %vm527_vm1, %v634_v17  ;;  %550 = vst.msk [vmem:[%s1062_s2 + $0x58] sm:$0xf] %vm527_vm1, %v650_v18  ;;  %v791_v19 = vpop.f32.mrb[8].mxu0  ;;  %v815_v20 = vpop.f32.mrb[8].mxu1 }
  0xec   :  { %v637_v21 = vpack.c.bf16 %v791_v19, %v791_v19  ;;  %v653_v22 = vpack.c.bf16 %v815_v20, %v815_v20  ;;  %v280_v23 = vpop.f32.mrb[9].mxu0  ;;  %v360_v24 = vpop.f32.mrb[9].mxu1 }
  0xed   :  { %v636_v25 = vpack.c.bf16 %v280_v23, %v280_v23  ;;  %v652_v26 = vpack.c.bf16 %v360_v24, %v360_v24 }
  0xee   :  { %537 = vst.msk [vmem:[%s1062_s2 + $0x24] sm:$0xf] %vm527_vm1, %v637_v21  ;;  %553 = vst.msk [vmem:[%s1062_s2 + $0x64] sm:$0xf] %vm527_vm1, %v653_v22 }
  0xef   :  { %536 = vst.msk [vmem:[%s1062_s2 + $0x20] sm:$0xf] %vm527_vm1, %v636_v25  ;;  %552 = vst.msk [vmem:[%s1062_s2 + $0x60] sm:$0xf] %vm527_vm1, %v652_v26  ;;  %v794_v27 = vpop.f32.mrb[10].mxu0  ;;  %v818_v28 = vpop.f32.mrb[10].mxu1 }
  0xf0   :  { %v639_v29 = vpack.c.bf16 %v794_v27, %v794_v27  ;;  %v655_v30 = vpack.c.bf16 %v818_v28, %v818_v28  ;;  %v290_v31 = vpop.f32.mrb[11].mxu0  ;;  %v370_v32 = vpop.f32.mrb[11].mxu1 }
  0xf1   :  { %v638_v33 = vpack.c.bf16 %v290_v31, %v290_v31  ;;  %v654_v34 = vpack.c.bf16 %v370_v32, %v370_v32 }
  0xf2   :  { %539 = vst.msk [vmem:[%s1062_s2 + $0x2c] sm:$0xf] %vm527_vm1, %v639_v29  ;;  %555 = vst.msk [vmem:[%s1062_s2 + $0x6c] sm:$0xf] %vm527_vm1, %v655_v30 }
  0xf3   :  { %538 = vst.msk [vmem:[%s1062_s2 + $0x28] sm:$0xf] %vm527_vm1, %v638_v33  ;;  %554 = vst.msk [vmem:[%s1062_s2 + $0x68] sm:$0xf] %vm527_vm1, %v654_v34  ;;  %v797_v35 = vpop.f32.mrb[12].mxu0  ;;  %v821_v36 = vpop.f32.mrb[12].mxu1 }
  0xf4   :  { %v641_v37 = vpack.c.bf16 %v797_v35, %v797_v35  ;;  %v657_v38 = vpack.c.bf16 %v821_v36, %v821_v36  ;;  %v300_v39 = vpop.f32.mrb[13].mxu0  ;;  %v380_v40 = vpop.f32.mrb[13].mxu1 }
  0xf5   :  { %v640_v41 = vpack.c.bf16 %v300_v39, %v300_v39  ;;  %v656_v42 = vpack.c.bf16 %v380_v40, %v380_v40 }
  0xf6   :  { %541 = vst.msk [vmem:[%s1062_s2 + $0x34] sm:$0xf] %vm527_vm1, %v641_v37  ;;  %557 = vst.msk [vmem:[%s1062_s2 + $0x74] sm:$0xf] %vm527_vm1, %v657_v38 }
  0xf7   :  { %540 = vst.msk [vmem:[%s1062_s2 + $0x30] sm:$0xf] %vm527_vm1, %v640_v41  ;;  %556 = vst.msk [vmem:[%s1062_s2 + $0x70] sm:$0xf] %vm527_vm1, %v656_v42  ;;  %v800_v43 = vpop.f32.mrb[14].mxu0  ;;  %v824_v44 = vpop.f32.mrb[14].mxu1 }
  0xf8   :  { %v643_v45 = vpack.c.bf16 %v800_v43, %v800_v43  ;;  %v659_v46 = vpack.c.bf16 %v824_v44, %v824_v44  ;;  %v310_v47 = vpop.f32.mrb[15].mxu0  ;;  %v390_v48 = vpop.f32.mrb[15].mxu1 }
  0xf9   :  { %v642_v49 = vpack.c.bf16 %v310_v47, %v310_v47  ;;  %v658_v50 = vpack.c.bf16 %v390_v48, %v390_v48 }
  0xfa   :  { %543 = vst.msk [vmem:[%s1062_s2 + $0x3c] sm:$0xf] %vm527_vm1, %v643_v45  ;;  %559 = vst.msk [vmem:[%s1062_s2 + $0x7c] sm:$0xf] %vm527_vm1, %v659_v46 }
  0xfb   :  { %542 = vst.msk [vmem:[%s1062_s2 + $0x38] sm:$0xf] %vm527_vm1, %v642_v49  ;;  %558 = vst.msk [vmem:[%s1062_s2 + $0x78] sm:$0xf] %vm527_vm1, %v658_v50 }

// kernel: dominant_forward.13
= control target key start
LH: loop header
LB: loop body
LE: loop exit
PB: predicated region body
PF: predicated region fallthrough
CT: control target
= control target key end

     0   :  { %vm79_vm0 = vcmask 261120   ;;  %vm529_vm1 = vcmask 125952   ;;  %s1080_s1 = inlined_call_operand.vmem [shape: f32[32,16], index: 1, kind: input, shape index: {}]   ;;  %s1081_s0 = inlined_call_operand.vmem [shape: bf16[256,32], index: 0, kind: input, shape index: {}]   ;;  %s1082_s2 = inlined_call_operand.vmem [shape: bf16[256,16], index: 2, kind: output, shape index: {}]  }
   0x1   :  { %v75_v0 = vld [vmem:[%s1080_s1] sm:$0xff]  ;;  %v76_v1 = vld [vmem:[%s1080_s1 + $0x8] sm:$0xff]  ;;  %v77_v2 = vld [vmem:[%s1080_s1 + $0x10] sm:$0xff] }
   0x2   :  { %v833_v3 = vpack.c.bf16 %v76_v1, %v75_v0  ;;  %v78_v4 = vld [vmem:[%s1080_s1 + $0x18] sm:$0xff]  ;;  %v663_v5 = vld [vmem:[%s1081_s0] sm:$0xff]   ;;  %v726_v10 = vld [vmem:[%s1081_s0 + $0x8] sm:$0xff]  }
   0x3   :  { %v733_v6 = vld [vmem:[%s1081_s0 + $0x40] sm:$0xff]   ;;  %v837_v7 = vpack.c.bf16 %v78_v4, %v77_v2  ;;  %v664_v8 = vunpack.c.l.bf16 %v663_v5  ;;  %v734_v11 = vld [vmem:[%s1081_s0 + $0x48] sm:$0xff]   ;;  %v665_v12 = vunpack.c.h.bf16 %v663_v5  ;;  %v668_v14 = vunpack.c.l.bf16 %v726_v10  ;;  %v727_v16 = vld [vmem:[%s1081_s0 + $0x10] sm:$0xff]  }
   0x4   :  { %v696_v9 = vunpack.c.l.bf16 %v733_v6  ;;  %834 = vmatprep.subr.bf16.mxu0 %v833_v3  ;;  %841 = vmatprep.subr.bf16.mxu1 %v833_v3  ;;  %v697_v13 = vunpack.c.h.bf16 %v733_v6  ;;  %v700_v15 = vunpack.c.l.bf16 %v734_v11  ;;  %v735_v17 = vld [vmem:[%s1081_s0 + $0x50] sm:$0xff]   ;;  %v669_v18 = vunpack.c.h.bf16 %v726_v10  ;;  %v728_v22 = vld [vmem:[%s1081_s0 + $0x18] sm:$0xff]   ;;  %v729_v28 = vld [vmem:[%s1081_s0 + $0x20] sm:$0xff]  }
   0x5   :  { %836 = vmatpush3.bf16.msra.mxu0 %v833_v3  ;;  %843 = vmatpush3.bf16.msra.mxu1 %v833_v3  ;;  %v701_v19 = vunpack.c.h.bf16 %v734_v11  ;;  %v672_v20 = vunpack.c.l.bf16 %v727_v16  ;;  %v704_v21 = vunpack.c.l.bf16 %v735_v17  ;;  %v736_v23 = vld [vmem:[%s1081_s0 + $0x58] sm:$0xff]   ;;  %v673_v24 = vunpack.c.h.bf16 %v727_v16  ;;  %v737_v29 = vld [vmem:[%s1081_s0 + $0x60] sm:$0xff]   ;;  %v730_v34 = vld [vmem:[%s1081_s0 + $0x28] sm:$0xff]  }
   0x6   :  { %838 = vmatprep.subr.bf16.mxu0 %v837_v7  ;;  %842 = vmatprep.subr.bf16.mxu1 %v837_v7  ;;  %v705_v25 = vunpack.c.h.bf16 %v735_v17  ;;  %v676_v26 = vunpack.c.l.bf16 %v728_v22  ;;  %v708_v27 = vunpack.c.l.bf16 %v736_v23  ;;  %v677_v30 = vunpack.c.h.bf16 %v728_v22  ;;  %v738_v35 = vld [vmem:[%s1081_s0 + $0x68] sm:$0xff]   ;;  %v731_v40 = vld [vmem:[%s1081_s0 + $0x30] sm:$0xff]   ;;  %v732_v46 = vld [vmem:[%s1081_s0 + $0x38] sm:$0xff]  }
   0x7   :  { %785 = vmatprep.mubr.msk.f32.mxu0 %vm79_vm0, %v664_v8  ;;  %809 = vmatprep.mubr.msk.f32.mxu1 %vm79_vm0, %v696_v9  ;;  %v709_v31 = vunpack.c.h.bf16 %v736_v23  ;;  %v680_v32 = vunpack.c.l.bf16 %v729_v28  ;;  %v712_v33 = vunpack.c.l.bf16 %v737_v29  ;;  %v681_v36 = vunpack.c.h.bf16 %v729_v28  ;;  %v739_v41 = vld [vmem:[%s1081_s0 + $0x70] sm:$0xff]   ;;  %v740_v47 = vld [vmem:[%s1081_s0 + $0x78] sm:$0xff]  }
   0x8   :  { %v713_v37 = vunpack.c.h.bf16 %v737_v29  ;;  %v684_v38 = vunpack.c.l.bf16 %v730_v34  ;;  %v716_v39 = vunpack.c.l.bf16 %v738_v35  ;;  %v685_v42 = vunpack.c.h.bf16 %v730_v34 }
   0x9   :  { %840 = vmatpush3.bf16.msra.mxu0 %v837_v7  ;;  %844 = vmatpush3.bf16.msra.mxu1 %v837_v7  ;;  %v717_v43 = vunpack.c.h.bf16 %v738_v35  ;;  %v688_v44 = vunpack.c.l.bf16 %v731_v40  ;;  %v720_v45 = vunpack.c.l.bf16 %v739_v41  ;;  %v689_v48 = vunpack.c.h.bf16 %v731_v40 }
   0xa   :  { %v721_v49 = vunpack.c.h.bf16 %v739_v41  ;;  %v692_v50 = vunpack.c.l.bf16 %v732_v46  ;;  %v724_v51 = vunpack.c.l.bf16 %v740_v47  ;;  %v693_v52 = vunpack.c.h.bf16 %v732_v46 }
   0xb   :  { %v725_v53 = vunpack.c.h.bf16 %v740_v47 }
   0xc   :  { %786 = vmatmul.mubr.msk.f32.vlgmr.msra.gmra.mrb[0].mxu0 %vm79_vm0, %v665_v12  ;;  %810 = vmatmul.mubr.msk.f32.vlgmr.msra.gmra.mrb[0].mxu1 %vm79_vm0, %v697_v13 }
   0xd   :  { %788 = vmatprep.mubr.msk.f32.mxu0 %vm79_vm0, %v668_v14  ;;  %812 = vmatprep.mubr.msk.f32.mxu1 %vm79_vm0, %v700_v15 }
  0x10   :  { %789 = vmatmul.mubr.msk.f32.gmra.mrb[2].mxu0 %vm79_vm0, %v669_v18  ;;  %813 = vmatmul.mubr.msk.f32.gmra.mrb[2].mxu1 %vm79_vm0, %v701_v19 }
  0x11   :  { %791 = vmatprep.mubr.msk.f32.mxu0 %vm79_vm0, %v672_v20  ;;  %815 = vmatprep.mubr.msk.f32.mxu1 %vm79_vm0, %v704_v21 }
  0x14   :  { %792 = vmatmul.mubr.msk.f32.gmra.mrb[4].mxu0 %vm79_vm0, %v673_v24  ;;  %816 = vmatmul.mubr.msk.f32.gmra.mrb[4].mxu1 %vm79_vm0, %v705_v25 }
  0x15   :  { %794 = vmatprep.mubr.msk.f32.mxu0 %vm79_vm0, %v676_v26  ;;  %818 = vmatprep.mubr.msk.f32.mxu1 %vm79_vm0, %v708_v27 }
  0x18   :  { %795 = vmatmul.mubr.msk.f32.gmra.mrb[6].mxu0 %vm79_vm0, %v677_v30  ;;  %819 = vmatmul.mubr.msk.f32.gmra.mrb[6].mxu1 %vm79_vm0, %v709_v31 }
  0x19   :  { %797 = vmatprep.mubr.msk.f32.mxu0 %vm79_vm0, %v680_v32  ;;  %821 = vmatprep.mubr.msk.f32.mxu1 %vm79_vm0, %v712_v33 }
  0x1c   :  { %798 = vmatmul.mubr.msk.f32.gmra.mrb[8].mxu0 %vm79_vm0, %v681_v36  ;;  %822 = vmatmul.mubr.msk.f32.gmra.mrb[8].mxu1 %vm79_vm0, %v713_v37 }
  0x1d   :  { %800 = vmatprep.mubr.msk.f32.mxu0 %vm79_vm0, %v684_v38  ;;  %824 = vmatprep.mubr.msk.f32.mxu1 %vm79_vm0, %v716_v39 }
  0x20   :  { %801 = vmatmul.mubr.msk.f32.gmra.mrb[10].mxu0 %vm79_vm0, %v685_v42  ;;  %825 = vmatmul.mubr.msk.f32.gmra.mrb[10].mxu1 %vm79_vm0, %v717_v43 }
  0x21   :  { %803 = vmatprep.mubr.msk.f32.mxu0 %vm79_vm0, %v688_v44  ;;  %827 = vmatprep.mubr.msk.f32.mxu1 %vm79_vm0, %v720_v45 }
  0x24   :  { %804 = vmatmul.mubr.msk.f32.gmra.mrb[12].mxu0 %vm79_vm0, %v689_v48  ;;  %828 = vmatmul.mubr.msk.f32.gmra.mrb[12].mxu1 %vm79_vm0, %v721_v49 }
  0x25   :  { %806 = vmatprep.mubr.msk.f32.mxu0 %vm79_vm0, %v692_v50  ;;  %830 = vmatprep.mubr.msk.f32.mxu1 %vm79_vm0, %v724_v51 }
  0x28   :  { %807 = vmatmul.mubr.msk.f32.gmra.mrb[14].mxu0 %vm79_vm0, %v693_v52  ;;  %831 = vmatmul.mubr.msk.f32.gmra.mrb[14].mxu1 %vm79_vm0, %v725_v53 }
  0xdf   :  { %v787_v54 = vpop.f32.mrb[0].mxu0  ;;  %v811_v55 = vpop.f32.mrb[0].mxu1 }
  0xe0   :  { %v631_v56 = vpack.c.bf16 %v787_v54, %v787_v54  ;;  %v647_v57 = vpack.c.bf16 %v811_v55, %v811_v55  ;;  %v242_v58 = vpop.f32.mrb[1].mxu0  ;;  %v322_v59 = vpop.f32.mrb[1].mxu1 }
  0xe1   :  { %v630_v60 = vpack.c.bf16 %v242_v58, %v242_v58  ;;  %v646_v61 = vpack.c.bf16 %v322_v59, %v322_v59 }
  0xe2   :  { %531 = vst.msk [vmem:[%s1082_s2 + $0x4] sm:$0xf] %vm529_vm1, %v631_v56  ;;  %547 = vst.msk [vmem:[%s1082_s2 + $0x44] sm:$0xf] %vm529_vm1, %v647_v57 }
  0xe3   :  { %530 = vst.msk [vmem:[%s1082_s2] sm:$0xf] %vm529_vm1, %v630_v60  ;;  %546 = vst.msk [vmem:[%s1082_s2 + $0x40] sm:$0xf] %vm529_vm1, %v646_v61  ;;  %v790_v62 = vpop.f32.mrb[2].mxu0  ;;  %v814_v63 = vpop.f32.mrb[2].mxu1 }
  0xe4   :  { %v633_v0 = vpack.c.bf16 %v790_v62, %v790_v62  ;;  %v649_v1 = vpack.c.bf16 %v814_v63, %v814_v63  ;;  %v252_v2 = vpop.f32.mrb[3].mxu0  ;;  %v332_v3 = vpop.f32.mrb[3].mxu1 }
  0xe5   :  { %v632_v4 = vpack.c.bf16 %v252_v2, %v252_v2  ;;  %v648_v5 = vpack.c.bf16 %v332_v3, %v332_v3 }
  0xe6   :  { %533 = vst.msk [vmem:[%s1082_s2 + $0xc] sm:$0xf] %vm529_vm1, %v633_v0  ;;  %549 = vst.msk [vmem:[%s1082_s2 + $0x4c] sm:$0xf] %vm529_vm1, %v649_v1 }
  0xe7   :  { %532 = vst.msk [vmem:[%s1082_s2 + $0x8] sm:$0xf] %vm529_vm1, %v632_v4  ;;  %548 = vst.msk [vmem:[%s1082_s2 + $0x48] sm:$0xf] %vm529_vm1, %v648_v5  ;;  %v793_v6 = vpop.f32.mrb[4].mxu0  ;;  %v817_v7 = vpop.f32.mrb[4].mxu1 }
  0xe8   :  { %v635_v8 = vpack.c.bf16 %v793_v6, %v793_v6  ;;  %v651_v9 = vpack.c.bf16 %v817_v7, %v817_v7  ;;  %v262_v10 = vpop.f32.mrb[5].mxu0  ;;  %v342_v11 = vpop.f32.mrb[5].mxu1 }
  0xe9   :  { %v634_v12 = vpack.c.bf16 %v262_v10, %v262_v10  ;;  %v650_v13 = vpack.c.bf16 %v342_v11, %v342_v11 }
  0xea   :  { %535 = vst.msk [vmem:[%s1082_s2 + $0x14] sm:$0xf] %vm529_vm1, %v635_v8  ;;  %551 = vst.msk [vmem:[%s1082_s2 + $0x54] sm:$0xf] %vm529_vm1, %v651_v9 }
  0xeb   :  { %534 = vst.msk [vmem:[%s1082_s2 + $0x10] sm:$0xf] %vm529_vm1, %v634_v12  ;;  %550 = vst.msk [vmem:[%s1082_s2 + $0x50] sm:$0xf] %vm529_vm1, %v650_v13  ;;  %v796_v14 = vpop.f32.mrb[6].mxu0  ;;  %v820_v15 = vpop.f32.mrb[6].mxu1 }
  0xec   :  { %v637_v16 = vpack.c.bf16 %v796_v14, %v796_v14  ;;  %v653_v17 = vpack.c.bf16 %v820_v15, %v820_v15  ;;  %v272_v18 = vpop.f32.mrb[7].mxu0  ;;  %v352_v19 = vpop.f32.mrb[7].mxu1 }
  0xed   :  { %v636_v20 = vpack.c.bf16 %v272_v18, %v272_v18  ;;  %v652_v21 = vpack.c.bf16 %v352_v19, %v352_v19 }
  0xee   :  { %537 = vst.msk [vmem:[%s1082_s2 + $0x1c] sm:$0xf] %vm529_vm1, %v637_v16  ;;  %553 = vst.msk [vmem:[%s1082_s2 + $0x5c] sm:$0xf] %vm529_vm1, %v653_v17 }
  0xef   :  { %536 = vst.msk [vmem:[%s1082_s2 + $0x18] sm:$0xf] %vm529_vm1, %v636_v20  ;;  %552 = vst.msk [vmem:[%s1082_s2 + $0x58] sm:$0xf] %vm529_vm1, %v652_v21  ;;  %v799_v22 = vpop.f32.mrb[8].mxu0  ;;  %v823_v23 = vpop.f32.mrb[8].mxu1 }
  0xf0   :  { %v639_v24 = vpack.c.bf16 %v799_v22, %v799_v22  ;;  %v655_v25 = vpack.c.bf16 %v823_v23, %v823_v23  ;;  %v282_v26 = vpop.f32.mrb[9].mxu0  ;;  %v362_v27 = vpop.f32.mrb[9].mxu1 }
  0xf1   :  { %v638_v28 = vpack.c.bf16 %v282_v26, %v282_v26  ;;  %v654_v29 = vpack.c.bf16 %v362_v27, %v362_v27 }
  0xf2   :  { %539 = vst.msk [vmem:[%s1082_s2 + $0x24] sm:$0xf] %vm529_vm1, %v639_v24  ;;  %555 = vst.msk [vmem:[%s1082_s2 + $0x64] sm:$0xf] %vm529_vm1, %v655_v25 }
  0xf3   :  { %538 = vst.msk [vmem:[%s1082_s2 + $0x20] sm:$0xf] %vm529_vm1, %v638_v28  ;;  %554 = vst.msk [vmem:[%s1082_s2 + $0x60] sm:$0xf] %vm529_vm1, %v654_v29  ;;  %v802_v30 = vpop.f32.mrb[10].mxu0  ;;  %v826_v31 = vpop.f32.mrb[10].mxu1 }
  0xf4   :  { %v641_v32 = vpack.c.bf16 %v802_v30, %v802_v30  ;;  %v657_v33 = vpack.c.bf16 %v826_v31, %v826_v31  ;;  %v292_v34 = vpop.f32.mrb[11].mxu0  ;;  %v372_v35 = vpop.f32.mrb[11].mxu1 }
  0xf5   :  { %v640_v36 = vpack.c.bf16 %v292_v34, %v292_v34  ;;  %v656_v37 = vpack.c.bf16 %v372_v35, %v372_v35 }
  0xf6   :  { %541 = vst.msk [vmem:[%s1082_s2 + $0x2c] sm:$0xf] %vm529_vm1, %v641_v32  ;;  %557 = vst.msk [vmem:[%s1082_s2 + $0x6c] sm:$0xf] %vm529_vm1, %v657_v33 }
  0xf7   :  { %540 = vst.msk [vmem:[%s1082_s2 + $0x28] sm:$0xf] %vm529_vm1, %v640_v36  ;;  %556 = vst.msk [vmem:[%s1082_s2 + $0x68] sm:$0xf] %vm529_vm1, %v656_v37  ;;  %v805_v38 = vpop.f32.mrb[12].mxu0  ;;  %v829_v39 = vpop.f32.mrb[12].mxu1 }
  0xf8   :  { %v643_v40 = vpack.c.bf16 %v805_v38, %v805_v38  ;;  %v659_v41 = vpack.c.bf16 %v829_v39, %v829_v39  ;;  %v302_v42 = vpop.f32.mrb[13].mxu0  ;;  %v382_v43 = vpop.f32.mrb[13].mxu1 }
  0xf9   :  { %v642_v44 = vpack.c.bf16 %v302_v42, %v302_v42  ;;  %v658_v45 = vpack.c.bf16 %v382_v43, %v382_v43 }
  0xfa   :  { %543 = vst.msk [vmem:[%s1082_s2 + $0x34] sm:$0xf] %vm529_vm1, %v643_v40  ;;  %559 = vst.msk [vmem:[%s1082_s2 + $0x74] sm:$0xf] %vm529_vm1, %v659_v41 }
  0xfb   :  { %542 = vst.msk [vmem:[%s1082_s2 + $0x30] sm:$0xf] %vm529_vm1, %v642_v44  ;;  %558 = vst.msk [vmem:[%s1082_s2 + $0x70] sm:$0xf] %vm529_vm1, %v658_v45  ;;  %v808_v46 = vpop.f32.mrb[14].mxu0  ;;  %v832_v47 = vpop.f32.mrb[14].mxu1 }
  0xfc   :  { %v645_v48 = vpack.c.bf16 %v808_v46, %v808_v46  ;;  %v661_v49 = vpack.c.bf16 %v832_v47, %v832_v47  ;;  %v312_v50 = vpop.f32.mrb[15].mxu0  ;;  %v392_v51 = vpop.f32.mrb[15].mxu1 }
  0xfd   :  { %v644_v52 = vpack.c.bf16 %v312_v50, %v312_v50  ;;  %v660_v53 = vpack.c.bf16 %v392_v51, %v392_v51 }
  0xfe   :  { %545 = vst.msk [vmem:[%s1082_s2 + $0x3c] sm:$0xf] %vm529_vm1, %v645_v48  ;;  %561 = vst.msk [vmem:[%s1082_s2 + $0x7c] sm:$0xf] %vm529_vm1, %v661_v49 }
  0xff   :  { %544 = vst.msk [vmem:[%s1082_s2 + $0x38] sm:$0xf] %vm529_vm1, %v644_v52  ;;  %560 = vst.msk [vmem:[%s1082_s2 + $0x78] sm:$0xf] %vm529_vm1, %v660_v53 }

// kernel: dominant_forward.17
= control target key start
LH: loop header
LB: loop body
LE: loop exit
PB: predicated region body
PF: predicated region fallthrough
CT: control target
= control target key end

     0   :  { %vm16_vm0 = vcmask 261120   ;;  %v978_v48 = vmov 0.0   ;;  %s1330_s1 = inlined_call_operand.vmem [shape: bf16[256,32], index: 1, kind: input, shape index: {}]   ;;  %s1331_s0 = inlined_call_operand.vmem [shape: bf16[256,256], index: 0, kind: input, shape index: {}]   ;;  %s1332_s2 = inlined_call_operand.vmem [shape: f32[256,32], index: 2, kind: output, shape index: {}]  }
   0x1   :  { %v914_v0 = vld [vmem:[%s1330_s1 + $0x40] sm:$0xff]   ;;  %v916_v2 = vld [vmem:[%s1330_s1 + $0x48] sm:$0xff]   ;;  %v918_v4 = vld [vmem:[%s1330_s1 + $0x50] sm:$0xff]   ;;  %17 = vst.msk [vmem:[#allocation2] sm:$0xff] %vm16_vm0, %v978_v48 }
   0x2   :  { %v915_v1 = vld [vmem:[%s1330_s1] sm:$0xff]   ;;  %785 = vmatprep.subr.bf16.mxu0 %v914_v0  ;;  %897 = vmatprep.subr.bf16.mxu1 %v914_v0  ;;  %v917_v3 = vld [vmem:[%s1330_s1 + $0x8] sm:$0xff]   ;;  %v919_v5 = vld [vmem:[%s1330_s1 + $0x10] sm:$0xff]   ;;  %18 = vst.msk [vmem:[#allocation2 + $0x8] sm:$0xff] %vm16_vm0, %v978_v48 }
   0x3   :  { %786 = vmatpush3.bf16.msra.mxu0 %v915_v1  ;;  %905 = vmatpush3.bf16.msra.mxu1 %v915_v1  ;;  %v920_v6 = vld [vmem:[%s1330_s1 + $0x58] sm:$0xff]   ;;  %v922_v8 = vld [vmem:[%s1330_s1 + $0x60] sm:$0xff]   ;;  %v924_v10 = vld [vmem:[%s1330_s1 + $0x68] sm:$0xff]   ;;  %19 = vst.msk [vmem:[#allocation2 + $0x10] sm:$0xff] %vm16_vm0, %v978_v48 }
   0x4   :  { %787 = vmatprep.subr.bf16.mxu0 %v916_v2  ;;  %898 = vmatprep.subr.bf16.mxu1 %v916_v2  ;;  %v921_v7 = vld [vmem:[%s1330_s1 + $0x18] sm:$0xff]   ;;  %v923_v9 = vld [vmem:[%s1330_s1 + $0x20] sm:$0xff]   ;;  %v925_v13 = vld [vmem:[%s1330_s1 + $0x28] sm:$0xff]   ;;  %20 = vst.msk [vmem:[#allocation2 + $0x18] sm:$0xff] %vm16_vm0, %v978_v48 }
   0x5   :  { %v932_v11 = vld [vmem:[%s1331_s0 + $0x4] ss:$8 sps:$4 sm:$0xff]   ;;  %v926_v14 = vld [vmem:[%s1330_s1 + $0x70] sm:$0xff]   ;;  %v928_v16 = vld [vmem:[%s1330_s1 + $0x78] sm:$0xff]   ;;  %21 = vst.msk [vmem:[#allocation2 + $0x20] sm:$0xff] %vm16_vm0, %v978_v48 }
   0x6   :  { %v935_v12 = vld [vmem:[%s1331_s0 + $0x84] ss:$8 sps:$4 sm:$0xff]   ;;  %438 = vmatprep.mubr.bf16.mxu0 %v932_v11  ;;  %v927_v15 = vld [vmem:[%s1330_s1 + $0x30] sm:$0xff]   ;;  %v929_v17 = vld [vmem:[%s1330_s1 + $0x38] sm:$0xff]   ;;  %22 = vst.msk [vmem:[#allocation2 + $0x28] sm:$0xff] %vm16_vm0, %v978_v48 }
   0x7   :  { %788 = vmatpush3.bf16.msra.mxu0 %v917_v3  ;;  %906 = vmatpush3.bf16.msra.mxu1 %v917_v3  ;;  %v930_v18 = vld [vmem:[%s1331_s0] ss:$8 sps:$4 sm:$0xff]   ;;  %v936_v20 = vld [vmem:[%s1331_s0 + $0x14] ss:$8 sps:$4 sm:$0xff]   ;;  %v940_v22 = vld [vmem:[%s1331_s0 + $0x10] ss:$8 sps:$4 sm:$0xff]  }
   0x8   :  { %789 = vmatprep.subr.bf16.mxu0 %v918_v4  ;;  %899 = vmatprep.subr.bf16.mxu1 %v918_v4  ;;  %v933_v19 = vld [vmem:[%s1331_s0 + $0x80] ss:$8 sps:$4 sm:$0xff]   ;;  %v938_v21 = vld [vmem:[%s1331_s0 + $0x94] ss:$8 sps:$4 sm:$0xff]   ;;  %v941_v23 = vld [vmem:[%s1331_s0 + $0x90] ss:$8 sps:$4 sm:$0xff]  }
   0x9   :  { %502 = vmatprep.mubr.bf16.mxu1 %v935_v12  ;;  %v942_v24 = vld [vmem:[%s1331_s0 + $0x24] ss:$8 sps:$4 sm:$0xff]   ;;  %v946_v26 = vld [vmem:[%s1331_s0 + $0x20] ss:$8 sps:$4 sm:$0xff]   ;;  %v948_v28 = vld [vmem:[%s1331_s0 + $0x34] ss:$8 sps:$4 sm:$0xff]  }
   0xa   :  { %v944_v25 = vld [vmem:[%s1331_s0 + $0xa4] ss:$8 sps:$4 sm:$0xff]   ;;  %v947_v27 = vld [vmem:[%s1331_s0 + $0xa0] ss:$8 sps:$4 sm:$0xff]   ;;  %v950_v29 = vld [vmem:[%s1331_s0 + $0xb4] ss:$8 sps:$4 sm:$0xff]  }
   0xb   :  { %790 = vmatpush3.bf16.msra.mxu0 %v919_v5  ;;  %907 = vmatpush3.bf16.msra.mxu1 %v919_v5  ;;  %v952_v30 = vld [vmem:[%s1331_s0 + $0x30] ss:$8 sps:$4 sm:$0xff]   ;;  %v954_v32 = vld [vmem:[%s1331_s0 + $0x44] ss:$8 sps:$4 sm:$0xff]   ;;  %v958_v34 = vld [vmem:[%s1331_s0 + $0x40] ss:$8 sps:$4 sm:$0xff]  }
   0xc   :  { %791 = vmatprep.subr.bf16.mxu0 %v920_v6  ;;  %900 = vmatprep.subr.bf16.mxu1 %v920_v6  ;;  %v953_v31 = vld [vmem:[%s1331_s0 + $0xb0] ss:$8 sps:$4 sm:$0xff]   ;;  %v956_v33 = vld [vmem:[%s1331_s0 + $0xc4] ss:$8 sps:$4 sm:$0xff]   ;;  %v959_v35 = vld [vmem:[%s1331_s0 + $0xc0] ss:$8 sps:$4 sm:$0xff]  }
   0xd   :  { %v960_v36 = vld [vmem:[%s1331_s0 + $0x54] ss:$8 sps:$4 sm:$0xff]   ;;  %v964_v38 = vld [vmem:[%s1331_s0 + $0x50] ss:$8 sps:$4 sm:$0xff]   ;;  %v966_v40 = vld [vmem:[%s1331_s0 + $0x64] ss:$8 sps:$4 sm:$0xff]  }
   0xe   :  { %v962_v37 = vld [vmem:[%s1331_s0 + $0xd4] ss:$8 sps:$4 sm:$0xff]   ;;  %v965_v39 = vld [vmem:[%s1331_s0 + $0xd0] ss:$8 sps:$4 sm:$0xff]   ;;  %v968_v41 = vld [vmem:[%s1331_s0 + $0xe4] ss:$8 sps:$4 sm:$0xff]  }
   0xf   :  { %792 = vmatpush3.bf16.msra.mxu0 %v921_v7  ;;  %908 = vmatpush3.bf16.msra.mxu1 %v921_v7  ;;  %v970_v42 = vld [vmem:[%s1331_s0 + $0x60] ss:$8 sps:$4 sm:$0xff]   ;;  %v972_v44 = vld [vmem:[%s1331_s0 + $0x74] ss:$8 sps:$4 sm:$0xff]   ;;  %v976_v46 = vld [vmem:[%s1331_s0 + $0x70] ss:$8 sps:$4 sm:$0xff]  }
  0x10   :  { %793 = vmatprep.subr.bf16.mxu0 %v922_v8  ;;  %901 = vmatprep.subr.bf16.mxu1 %v922_v8  ;;  %v971_v43 = vld [vmem:[%s1331_s0 + $0xe0] ss:$8 sps:$4 sm:$0xff]   ;;  %v974_v45 = vld [vmem:[%s1331_s0 + $0xf4] ss:$8 sps:$4 sm:$0xff]   ;;  %v977_v47 = vld [vmem:[%s1331_s0 + $0xf0] ss:$8 sps:$4 sm:$0xff]  }
  0x11   :  { %23 = vst.msk [vmem:[#allocation2 + $0x30] sm:$0xff] %vm16_vm0, %v978_v48  ;;  %24 = vst.msk [vmem:[#allocation2 + $0x38] sm:$0xff] %vm16_vm0, %v978_v48  ;;  %v50_v51 = vld [vmem:[#allocation2] sm:$0xff]  ;;  %v51_v59 = vld [vmem:[#allocation2 + $0x8] sm:$0xff] }
  0x12   :  { %25 = vst.msk [vmem:[#allocation2 + $0x40] sm:$0xff] %vm16_vm0, %v978_v48  ;;  %26 = vst.msk [vmem:[#allocation2 + $0x48] sm:$0xff] %vm16_vm0, %v978_v48  ;;  %v52_v7 = vld [vmem:[#allocation2 + $0x10] sm:$0xff] }
  0x13   :  { %794 = vmatpush3.bf16.msra.mxu0 %v923_v9  ;;  %909 = vmatpush3.bf16.msra.mxu1 %v923_v9  ;;  %27 = vst.msk [vmem:[#allocation2 + $0x50] sm:$0xff] %vm16_vm0, %v978_v48  ;;  %28 = vst.msk [vmem:[#allocation2 + $0x58] sm:$0xff] %vm16_vm0, %v978_v48 }
  0x14   :  { %795 = vmatprep.subr.bf16.mxu0 %v924_v10  ;;  %902 = vmatprep.subr.bf16.mxu1 %v924_v10  ;;  %29 = vst.msk [vmem:[#allocation2 + $0x60] sm:$0xff] %vm16_vm0, %v978_v48  ;;  %30 = vst.msk [vmem:[#allocation2 + $0x68] sm:$0xff] %vm16_vm0, %v978_v48 }
  0x15   :  { %31 = vst.msk [vmem:[#allocation2 + $0x70] sm:$0xff] %vm16_vm0, %v978_v48  ;;  %32 = vst.msk [vmem:[#allocation2 + $0x78] sm:$0xff] %vm16_vm0, %v978_v48 }
  0x16   :  { %33 = vst.msk [vmem:[#allocation2 + $0x80] sm:$0xff] %vm16_vm0, %v978_v48  ;;  %34 = vst.msk [vmem:[#allocation2 + $0x88] sm:$0xff] %vm16_vm0, %v978_v48 }
  0x17   :  { %796 = vmatpush3.bf16.msra.mxu0 %v925_v13  ;;  %910 = vmatpush3.bf16.msra.mxu1 %v925_v13  ;;  %35 = vst.msk [vmem:[#allocation2 + $0x90] sm:$0xff] %vm16_vm0, %v978_v48  ;;  %36 = vst.msk [vmem:[#allocation2 + $0x98] sm:$0xff] %vm16_vm0, %v978_v48 }
  0x18   :  { %797 = vmatprep.subr.bf16.mxu0 %v926_v14  ;;  %903 = vmatprep.subr.bf16.mxu1 %v926_v14  ;;  %37 = vst.msk [vmem:[#allocation2 + $0xa0] sm:$0xff] %vm16_vm0, %v978_v48  ;;  %38 = vst.msk [vmem:[#allocation2 + $0xa8] sm:$0xff] %vm16_vm0, %v978_v48 }
  0x19   :  { %39 = vst.msk [vmem:[#allocation2 + $0xb0] sm:$0xff] %vm16_vm0, %v978_v48  ;;  %40 = vst.msk [vmem:[#allocation2 + $0xb8] sm:$0xff] %vm16_vm0, %v978_v48 }
  0x1a   :  { %41 = vst.msk [vmem:[#allocation2 + $0xc0] sm:$0xff] %vm16_vm0, %v978_v48  ;;  %42 = vst.msk [vmem:[#allocation2 + $0xc8] sm:$0xff] %vm16_vm0, %v978_v48 }
  0x1b   :  { %798 = vmatpush3.bf16.msra.mxu0 %v927_v15  ;;  %911 = vmatpush3.bf16.msra.mxu1 %v927_v15  ;;  %43 = vst.msk [vmem:[#allocation2 + $0xd0] sm:$0xff] %vm16_vm0, %v978_v48  ;;  %44 = vst.msk [vmem:[#allocation2 + $0xd8] sm:$0xff] %vm16_vm0, %v978_v48  ;;  %v53_v15 = vld [vmem:[#allocation2 + $0x18] sm:$0xff] }
  0x1c   :  { %799 = vmatprep.subr.bf16.mxu0 %v928_v16  ;;  %904 = vmatprep.subr.bf16.mxu1 %v928_v16  ;;  %45 = vst.msk [vmem:[#allocation2 + $0xe0] sm:$0xff] %vm16_vm0, %v978_v48  ;;  %46 = vst.msk [vmem:[#allocation2 + $0xe8] sm:$0xff] %vm16_vm0, %v978_v48 }
  0x1d   :  { %47 = vst.msk [vmem:[#allocation2 + $0xf0] sm:$0xff] %vm16_vm0, %v978_v48  ;;  %48 = vst.msk [vmem:[#allocation2 + $0xf8] sm:$0xff] %vm16_vm0, %v978_v48  ;;  %v66_v53 = vld [vmem:[#allocation2 + $0x80] sm:$0xff]  ;;  %v67_v61 = vld [vmem:[#allocation2 + $0x88] sm:$0xff] }
  0x1e   :  { %v68_v9 = vld [vmem:[#allocation2 + $0x90] sm:$0xff] }
  0x1f   :  { %800 = vmatpush3.bf16.msra.mxu0 %v929_v17  ;;  %912 = vmatpush3.bf16.msra.mxu1 %v929_v17  ;;  %v69_v17 = vld [vmem:[#allocation2 + $0x98] sm:$0xff] }
  0x22   :  { %439 = vmatmul.mubr.bf16.vlgmr.msra.gmra.mrb[0].mxu0 %v930_v18  ;;  %503 = vmatmul.mubr.bf16.vlgmr.msra.gmra.mrb[0].mxu1 %v933_v19 }
  0x23   :  { %446 = vmatprep.mubr.bf16.mxu0 %v936_v20  ;;  %510 = vmatprep.mubr.bf16.mxu1 %v938_v21 }
  0x2a   :  { %447 = vmatmul.mubr.bf16.gmra.mrb[4].mxu0 %v940_v22  ;;  %511 = vmatmul.mubr.bf16.gmra.mrb[4].mxu1 %v941_v23 }
  0x2b   :  { %454 = vmatprep.mubr.bf16.mxu0 %v942_v24  ;;  %518 = vmatprep.mubr.bf16.mxu1 %v944_v25 }
  0x32   :  { %455 = vmatmul.mubr.bf16.gmra.mrb[8].mxu0 %v946_v26  ;;  %519 = vmatmul.mubr.bf16.gmra.mrb[8].mxu1 %v947_v27 }
  0x33   :  { %462 = vmatprep.mubr.bf16.mxu0 %v948_v28  ;;  %526 = vmatprep.mubr.bf16.mxu1 %v950_v29 }
  0x3a   :  { %463 = vmatmul.mubr.bf16.gmra.mrb[12].mxu0 %v952_v30  ;;  %527 = vmatmul.mubr.bf16.gmra.mrb[12].mxu1 %v953_v31 }
  0x3b   :  { %470 = vmatprep.mubr.bf16.mxu0 %v954_v32  ;;  %534 = vmatprep.mubr.bf16.mxu1 %v956_v33 }
  0x42   :  { %471 = vmatmul.mubr.bf16.gmra.mrb[16].mxu0 %v958_v34  ;;  %535 = vmatmul.mubr.bf16.gmra.mrb[16].mxu1 %v959_v35  ;;  %v54_v35 = vld [vmem:[#allocation2 + $0x20] sm:$0xff] }
  0x43   :  { %478 = vmatprep.mubr.bf16.mxu0 %v960_v36  ;;  %542 = vmatprep.mubr.bf16.mxu1 %v962_v37  ;;  %v70_v37 = vld [vmem:[#allocation2 + $0xa0] sm:$0xff] }
  0x4a   :  { %479 = vmatmul.mubr.bf16.gmra.mrb[20].mxu0 %v964_v38  ;;  %543 = vmatmul.mubr.bf16.gmra.mrb[20].mxu1 %v965_v39 }
  0x4b   :  { %486 = vmatprep.mubr.bf16.mxu0 %v966_v40  ;;  %550 = vmatprep.mubr.bf16.mxu1 %v968_v41 }
  0x52   :  { %487 = vmatmul.mubr.bf16.gmra.mrb[24].mxu0 %v970_v42  ;;  %551 = vmatmul.mubr.bf16.gmra.mrb[24].mxu1 %v971_v43  ;;  %v55_v43 = vld [vmem:[#allocation2 + $0x28] sm:$0xff] }
  0x53   :  { %494 = vmatprep.mubr.bf16.mxu0 %v972_v44  ;;  %558 = vmatprep.mubr.bf16.mxu1 %v974_v45  ;;  %v71_v45 = vld [vmem:[#allocation2 + $0xa8] sm:$0xff] }
  0x5a   :  { %495 = vmatmul.mubr.bf16.gmra.mrb[28].mxu0 %v976_v46  ;;  %559 = vmatmul.mubr.bf16.gmra.mrb[28].mxu1 %v977_v47 }
  0xf5   :  { %v801_v49 = vpop.f32.mrb[0].mxu0  ;;  %v849_v50 = vpop.f32.mrb[0].mxu1 }
  0xf6   :  { %v802_v52 = vpop.f32.mrb[1].mxu0  ;;  %v850_v54 = vpop.f32.mrb[1].mxu1 }
  0xf7   :  { %v803_v55 = vadd.f32 %v802_v52, %v801_v49  ;;  %v851_v56 = vadd.f32 %v850_v54, %v849_v50  ;;  %v804_v57 = vpop.f32.mrb[2].mxu0  ;;  %v852_v58 = vpop.f32.mrb[2].mxu1 }
  0xf8   :  { %v805_v60 = vpop.f32.mrb[3].mxu0  ;;  %v853_v62 = vpop.f32.mrb[3].mxu1 }
  0xf9   :  { %v567_v63 = vadd.f32 %v803_v55, %v50_v51  ;;  %v583_v0 = vadd.f32 %v851_v56, %v66_v53  ;;  %v806_v1 = vadd.f32 %v805_v60, %v804_v57  ;;  %v854_v2 = vadd.f32 %v853_v62, %v852_v58 }
  0xfb   :  { %600 = vst.msk [vmem:[#allocation2] sm:$0xff] %vm16_vm0, %v567_v63  ;;  %616 = vst.msk [vmem:[#allocation2 + $0x80] sm:$0xff] %vm16_vm0, %v583_v0  ;;  %v568_v3 = vadd.f32 %v806_v1, %v51_v59  ;;  %v584_v4 = vadd.f32 %v854_v2, %v67_v61  ;;  %v56_v63 = vld [vmem:[#allocation2 + $0x30] sm:$0xff] }
  0xfc   :  { %v72_v1 = vld [vmem:[#allocation2 + $0xb0] sm:$0xff] }
  0xfd   :  { %601 = vst.msk [vmem:[#allocation2 + $0x8] sm:$0xff] %vm16_vm0, %v568_v3  ;;  %617 = vst.msk [vmem:[#allocation2 + $0x88] sm:$0xff] %vm16_vm0, %v584_v4  ;;  %v807_v5 = vpop.f32.mrb[4].mxu0  ;;  %v855_v6 = vpop.f32.mrb[4].mxu1 }
  0xfe   :  { %v808_v8 = vpop.f32.mrb[5].mxu0  ;;  %v856_v10 = vpop.f32.mrb[5].mxu1 }
  0xff   :  { %v809_v11 = vadd.f32 %v808_v8, %v807_v5  ;;  %v857_v12 = vadd.f32 %v856_v10, %v855_v6  ;;  %v810_v13 = vpop.f32.mrb[6].mxu0  ;;  %v858_v14 = vpop.f32.mrb[6].mxu1 }
 0x100   :  { %v811_v16 = vpop.f32.mrb[7].mxu0  ;;  %v859_v18 = vpop.f32.mrb[7].mxu1 }
 0x101   :  { %v569_v19 = vadd.f32 %v809_v11, %v52_v7  ;;  %v585_v20 = vadd.f32 %v857_v12, %v68_v9  ;;  %v812_v21 = vadd.f32 %v811_v16, %v810_v13  ;;  %v860_v22 = vadd.f32 %v859_v18, %v858_v14  ;;  %v57_v7 = vld [vmem:[#allocation2 + $0x38] sm:$0xff] }
 0x102   :  { %v635_v23 = vld [vmem:[#allocation2] sm:$0xff]  ;;  %v73_v9 = vld [vmem:[#allocation2 + $0xb8] sm:$0xff] }
 0x103   :  { %v651_v24 = vld [vmem:[#allocation2 + $0x80] sm:$0xff]  ;;  %v667_v25 = vmax.f32 %v635_v23, 0.0  ;;  %602 = vst.msk [vmem:[#allocation2 + $0x10] sm:$0xff] %vm16_vm0, %v569_v19  ;;  %618 = vst.msk [vmem:[#allocation2 + $0x90] sm:$0xff] %vm16_vm0, %v585_v20  ;;  %v570_v27 = vadd.f32 %v812_v21, %v53_v15  ;;  %v586_v28 = vadd.f32 %v860_v22, %v69_v17 }
 0x104   :  { %v683_v26 = vmax.f32 %v651_v24, 0.0  ;;  %v636_v29 = vld [vmem:[#allocation2 + $0x8] sm:$0xff] }
 0x105   :  { %v652_v30 = vld [vmem:[#allocation2 + $0x88] sm:$0xff]  ;;  %699 = vst.msk [vmem:[%s1332_s2] sm:$0xff] %vm16_vm0, %v667_v25  ;;  %v668_v31 = vmax.f32 %v636_v29, 0.0  ;;  %603 = vst.msk [vmem:[#allocation2 + $0x18] sm:$0xff] %vm16_vm0, %v570_v27  ;;  %v813_v33 = vpop.f32.mrb[8].mxu0  ;;  %v861_v34 = vpop.f32.mrb[8].mxu1 }
 0x106   :  { %715 = vst.msk [vmem:[%s1332_s2 + $0x80] sm:$0xff] %vm16_vm0, %v683_v26  ;;  %v684_v32 = vmax.f32 %v652_v30, 0.0  ;;  %619 = vst.msk [vmem:[#allocation2 + $0x98] sm:$0xff] %vm16_vm0, %v586_v28  ;;  %v814_v36 = vpop.f32.mrb[9].mxu0  ;;  %v862_v38 = vpop.f32.mrb[9].mxu1  ;;  %v58_v27 = vld [vmem:[#allocation2 + $0x40] sm:$0xff] }
 0x107   :  { %700 = vst.msk [vmem:[%s1332_s2 + $0x8] sm:$0xff] %vm16_vm0, %v668_v31  ;;  %v815_v39 = vadd.f32 %v814_v36, %v813_v33  ;;  %v863_v40 = vadd.f32 %v862_v38, %v861_v34  ;;  %v816_v41 = vpop.f32.mrb[10].mxu0  ;;  %v864_v42 = vpop.f32.mrb[10].mxu1  ;;  %v74_v29 = vld [vmem:[#allocation2 + $0xc0] sm:$0xff] }
 0x108   :  { %716 = vst.msk [vmem:[%s1332_s2 + $0x88] sm:$0xff] %vm16_vm0, %v684_v32  ;;  %v817_v44 = vpop.f32.mrb[11].mxu0  ;;  %v865_v46 = vpop.f32.mrb[11].mxu1 }
 0x109   :  { %v571_v47 = vadd.f32 %v815_v39, %v54_v35  ;;  %v587_v48 = vadd.f32 %v863_v40, %v70_v37  ;;  %v818_v49 = vadd.f32 %v817_v44, %v816_v41  ;;  %v866_v50 = vadd.f32 %v865_v46, %v864_v42  ;;  %v59_v35 = vld [vmem:[#allocation2 + $0x48] sm:$0xff] }
 0x10a   :  { %v637_v51 = vld [vmem:[#allocation2 + $0x10] sm:$0xff]  ;;  %v75_v37 = vld [vmem:[#allocation2 + $0xc8] sm:$0xff] }
 0x10b   :  { %v653_v52 = vld [vmem:[#allocation2 + $0x90] sm:$0xff]  ;;  %v669_v53 = vmax.f32 %v637_v51, 0.0  ;;  %604 = vst.msk [vmem:[#allocation2 + $0x20] sm:$0xff] %vm16_vm0, %v571_v47  ;;  %620 = vst.msk [vmem:[#allocation2 + $0xa0] sm:$0xff] %vm16_vm0, %v587_v48  ;;  %v572_v55 = vadd.f32 %v818_v49, %v55_v43  ;;  %v588_v56 = vadd.f32 %v866_v50, %v71_v45 }
 0x10c   :  { %v685_v54 = vmax.f32 %v653_v52, 0.0  ;;  %v638_v57 = vld [vmem:[#allocation2 + $0x18] sm:$0xff] }
 0x10d   :  { %v654_v58 = vld [vmem:[#allocation2 + $0x98] sm:$0xff]  ;;  %701 = vst.msk [vmem:[%s1332_s2 + $0x10] sm:$0xff] %vm16_vm0, %v669_v53  ;;  %v670_v59 = vmax.f32 %v638_v57, 0.0  ;;  %605 = vst.msk [vmem:[#allocation2 + $0x28] sm:$0xff] %vm16_vm0, %v572_v55  ;;  %v819_v61 = vpop.f32.mrb[12].mxu0  ;;  %v867_v62 = vpop.f32.mrb[12].mxu1 }
 0x10e   :  { %717 = vst.msk [vmem:[%s1332_s2 + $0x90] sm:$0xff] %vm16_vm0, %v685_v54  ;;  %v686_v60 = vmax.f32 %v654_v58, 0.0  ;;  %621 = vst.msk [vmem:[#allocation2 + $0xa8] sm:$0xff] %vm16_vm0, %v588_v56  ;;  %v820_v0 = vpop.f32.mrb[13].mxu0  ;;  %v868_v2 = vpop.f32.mrb[13].mxu1  ;;  %v60_v55 = vld [vmem:[#allocation2 + $0x50] sm:$0xff] }
 0x10f   :  { %702 = vst.msk [vmem:[%s1332_s2 + $0x18] sm:$0xff] %vm16_vm0, %v670_v59  ;;  %v821_v3 = vadd.f32 %v820_v0, %v819_v61  ;;  %v869_v4 = vadd.f32 %v868_v2, %v867_v62  ;;  %v822_v5 = vpop.f32.mrb[14].mxu0  ;;  %v870_v6 = vpop.f32.mrb[14].mxu1  ;;  %v76_v57 = vld [vmem:[#allocation2 + $0xd0] sm:$0xff] }
 0x110   :  { %718 = vst.msk [vmem:[%s1332_s2 + $0x98] sm:$0xff] %vm16_vm0, %v686_v60  ;;  %v823_v8 = vpop.f32.mrb[15].mxu0  ;;  %v871_v10 = vpop.f32.mrb[15].mxu1 }
 0x111   :  { %v573_v11 = vadd.f32 %v821_v3, %v56_v63  ;;  %v589_v12 = vadd.f32 %v869_v4, %v72_v1  ;;  %v824_v13 = vadd.f32 %v823_v8, %v822_v5  ;;  %v872_v14 = vadd.f32 %v871_v10, %v870_v6  ;;  %v61_v63 = vld [vmem:[#allocation2 + $0x58] sm:$0xff] }
 0x112   :  { %v639_v15 = vld [vmem:[#allocation2 + $0x20] sm:$0xff]  ;;  %v77_v1 = vld [vmem:[#allocation2 + $0xd8] sm:$0xff] }
 0x113   :  { %v655_v16 = vld [vmem:[#allocation2 + $0xa0] sm:$0xff]  ;;  %v671_v17 = vmax.f32 %v639_v15, 0.0  ;;  %606 = vst.msk [vmem:[#allocation2 + $0x30] sm:$0xff] %vm16_vm0, %v573_v11  ;;  %622 = vst.msk [vmem:[#allocation2 + $0xb0] sm:$0xff] %vm16_vm0, %v589_v12  ;;  %v574_v19 = vadd.f32 %v824_v13, %v57_v7  ;;  %v590_v20 = vadd.f32 %v872_v14, %v73_v9 }
 0x114   :  { %v687_v18 = vmax.f32 %v655_v16, 0.0  ;;  %v640_v21 = vld [vmem:[#allocation2 + $0x28] sm:$0xff] }
 0x115   :  { %v656_v22 = vld [vmem:[#allocation2 + $0xa8] sm:$0xff]  ;;  %703 = vst.msk [vmem:[%s1332_s2 + $0x20] sm:$0xff] %vm16_vm0, %v671_v17  ;;  %v672_v23 = vmax.f32 %v640_v21, 0.0  ;;  %607 = vst.msk [vmem:[#allocation2 + $0x38] sm:$0xff] %vm16_vm0, %v574_v19  ;;  %v825_v25 = vpop.f32.mrb[16].mxu0  ;;  %v873_v26 = vpop.f32.mrb[16].mxu1 }
 0x116   :  { %719 = vst.msk [vmem:[%s1332_s2 + $0xa0] sm:$0xff] %vm16_vm0, %v687_v18  ;;  %v688_v24 = vmax.f32 %v656_v22, 0.0  ;;  %623 = vst.msk [vmem:[#allocation2 + $0xb8] sm:$0xff] %vm16_vm0, %v590_v20  ;;  %v826_v28 = vpop.f32.mrb[17].mxu0  ;;  %v874_v30 = vpop.f32.mrb[17].mxu1  ;;  %v62_v19 = vld [vmem:[#allocation2 + $0x60] sm:$0xff] }
 0x117   :  { %704 = vst.msk [vmem:[%s1332_s2 + $0x28] sm:$0xff] %vm16_vm0, %v672_v23  ;;  %v827_v31 = vadd.f32 %v826_v28, %v825_v25  ;;  %v875_v32 = vadd.f32 %v874_v30, %v873_v26  ;;  %v828_v33 = vpop.f32.mrb[18].mxu0  ;;  %v876_v34 = vpop.f32.mrb[18].mxu1  ;;  %v78_v21 = vld [vmem:[#allocation2 + $0xe0] sm:$0xff] }
 0x118   :  { %720 = vst.msk [vmem:[%s1332_s2 + $0xa8] sm:$0xff] %vm16_vm0, %v688_v24  ;;  %v829_v36 = vpop.f32.mrb[19].mxu0  ;;  %v877_v38 = vpop.f32.mrb[19].mxu1 }
 0x119   :  { %v575_v39 = vadd.f32 %v827_v31, %v58_v27  ;;  %v591_v40 = vadd.f32 %v875_v32, %v74_v29  ;;  %v830_v41 = vadd.f32 %v829_v36, %v828_v33  ;;  %v878_v42 = vadd.f32 %v877_v38, %v876_v34  ;;  %v63_v27 = vld [vmem:[#allocation2 + $0x68] sm:$0xff] }
 0x11a   :  { %v641_v43 = vld [vmem:[#allocation2 + $0x30] sm:$0xff]  ;;  %v79_v29 = vld [vmem:[#allocation2 + $0xe8] sm:$0xff] }
 0x11b   :  { %v657_v44 = vld [vmem:[#allocation2 + $0xb0] sm:$0xff]  ;;  %v673_v45 = vmax.f32 %v641_v43, 0.0  ;;  %608 = vst.msk [vmem:[#allocation2 + $0x40] sm:$0xff] %vm16_vm0, %v575_v39  ;;  %624 = vst.msk [vmem:[#allocation2 + $0xc0] sm:$0xff] %vm16_vm0, %v591_v40  ;;  %v576_v47 = vadd.f32 %v830_v41, %v59_v35  ;;  %v592_v48 = vadd.f32 %v878_v42, %v75_v37 }
 0x11c   :  { %v689_v46 = vmax.f32 %v657_v44, 0.0  ;;  %v642_v49 = vld [vmem:[#allocation2 + $0x38] sm:$0xff] }
 0x11d   :  { %v658_v50 = vld [vmem:[#allocation2 + $0xb8] sm:$0xff]  ;;  %705 = vst.msk [vmem:[%s1332_s2 + $0x30] sm:$0xff] %vm16_vm0, %v673_v45  ;;  %v674_v51 = vmax.f32 %v642_v49, 0.0  ;;  %609 = vst.msk [vmem:[#allocation2 + $0x48] sm:$0xff] %vm16_vm0, %v576_v47  ;;  %v831_v53 = vpop.f32.mrb[20].mxu0  ;;  %v879_v54 = vpop.f32.mrb[20].mxu1 }
 0x11e   :  { %721 = vst.msk [vmem:[%s1332_s2 + $0xb0] sm:$0xff] %vm16_vm0, %v689_v46  ;;  %v690_v52 = vmax.f32 %v658_v50, 0.0  ;;  %625 = vst.msk [vmem:[#allocation2 + $0xc8] sm:$0xff] %vm16_vm0, %v592_v48  ;;  %v832_v56 = vpop.f32.mrb[21].mxu0  ;;  %v880_v58 = vpop.f32.mrb[21].mxu1  ;;  %v64_v47 = vld [vmem:[#allocation2 + $0x70] sm:$0xff] }
 0x11f   :  { %706 = vst.msk [vmem:[%s1332_s2 + $0x38] sm:$0xff] %vm16_vm0, %v674_v51  ;;  %v833_v59 = vadd.f32 %v832_v56, %v831_v53  ;;  %v881_v60 = vadd.f32 %v880_v58, %v879_v54  ;;  %v834_v61 = vpop.f32.mrb[22].mxu0  ;;  %v882_v62 = vpop.f32.mrb[22].mxu1  ;;  %v80_v49 = vld [vmem:[#allocation2 + $0xf0] sm:$0xff] }
 0x120   :  { %722 = vst.msk [vmem:[%s1332_s2 + $0xb8] sm:$0xff] %vm16_vm0, %v690_v52  ;;  %v835_v0 = vpop.f32.mrb[23].mxu0  ;;  %v883_v2 = vpop.f32.mrb[23].mxu1 }
 0x121   :  { %v577_v3 = vadd.f32 %v833_v59, %v60_v55  ;;  %v593_v4 = vadd.f32 %v881_v60, %v76_v57  ;;  %v836_v5 = vadd.f32 %v835_v0, %v834_v61  ;;  %v884_v6 = vadd.f32 %v883_v2, %v882_v62  ;;  %v65_v55 = vld [vmem:[#allocation2 + $0x78] sm:$0xff] }
 0x122   :  { %v643_v7 = vld [vmem:[#allocation2 + $0x40] sm:$0xff]  ;;  %v81_v57 = vld [vmem:[#allocation2 + $0xf8] sm:$0xff] }
 0x123   :  { %v659_v8 = vld [vmem:[#allocation2 + $0xc0] sm:$0xff]  ;;  %v675_v9 = vmax.f32 %v643_v7, 0.0  ;;  %610 = vst.msk [vmem:[#allocation2 + $0x50] sm:$0xff] %vm16_vm0, %v577_v3  ;;  %626 = vst.msk [vmem:[#allocation2 + $0xd0] sm:$0xff] %vm16_vm0, %v593_v4  ;;  %v578_v11 = vadd.f32 %v836_v5, %v61_v63  ;;  %v594_v12 = vadd.f32 %v884_v6, %v77_v1 }
 0x124   :  { %v691_v10 = vmax.f32 %v659_v8, 0.0  ;;  %v644_v13 = vld [vmem:[#allocation2 + $0x48] sm:$0xff] }
 0x125   :  { %v660_v14 = vld [vmem:[#allocation2 + $0xc8] sm:$0xff]  ;;  %707 = vst.msk [vmem:[%s1332_s2 + $0x40] sm:$0xff] %vm16_vm0, %v675_v9  ;;  %v676_v15 = vmax.f32 %v644_v13, 0.0  ;;  %611 = vst.msk [vmem:[#allocation2 + $0x58] sm:$0xff] %vm16_vm0, %v578_v11  ;;  %v837_v17 = vpop.f32.mrb[24].mxu0  ;;  %v885_v18 = vpop.f32.mrb[24].mxu1 }
 0x126   :  { %723 = vst.msk [vmem:[%s1332_s2 + $0xc0] sm:$0xff] %vm16_vm0, %v691_v10  ;;  %v692_v16 = vmax.f32 %v660_v14, 0.0  ;;  %627 = vst.msk [vmem:[#allocation2 + $0xd8] sm:$0xff] %vm16_vm0, %v594_v12  ;;  %v838_v20 = vpop.f32.mrb[25].mxu0  ;;  %v886_v22 = vpop.f32.mrb[25].mxu1 }
 0x127   :  { %708 = vst.msk [vmem:[%s1332_s2 + $0x48] sm:$0xff] %vm16_vm0, %v676_v15  ;;  %v839_v23 = vadd.f32 %v838_v20, %v837_v17  ;;  %v887_v24 = vadd.f32 %v886_v22, %v885_v18  ;;  %v840_v25 = vpop.f32.mrb[26].mxu0  ;;  %v888_v26 = vpop.f32.mrb[26].mxu1 }
 0x128   :  { %724 = vst.msk [vmem:[%s1332_s2 + $0xc8] sm:$0xff] %vm16_vm0, %v692_v16  ;;  %v841_v28 = vpop.f32.mrb[27].mxu0  ;;  %v889_v30 = vpop.f32.mrb[27].mxu1 }
 0x129   :  { %v579_v31 = vadd.f32 %v839_v23, %v62_v19  ;;  %v595_v32 = vadd.f32 %v887_v24, %v78_v21  ;;  %v842_v33 = vadd.f32 %v841_v28, %v840_v25  ;;  %v890_v34 = vadd.f32 %v889_v30, %v888_v26 }
 0x12a   :  { %v645_v35 = vld [vmem:[#allocation2 + $0x50] sm:$0xff] }
 0x12b   :  { %v661_v36 = vld [vmem:[#allocation2 + $0xd0] sm:$0xff]  ;;  %v677_v37 = vmax.f32 %v645_v35, 0.0  ;;  %612 = vst.msk [vmem:[#allocation2 + $0x60] sm:$0xff] %vm16_vm0, %v579_v31  ;;  %628 = vst.msk [vmem:[#allocation2 + $0xe0] sm:$0xff] %vm16_vm0, %v595_v32  ;;  %v580_v39 = vadd.f32 %v842_v33, %v63_v27  ;;  %v596_v40 = vadd.f32 %v890_v34, %v79_v29 }
 0x12c   :  { %v693_v38 = vmax.f32 %v661_v36, 0.0  ;;  %v646_v41 = vld [vmem:[#allocation2 + $0x58] sm:$0xff] }
 0x12d   :  { %v662_v42 = vld [vmem:[#allocation2 + $0xd8] sm:$0xff]  ;;  %709 = vst.msk [vmem:[%s1332_s2 + $0x50] sm:$0xff] %vm16_vm0, %v677_v37  ;;  %v678_v43 = vmax.f32 %v646_v41, 0.0  ;;  %613 = vst.msk [vmem:[#allocation2 + $0x68] sm:$0xff] %vm16_vm0, %v580_v39  ;;  %v843_v45 = vpop.f32.mrb[28].mxu0  ;;  %v891_v46 = vpop.f32.mrb[28].mxu1 }
 0x12e   :  { %725 = vst.msk [vmem:[%s1332_s2 + $0xd0] sm:$0xff] %vm16_vm0, %v693_v38  ;;  %v694_v44 = vmax.f32 %v662_v42, 0.0  ;;  %629 = vst.msk [vmem:[#allocation2 + $0xe8] sm:$0xff] %vm16_vm0, %v596_v40  ;;  %v844_v48 = vpop.f32.mrb[29].mxu0  ;;  %v892_v50 = vpop.f32.mrb[29].mxu1 }
 0x12f   :  { %710 = vst.msk [vmem:[%s1332_s2 + $0x58] sm:$0xff] %vm16_vm0, %v678_v43  ;;  %v845_v51 = vadd.f32 %v844_v48, %v843_v45  ;;  %v893_v52 = vadd.f32 %v892_v50, %v891_v46  ;;  %v846_v53 = vpop.f32.mrb[30].mxu0  ;;  %v894_v54 = vpop.f32.mrb[30].mxu1 }
 0x130   :  { %726 = vst.msk [vmem:[%s1332_s2 + $0xd8] sm:$0xff] %vm16_vm0, %v694_v44  ;;  %v847_v56 = vpop.f32.mrb[31].mxu0  ;;  %v895_v58 = vpop.f32.mrb[31].mxu1 }
 0x131   :  { %v581_v59 = vadd.f32 %v845_v51, %v64_v47  ;;  %v597_v60 = vadd.f32 %v893_v52, %v80_v49  ;;  %v848_v61 = vadd.f32 %v847_v56, %v846_v53  ;;  %v896_v62 = vadd.f32 %v895_v58, %v894_v54 }
 0x132   :  { %v647_v63 = vld [vmem:[#allocation2 + $0x60] sm:$0xff] }
 0x133   :  { %v663_v0 = vld [vmem:[#allocation2 + $0xe0] sm:$0xff]  ;;  %v679_v1 = vmax.f32 %v647_v63, 0.0  ;;  %614 = vst.msk [vmem:[#allocation2 + $0x70] sm:$0xff] %vm16_vm0, %v581_v59  ;;  %630 = vst.msk [vmem:[#allocation2 + $0xf0] sm:$0xff] %vm16_vm0, %v597_v60  ;;  %v582_v3 = vadd.f32 %v848_v61, %v65_v55  ;;  %v598_v4 = vadd.f32 %v896_v62, %v81_v57 }
 0x134   :  { %v695_v2 = vmax.f32 %v663_v0, 0.0  ;;  %v648_v5 = vld [vmem:[#allocation2 + $0x68] sm:$0xff] }
 0x135   :  { %v664_v6 = vld [vmem:[#allocation2 + $0xe8] sm:$0xff]  ;;  %711 = vst.msk [vmem:[%s1332_s2 + $0x60] sm:$0xff] %vm16_vm0, %v679_v1  ;;  %v680_v7 = vmax.f32 %v648_v5, 0.0  ;;  %615 = vst.msk [vmem:[#allocation2 + $0x78] sm:$0xff] %vm16_vm0, %v582_v3 }
 0x136   :  { %727 = vst.msk [vmem:[%s1332_s2 + $0xe0] sm:$0xff] %vm16_vm0, %v695_v2  ;;  %v696_v8 = vmax.f32 %v664_v6, 0.0  ;;  %631 = vst.msk [vmem:[#allocation2 + $0xf8] sm:$0xff] %vm16_vm0, %v598_v4 }
 0x137   :  { %712 = vst.msk [vmem:[%s1332_s2 + $0x68] sm:$0xff] %vm16_vm0, %v680_v7 }
 0x138   :  { %728 = vst.msk [vmem:[%s1332_s2 + $0xe8] sm:$0xff] %vm16_vm0, %v696_v8 }
 0x13a   :  { %v649_v9 = vld [vmem:[#allocation2 + $0x70] sm:$0xff] }
 0x13b   :  { %v665_v10 = vld [vmem:[#allocation2 + $0xf0] sm:$0xff]  ;;  %v681_v11 = vmax.f32 %v649_v9, 0.0 }
 0x13c   :  { %v697_v12 = vmax.f32 %v665_v10, 0.0  ;;  %v650_v13 = vld [vmem:[#allocation2 + $0x78] sm:$0xff] }
 0x13d   :  { %v666_v14 = vld [vmem:[#allocation2 + $0xf8] sm:$0xff]  ;;  %713 = vst.msk [vmem:[%s1332_s2 + $0x70] sm:$0xff] %vm16_vm0, %v681_v11  ;;  %v682_v15 = vmax.f32 %v650_v13, 0.0 }
 0x13e   :  { %729 = vst.msk [vmem:[%s1332_s2 + $0xf0] sm:$0xff] %vm16_vm0, %v697_v12  ;;  %v698_v16 = vmax.f32 %v666_v14, 0.0 }
 0x13f   :  { %714 = vst.msk [vmem:[%s1332_s2 + $0x78] sm:$0xff] %vm16_vm0, %v682_v15 }
 0x140   :  { %730 = vst.msk [vmem:[%s1332_s2 + $0xf8] sm:$0xff] %vm16_vm0, %v698_v16 }

// kernel: dominant_forward.15
= control target key start
LH: loop header
LB: loop body
LE: loop exit
PB: predicated region body
PF: predicated region fallthrough
CT: control target
= control target key end

     0   :  { %v1342_v2 = vmov 0   ;;  %vm137_vm0 = vcmask 130048   ;;  %s1608_s0 = inlined_call_operand.vmem [shape: bf16[256,16], index: 0, kind: input, shape index: {}]   ;;  %s1609_s1 = inlined_call_operand.vmem [shape: bf16[16,256], index: 1, kind: input, shape index: {}]   ;;  %s1610_s2 = inlined_call_operand.hbm [shape: bf16[256,256], index: 2, kind: output, shape index: {}]  }
   0x1   :  { %v1043_v0 = vld [vmem:[%s1609_s1 + $0x4] ss:$8 sps:$4 sm:$0xff]   ;;  %v1045_v1 = vld [vmem:[%s1609_s1] ss:$8 sps:$4 sm:$0xff]   ;;  %218 = vmatprep.mubr.bf16.mxu0 %v1342_v2  ;;  %298 = vmatprep.mubr.bf16.mxu1 %v1342_v2 }
   0x2   :  { %186 = vmatprep.subr.bf16.mxu0 %v1043_v0  ;;  %1037 = vmatprep.subr.bf16.mxu1 %v1043_v0  ;;  %v1046_v3 = vld [vmem:[%s1608_s0] sm:$0xff]   ;;  %v1048_v5 = vld [vmem:[%s1608_s0 + $0x8] sm:$0xff]  }
   0x3   :  { %187 = vmatpush1.bf16.msra.mxu0 %v1045_v1  ;;  %1038 = vmatpush1.bf16.msra.mxu1 %v1045_v1  ;;  %v1047_v4 = vld [vmem:[%s1608_s0 + $0x40] sm:$0xff]   ;;  %v1049_v6 = vld [vmem:[%s1608_s0 + $0x48] sm:$0xff]  }
   0x6   :  { %957 = vmatmul.mubr.msk.bf16.vlgmr.msra.gmra.mrb[0].mxu0 %vm137_vm0, %v1046_v3  ;;  %965 = vmatmul.mubr.msk.bf16.vlgmr.msra.gmra.mrb[0].mxu1 %vm137_vm0, %v1047_v4 }
   0x7   :  { %228 = vmatprep.mubr.bf16.mxu0 %v1342_v2  ;;  %308 = vmatprep.mubr.bf16.mxu1 %v1342_v2 }
   0xe   :  { %958 = vmatmul.mubr.msk.bf16.gmra.mrb[4].mxu0 %vm137_vm0, %v1048_v5  ;;  %966 = vmatmul.mubr.msk.bf16.gmra.mrb[4].mxu1 %vm137_vm0, %v1049_v6 }
   0xf   :  { %238 = vmatprep.mubr.bf16.mxu0 %v1342_v2  ;;  %318 = vmatprep.mubr.bf16.mxu1 %v1342_v2 }
  0x10   :  { %7 = vsyncpa [#allocation3], 0  ;;  %v1050_v7 = vld [vmem:[%s1608_s0 + $0x10] sm:$0xff]   ;;  %v1052_v9 = vld [vmem:[%s1608_s0 + $0x18] sm:$0xff]  }
  0x11   :  { %v1051_v8 = vld [vmem:[%s1608_s0 + $0x50] sm:$0xff]   ;;  %v1053_v10 = vld [vmem:[%s1608_s0 + $0x58] sm:$0xff]   ;;  %v1054_v11 = vld [vmem:[%s1608_s0 + $0x20] sm:$0xff]  }
  0x12   :  { %v1055_v12 = vld [vmem:[%s1608_s0 + $0x60] sm:$0xff]   ;;  %v1056_v13 = vld [vmem:[%s1608_s0 + $0x28] sm:$0xff]   ;;  %v1058_v15 = vld [vmem:[%s1608_s0 + $0x30] sm:$0xff]  }
  0x13   :  { %v1057_v14 = vld [vmem:[%s1608_s0 + $0x68] sm:$0xff]   ;;  %v1059_v16 = vld [vmem:[%s1608_s0 + $0x70] sm:$0xff]   ;;  %v1060_v17 = vld [vmem:[%s1608_s0 + $0x38] sm:$0xff]  }
  0x14   :  { %v1061_v18 = vld [vmem:[%s1608_s0 + $0x78] sm:$0xff]   ;;  %s1343_s0 = smov [#allocation2]  }
  0x15   :  { %s928_s16 = sshll.u32 %s1343_s0, 4  ;;  %s929_s16 = int_to_ptr.vmem [resolvable:$true] %s928_s16 }
  0x16   :  { %959 = vmatmul.mubr.msk.bf16.gmra.mrb[8].mxu0 %vm137_vm0, %v1050_v7  ;;  %967 = vmatmul.mubr.msk.bf16.gmra.mrb[8].mxu1 %vm137_vm0, %v1051_v8  ;;  %s1318_s1 = scalar_lea.vmem %s929_s16, 4096  ;;  %p1323_p1 = scmp.lt.s32.totalorder %s929_s16, %s929_s16 }
  0x17   :  { %248 = vmatprep.mubr.bf16.mxu0 %v1342_v2  ;;  %328 = vmatprep.mubr.bf16.mxu1 %v1342_v2  ;;  %p1319_p0 = scmp.ne.s32.totalorder %s929_s16, %s1318_s1  ;;  %p1324_p2 = scmp.lt.s32.totalorder %s1318_s1, %s1318_s1 }
  0x19   :  { %p1325_p3 = por %p1324_p2, %p1323_p1 }
  0x1b   :  { %p1326_p4 = pnand %p1325_p3, %p1319_p0 }
  0x1e   :  { %960 = vmatmul.mubr.msk.bf16.gmra.mrb[12].mxu0 %vm137_vm0, %v1052_v9  ;;  %968 = vmatmul.mubr.msk.bf16.gmra.mrb[12].mxu1 %vm137_vm0, %v1053_v10 }
  0x1f   :  { %258 = vmatprep.mubr.bf16.mxu0 %v1342_v2  ;;  %338 = vmatprep.mubr.bf16.mxu1 %v1342_v2 }
  0x26   :  { %961 = vmatmul.mubr.msk.bf16.gmra.mrb[16].mxu0 %vm137_vm0, %v1054_v11  ;;  %969 = vmatmul.mubr.msk.bf16.gmra.mrb[16].mxu1 %vm137_vm0, %v1055_v12 }
  0x27   :  { %268 = vmatprep.mubr.bf16.mxu0 %v1342_v2  ;;  %348 = vmatprep.mubr.bf16.mxu1 %v1342_v2 }
  0x2e   :  { %962 = vmatmul.mubr.msk.bf16.gmra.mrb[20].mxu0 %vm137_vm0, %v1056_v13  ;;  %970 = vmatmul.mubr.msk.bf16.gmra.mrb[20].mxu1 %vm137_vm0, %v1057_v14 }
  0x2f   :  { %278 = vmatprep.mubr.bf16.mxu0 %v1342_v2  ;;  %358 = vmatprep.mubr.bf16.mxu1 %v1342_v2 }
  0x36   :  { %963 = vmatmul.mubr.msk.bf16.gmra.mrb[24].mxu0 %vm137_vm0, %v1058_v15  ;;  %971 = vmatmul.mubr.msk.bf16.gmra.mrb[24].mxu1 %vm137_vm0, %v1059_v16 }
  0x37   :  { %288 = vmatprep.mubr.bf16.mxu0 %v1342_v2  ;;  %368 = vmatprep.mubr.bf16.mxu1 %v1342_v2 }
  0x3e   :  { %964 = vmatmul.mubr.msk.bf16.gmra.mrb[28].mxu0 %vm137_vm0, %v1060_v17  ;;  %972 = vmatmul.mubr.msk.bf16.gmra.mrb[28].mxu1 %vm137_vm0, %v1061_v18 }
  0xd9   :  { %v220_v19 = vpop.f32.mrb[0].mxu0  ;;  %v300_v20 = vpop.f32.mrb[0].mxu1 }
  0xda   :  { %v379_v21 = vsub.f32 0.0, %v220_v19  ;;  %v411_v22 = vsub.f32 0.0, %v300_v20  ;;  %v222_v23 = vpop.f32.mrb[1].mxu0  ;;  %v302_v24 = vpop.f32.mrb[1].mxu1 }
  0xdb   :  { %v380_v25 = vsub.f32 0.0, %v222_v23  ;;  %v412_v26 = vsub.f32 0.0, %v302_v24  ;;  %v224_v27 = vpop.f32.mrb[2].mxu0  ;;  %v304_v28 = vpop.f32.mrb[2].mxu1 }
  0xdc   :  { %v443_v29 = vmul.f32 1.442695, %v379_v21  ;;  %v507_v30 = vmul.f32 1.442695, %v411_v22  ;;  %v381_v31 = vsub.f32 0.0, %v224_v27  ;;  %v413_v32 = vsub.f32 0.0, %v304_v28 }
  0xdd   :  { %v445_v33 = vmul.f32 1.442695, %v380_v25  ;;  %v509_v34 = vmul.f32 1.442695, %v412_v26  ;;  %v226_v35 = vpop.f32.mrb[3].mxu0  ;;  %v306_v36 = vpop.f32.mrb[3].mxu1 }
  0xde   :  { %1062 = vpow2.f32 %v443_v29  ;;  %v447_v37 = vmul.f32 1.442695, %v381_v31  ;;  %v382_v38 = vsub.f32 0.0, %v226_v35  ;;  %v511_v39 = vmul.f32 1.442695, %v413_v32 }
  0xdf   :  { %1064 = vpow2.f32 %v507_v30  ;;  %v414_v40 = vsub.f32 0.0, %v306_v36 }
  0xe0   :  { %1066 = vpow2.f32 %v445_v33  ;;  %v449_v41 = vmul.f32 1.442695, %v382_v38 }
  0xe1   :  { %1068 = vpow2.f32 %v509_v34  ;;  %v513_v42 = vmul.f32 1.442695, %v414_v40  ;;  %v230_v43 = vpop.f32.mrb[4].mxu0  ;;  %v310_v44 = vpop.f32.mrb[4].mxu1 }
  0xe2   :  { %1070 = vpow2.f32 %v447_v37  ;;  %v383_v45 = vsub.f32 0.0, %v230_v43  ;;  %v415_v46 = vsub.f32 0.0, %v310_v44  ;;  %v232_v47 = vpop.f32.mrb[5].mxu0  ;;  %v312_v48 = vpop.f32.mrb[5].mxu1 }
  0xe3   :  { %1072 = vpow2.f32 %v511_v39  ;;  %v384_v49 = vsub.f32 0.0, %v232_v47  ;;  %v416_v50 = vsub.f32 0.0, %v312_v48  ;;  %v234_v51 = vpop.f32.mrb[6].mxu0  ;;  %v1431_v52 = vpop.f32.mrb[6].mxu1 }
  0xe4   :  { %1074 = vpow2.f32 %v449_v41  ;;  %v451_v53 = vmul.f32 1.442695, %v383_v45  ;;  %v515_v54 = vmul.f32 1.442695, %v415_v46  ;;  %v385_v55 = vsub.f32 0.0, %v234_v51  ;;  %v1433_v56 = vpop.f32.mrb[7].mxu0 }
  0xe5   :  { %1076 = vpow2.f32 %v513_v42  ;;  %v453_v57 = vmul.f32 1.442695, %v384_v49  ;;  %v517_v58 = vmul.f32 1.442695, %v416_v50  ;;  %v1435_v59 = vpop.f32.mrb[7].mxu1  ;;  %v417_v22 = vsub.f32 0.0, %v1431_v52 }
  0xe6   :  { %1078 = vpow2.f32 %v451_v53  ;;  %v455_v60 = vmul.f32 1.442695, %v385_v55  ;;  %v386_v25 = vsub.f32 0.0, %v1433_v56  ;;  %v418_v29 = vsub.f32 0.0, %v1435_v59 }
  0xe7   :  { %1080 = vpow2.f32 %v515_v54  ;;  %v519_v39 = vmul.f32 1.442695, %v417_v22 }
  0xe8   :  { %v1063_v61 = vpop.eup %1062  ;;  %1082 = vpow2.f32 %v453_v57  ;;  %v457_v45 = vmul.f32 1.442695, %v386_v25  ;;  %v521_v49 = vmul.f32 1.442695, %v418_v29 }
  0xe9   :  { %v1065_v62 = vpop.eup %1064  ;;  %v571_v63 = vadd.f32 1.0, %v1063_v61  ;;  %1084 = vpow2.f32 %v517_v58  ;;  %v1437_v0 = vpop.f32.mrb[8].mxu0 }
  0xea   :  { %v1439_v1 = vpop.f32.mrb[8].mxu1  ;;  %v1067_v2 = vpop.eup %1066  ;;  %v603_v3 = vadd.f32 1.0, %v1065_v62  ;;  %1086 = vpow2.f32 %v455_v60  ;;  %v387_v34 = vsub.f32 0.0, %v1437_v0 }
  0xeb   :  { %v1441_v4 = vpop.f32.mrb[9].mxu0  ;;  %v1443_v5 = vpop.f32.mrb[9].mxu1  ;;  %1088 = vrcp.f32 %v571_v63  ;;  %v572_v7 = vadd.f32 1.0, %v1067_v2  ;;  %v419_v40 = vsub.f32 0.0, %v1439_v1 }
  0xec   :  { %v1069_v6 = vpop.eup %1068  ;;  %v1445_v8 = vpop.f32.mrb[10].mxu0  ;;  %1090 = vrcp.f32 %v603_v3  ;;  %v388_v46 = vsub.f32 0.0, %v1441_v4  ;;  %v420_v50 = vsub.f32 0.0, %v1443_v5  ;;  %v459_v52 = vmul.f32 1.442695, %v387_v34 }
  0xed   :  { %v1447_v9 = vpop.f32.mrb[10].mxu1  ;;  %v1071_v10 = vpop.eup %1070  ;;  %v604_v11 = vadd.f32 1.0, %v1069_v6  ;;  %1092 = vrcp.f32 %v572_v7  ;;  %v389_v53 = vsub.f32 0.0, %v1445_v8  ;;  %v523_v56 = vmul.f32 1.442695, %v419_v40 }
  0xee   :  { %v1449_v12 = vpop.f32.mrb[11].mxu0  ;;  %v1073_v13 = vpop.eup %1072  ;;  %v573_v14 = vadd.f32 1.0, %v1071_v10  ;;  %v421_v57 = vsub.f32 0.0, %v1447_v9  ;;  %v461_v60 = vmul.f32 1.442695, %v388_v46 }
  0xef   :  { %v1451_v15 = vpop.f32.mrb[11].mxu1  ;;  %v1075_v16 = vpop.eup %1074  ;;  %1094 = vrcp.f32 %v604_v11  ;;  %v605_v17 = vadd.f32 1.0, %v1073_v13  ;;  %v390_v61 = vsub.f32 0.0, %v1449_v12  ;;  %v525_v1 = vmul.f32 1.442695, %v420_v50 }
  0xf0   :  { %v1077_v18 = vpop.eup %1076  ;;  %1096 = vrcp.f32 %v573_v14  ;;  %v574_v19 = vadd.f32 1.0, %v1075_v16  ;;  %v422_v2 = vsub.f32 0.0, %v1451_v15  ;;  %v463_v6 = vmul.f32 1.442695, %v389_v53 }
  0xf1   :  { %v1079_v20 = vpop.eup %1078  ;;  %1098 = vrcp.f32 %v605_v17  ;;  %v606_v21 = vadd.f32 1.0, %v1077_v18  ;;  %v1455_v26 = vpop.f32.mrb[12].mxu0  ;;  %v527_v12 = vmul.f32 1.442695, %v421_v57  ;;  %v465_v18 = vmul.f32 1.442695, %v390_v61 }
  0xf2   :  { %v1081_v23 = vpop.eup %1080  ;;  %1100 = vrcp.f32 %v574_v19  ;;  %v575_v24 = vadd.f32 1.0, %v1079_v20  ;;  %v1458_v30 = vpop.f32.mrb[12].mxu1  ;;  %v391_v7 = vsub.f32 0.0, %v1455_v26  ;;  %v529_v20 = vmul.f32 1.442695, %v422_v2 }
  0xf3   :  { %v1083_v27 = vpop.eup %1082  ;;  %1102 = vrcp.f32 %v606_v21  ;;  %v607_v28 = vadd.f32 1.0, %v1081_v23  ;;  %v1460_v31 = vpop.f32.mrb[13].mxu0  ;;  %v423_v13 = vsub.f32 0.0, %v1458_v30 }
  0xf4   :  { %v1085_v32 = vpop.eup %1084  ;;  %1104 = vrcp.f32 %v575_v24  ;;  %v576_v33 = vadd.f32 1.0, %v1083_v27  ;;  %v1463_v35 = vpop.f32.mrb[13].mxu1  ;;  %v467_v22 = vmul.f32 1.442695, %v391_v7 }
  0xf5   :  { %v1465_v36 = vpop.f32.mrb[14].mxu0  ;;  %v1087_v37 = vpop.eup %1086  ;;  %1106 = vrcp.f32 %v607_v28  ;;  %v608_v38 = vadd.f32 1.0, %v1085_v32  ;;  %v531_v25 = vmul.f32 1.442695, %v423_v13 }
  0xf6   :  { %v1468_v41 = vpop.f32.mrb[14].mxu1  ;;  %v1470_v42 = vpop.f32.mrb[15].mxu0  ;;  %1108 = vrcp.f32 %v576_v33  ;;  %v577_v44 = vadd.f32 1.0, %v1087_v37 }
  0xf7   :  { %v1089_v43 = vpop.eup %1088  ;;  %v1473_v47 = vpop.f32.mrb[15].mxu1  ;;  %1110 = vrcp.f32 %v608_v38 }
  0xf8   :  { %v1091_v48 = vpop.eup %1090  ;;  %1112 = vrcp.f32 %v577_v44 }
  0xf9   :  { %v1093_v51 = vpop.eup %1092  ;;  %1114 = vpow2.f32 %v519_v39  ;;  %v1479_v62 = vpop.f32.mrb[16].mxu0 }
  0xfa   :  { %v1095_v54 = vpop.eup %1094  ;;  %v1005_v55 = vpack.c.bf16 %v1093_v51, %v1089_v43  ;;  %1116 = vpow2.f32 %v457_v45  ;;  %v1481_v63 = vpop.f32.mrb[16].mxu1 }
  0xfb   :  { %v1097_v58 = vpop.eup %1096  ;;  %v1021_v59 = vpack.c.bf16 %v1095_v54, %v1091_v48  ;;  %1118 = vpow2.f32 %v521_v49  ;;  %v1484_v3 = vpop.f32.mrb[17].mxu0 }
  0xfc   :  { %v1099_v0 = vpop.eup %1098  ;;  %891 = vst [vmem:[#allocation2] sm:$0xff] %v1005_v55  ;;  %v1486_v4 = vpop.f32.mrb[17].mxu1  ;;  %1120 = vpow2.f32 %v459_v52 }
  0xfd   :  { %v1101_v5 = vpop.eup %1100  ;;  %907 = vst [vmem:[#allocation2 + $0x80] sm:$0xff] %v1021_v59  ;;  %v1489_v8 = vpop.f32.mrb[18].mxu0  ;;  %1122 = vpow2.f32 %v523_v56 }
  0xfe   :  { %v1491_v9 = vpop.f32.mrb[18].mxu1  ;;  %v1103_v10 = vpop.eup %1102  ;;  %v1006_v11 = vpack.c.bf16 %v1101_v5, %v1097_v58  ;;  %1124 = vpow2.f32 %v461_v60  ;;  %v392_v60 = vsub.f32 0.0, %v1460_v31  ;;  %v424_v5 = vsub.f32 0.0, %v1463_v35 }
  0xff   :  { %v1494_v14 = vpop.f32.mrb[19].mxu0  ;;  %v1496_v15 = vpop.f32.mrb[19].mxu1  ;;  %v1022_v17 = vpack.c.bf16 %v1103_v10, %v1099_v0  ;;  %1126 = vpow2.f32 %v525_v1 }
 0x100   :  { %v1105_v16 = vpop.eup %1104  ;;  %892 = vst [vmem:[#allocation2 + $0x8] sm:$0xff] %v1006_v11  ;;  %1128 = vpow2.f32 %v463_v6 }
 0x101   :  { %v1107_v19 = vpop.eup %1106  ;;  %908 = vst [vmem:[#allocation2 + $0x88] sm:$0xff] %v1022_v17  ;;  %1130 = vpow2.f32 %v527_v12  ;;  %v1500_v28 = vpop.f32.mrb[20].mxu0  ;;  %v393_v12 = vsub.f32 0.0, %v1465_v36 }
 0x102   :  { %v1109_v21 = vpop.eup %1108  ;;  %1132 = vpow2.f32 %v465_v18  ;;  %v1502_v29 = vpop.f32.mrb[20].mxu1  ;;  %v425_v18 = vsub.f32 0.0, %v1468_v41 }
 0x103   :  { %v1111_v23 = vpop.eup %1110  ;;  %v1007_v24 = vpack.c.bf16 %v1109_v21, %v1105_v16  ;;  %1134 = vpow2.f32 %v529_v20  ;;  %v1504_v32 = vpop.f32.mrb[21].mxu0  ;;  %v469_v21 = vmul.f32 1.442695, %v392_v60 }
 0x104   :  { %v1498_v26 = vpop.eup %1112  ;;  %v1023_v27 = vpack.c.bf16 %v1111_v23, %v1107_v19  ;;  %v1506_v33 = vpop.f32.mrb[21].mxu1  ;;  %1136 = vpow2.f32 %v467_v22  ;;  %v394_v22 = vsub.f32 0.0, %v1470_v42 }
 0x105   :  { %v1115_v30 = vpop.eup %1114  ;;  %893 = vst [vmem:[#allocation2 + $0x10] sm:$0xff] %v1007_v24  ;;  %v1508_v38 = vpop.f32.mrb[22].mxu0  ;;  %1138 = vpow2.f32 %v531_v25  ;;  %v533_v24 = vmul.f32 1.442695, %v424_v5  ;;  %v426_v25 = vsub.f32 0.0, %v1473_v47 }
 0x106   :  { %v1117_v34 = vpop.eup %1116  ;;  %909 = vst [vmem:[#allocation2 + $0x90] sm:$0xff] %v1023_v27  ;;  %v609_v37 = vadd.f32 1.0, %v1115_v30  ;;  %v1510_v39 = vpop.f32.mrb[22].mxu1  ;;  %v471_v30 = vmul.f32 1.442695, %v393_v12  ;;  %v398_v12 = vsub.f32 0.0, %v1494_v14 }
 0x107   :  { %v1119_v40 = vpop.eup %1118  ;;  %v578_v43 = vadd.f32 1.0, %v1117_v34  ;;  %v1512_v44 = vpop.f32.mrb[23].mxu0  ;;  %v395_v34 = vsub.f32 0.0, %v1479_v62  ;;  %v473_v47 = vmul.f32 1.442695, %v394_v22 }
 0x108   :  { %v1121_v45 = vpop.eup %1120  ;;  %1140 = vrcp.f32 %v609_v37  ;;  %v610_v46 = vadd.f32 1.0, %v1119_v40  ;;  %v1514_v48 = vpop.f32.mrb[23].mxu1  ;;  %v535_v40 = vmul.f32 1.442695, %v425_v18 }
 0x109   :  { %v1123_v49 = vpop.eup %1122  ;;  %1142 = vrcp.f32 %v578_v43  ;;  %v579_v50 = vadd.f32 1.0, %v1121_v45  ;;  %v1516_v57 = vpop.f32.mrb[24].mxu0  ;;  %v427_v43 = vsub.f32 0.0, %v1481_v63  ;;  %v428_v63 = vsub.f32 0.0, %v1486_v4 }
 0x10a   :  { %v1125_v51 = vpop.eup %1124  ;;  %1144 = vrcp.f32 %v610_v46  ;;  %v611_v52 = vadd.f32 1.0, %v1123_v49  ;;  %v1519_v61 = vpop.f32.mrb[24].mxu1  ;;  %v429_v4 = vsub.f32 0.0, %v1491_v9 }
 0x10b   :  { %v1127_v53 = vpop.eup %1126  ;;  %1146 = vrcp.f32 %v579_v50  ;;  %v580_v54 = vadd.f32 1.0, %v1125_v51  ;;  %v1521_v0 = vpop.f32.mrb[25].mxu0  ;;  %v396_v50 = vsub.f32 0.0, %v1484_v3  ;;  %v397_v3 = vsub.f32 0.0, %v1489_v8 }
 0x10c   :  { %v1129_v55 = vpop.eup %1128  ;;  %1148 = vrcp.f32 %v611_v52  ;;  %v612_v56 = vadd.f32 1.0, %v1127_v53  ;;  %v1524_v6 = vpop.f32.mrb[25].mxu1  ;;  %v541_v8 = vmul.f32 1.442695, %v428_v63 }
 0x10d   :  { %v1131_v58 = vpop.eup %1130  ;;  %1150 = vrcp.f32 %v580_v54  ;;  %v581_v59 = vadd.f32 1.0, %v1129_v55  ;;  %v1526_v7 = vpop.f32.mrb[26].mxu0  ;;  %v479_v18 = vmul.f32 1.442695, %v397_v3 }
 0x10e   :  { %v1133_v1 = vpop.eup %1132  ;;  %1152 = vrcp.f32 %v612_v56  ;;  %v613_v2 = vadd.f32 1.0, %v1131_v58  ;;  %v1529_v13 = vpop.f32.mrb[26].mxu1  ;;  %v475_v56 = vmul.f32 1.442695, %v395_v34 }
 0x10f   :  { %v1135_v10 = vpop.eup %1134  ;;  %1154 = vrcp.f32 %v581_v59  ;;  %v582_v11 = vadd.f32 1.0, %v1133_v1  ;;  %v1531_v31 = vpop.f32.mrb[27].mxu0 }
 0x110   :  { %v1137_v16 = vpop.eup %1136  ;;  %1156 = vrcp.f32 %v613_v2  ;;  %v614_v17 = vadd.f32 1.0, %v1135_v10  ;;  %v1534_v19 = vpop.f32.mrb[27].mxu1  ;;  %v539_v2 = vmul.f32 1.442695, %v427_v43 }
 0x111   :  { %v1139_v35 = vpop.eup %1138  ;;  %1158 = vrcp.f32 %v582_v11  ;;  %v583_v20 = vadd.f32 1.0, %v1137_v16  ;;  %v1541_v45 = vpop.f32.mrb[28].mxu0  ;;  %v477_v11 = vmul.f32 1.442695, %v396_v50 }
 0x112   :  { %v1141_v23 = vpop.eup %1140  ;;  %1160 = vrcp.f32 %v614_v17  ;;  %v615_v36 = vadd.f32 1.0, %v1139_v35  ;;  %v1543_v42 = vpop.f32.mrb[28].mxu1 }
 0x113   :  { %v1143_v27 = vpop.eup %1142  ;;  %1162 = vrcp.f32 %v583_v20  ;;  %v1546_v51 = vpop.f32.mrb[29].mxu0 }
 0x114   :  { %v1145_v41 = vpop.eup %1144  ;;  %v1008_v37 = vpack.c.bf16 %v1143_v27, %v1498_v26  ;;  %1164 = vrcp.f32 %v615_v36  ;;  %v1548_v62 = vpop.f32.mrb[29].mxu1  ;;  %v537_v26 = vmul.f32 1.442695, %v426_v25 }
 0x115   :  { %v1147_v46 = vpop.eup %1146  ;;  %v1024_v49 = vpack.c.bf16 %v1145_v41, %v1141_v23  ;;  %1166 = vpow2.f32 %v469_v21  ;;  %v1551_v53 = vpop.f32.mrb[30].mxu0  ;;  %v543_v21 = vmul.f32 1.442695, %v429_v4  ;;  %v481_v23 = vmul.f32 1.442695, %v398_v12 }
 0x116   :  { %v1149_v52 = vpop.eup %1148  ;;  %894 = vst [vmem:[#allocation2 + $0x18] sm:$0xff] %v1008_v37  ;;  %1168 = vpow2.f32 %v533_v24  ;;  %v1553_v54 = vpop.f32.mrb[30].mxu1  ;;  %v431_v4 = vsub.f32 0.0, %v1502_v29 }
 0x117   :  { %v1151_v55 = vpop.eup %1150  ;;  %910 = vst [vmem:[#allocation2 + $0x98] sm:$0xff] %v1024_v49  ;;  %1170 = vpow2.f32 %v471_v30  ;;  %v1556_v58 = vpop.f32.mrb[31].mxu0 }
 0x118   :  { %v1558_v59 = vpop.f32.mrb[31].mxu1  ;;  %v1153_v60 = vpop.eup %1152  ;;  %v1009_v1 = vpack.c.bf16 %v1151_v55, %v1147_v46  ;;  %1172 = vpow2.f32 %v535_v40  ;;  %v430_v55 = vsub.f32 0.0, %v1496_v15  ;;  %v432_v15 = vsub.f32 0.0, %v1506_v33 }
 0x119   :  { %v1155_v5 = vpop.eup %1154  ;;  %v1025_v10 = vpack.c.bf16 %v1153_v60, %v1149_v52  ;;  %1174 = vpow2.f32 %v473_v47  ;;  %v399_v60 = vsub.f32 0.0, %v1500_v28  ;;  %v402_v33 = vsub.f32 0.0, %v1512_v44 }
 0x11a   :  { %v1157_v16 = vpop.eup %1156  ;;  %895 = vst [vmem:[#allocation2 + $0x20] sm:$0xff] %v1009_v1  ;;  %1176 = vpow2.f32 %v537_v26 }
 0x11b   :  { %v1159_v17 = vpop.eup %1158  ;;  %911 = vst [vmem:[#allocation2 + $0xa0] sm:$0xff] %v1025_v10  ;;  %1178 = vpow2.f32 %v475_v56  ;;  %v483_v28 = vmul.f32 1.442695, %v399_v60 }
 0x11c   :  { %v1161_v35 = vpop.eup %1160  ;;  %v1010_v20 = vpack.c.bf16 %v1159_v17, %v1155_v5  ;;  %1180 = vpow2.f32 %v539_v2 }
 0x11d   :  { %v1562_v22 = vpop.eup %1162  ;;  %v1026_v9 = vpack.c.bf16 %v1161_v35, %v1157_v16  ;;  %1182 = vpow2.f32 %v477_v11  ;;  %v400_v11 = vsub.f32 0.0, %v1504_v32  ;;  %v401_v35 = vsub.f32 0.0, %v1508_v38 }
 0x11e   :  { %v1564_v36 = vpop.eup %1164  ;;  %896 = vst [vmem:[#allocation2 + $0x28] sm:$0xff] %v1010_v20  ;;  %1184 = vpow2.f32 %v541_v8  ;;  %v545_v8 = vmul.f32 1.442695, %v430_v55  ;;  %v434_v38 = vsub.f32 0.0, %v1514_v48 }
 0x11f   :  { %v1167_v14 = vpop.eup %1166  ;;  %912 = vst [vmem:[#allocation2 + $0xa8] sm:$0xff] %v1026_v9  ;;  %1186 = vpow2.f32 %v479_v18  ;;  %v433_v9 = vsub.f32 0.0, %v1510_v39 }
 0x120   :  { %v1169_v24 = vpop.eup %1168  ;;  %v584_v25 = vadd.f32 1.0, %v1167_v14  ;;  %1188 = vpow2.f32 %v543_v21  ;;  %v547_v21 = vmul.f32 1.442695, %v431_v4  ;;  %v485_v14 = vmul.f32 1.442695, %v400_v11 }
 0x121   :  { %v1171_v27 = vpop.eup %1170  ;;  %v616_v30 = vadd.f32 1.0, %v1169_v24  ;;  %1190 = vpow2.f32 %v481_v23  ;;  %v553_v48 = vmul.f32 1.442695, %v434_v38 }
 0x122   :  { %v1173_v34 = vpop.eup %1172  ;;  %1192 = vrcp.f32 %v584_v25  ;;  %v585_v41 = vadd.f32 1.0, %v1171_v27  ;;  %v549_v25 = vmul.f32 1.442695, %v432_v15 }
 0x123   :  { %v1175_v37 = vpop.eup %1174  ;;  %1194 = vrcp.f32 %v616_v30  ;;  %v617_v40 = vadd.f32 1.0, %v1173_v34  ;;  %v403_v30 = vsub.f32 0.0, %v1516_v57 }
 0x124   :  { %v1177_v43 = vpop.eup %1176  ;;  %1196 = vrcp.f32 %v585_v41  ;;  %v586_v46 = vadd.f32 1.0, %v1175_v37  ;;  %v435_v41 = vsub.f32 0.0, %v1519_v61 }
 0x125   :  { %v1179_v49 = vpop.eup %1178  ;;  %1198 = vrcp.f32 %v617_v40  ;;  %v618_v47 = vadd.f32 1.0, %v1177_v43  ;;  %v489_v40 = vmul.f32 1.442695, %v402_v33  ;;  %v404_v43 = vsub.f32 0.0, %v1521_v0 }
 0x126   :  { %v1181_v50 = vpop.eup %1180  ;;  %1200 = vrcp.f32 %v586_v46  ;;  %v587_v52 = vadd.f32 1.0, %v1179_v49  ;;  %v436_v49 = vsub.f32 0.0, %v1524_v6  ;;  %v491_v57 = vmul.f32 1.442695, %v403_v30 }
 0x127   :  { %v1183_v26 = vpop.eup %1182  ;;  %1202 = vrcp.f32 %v618_v47  ;;  %v619_v63 = vadd.f32 1.0, %v1181_v50  ;;  %v555_v61 = vmul.f32 1.442695, %v435_v41  ;;  %v493_v55 = vmul.f32 1.442695, %v404_v43 }
 0x128   :  { %v1185_v56 = vpop.eup %1184  ;;  %1204 = vrcp.f32 %v587_v52  ;;  %v588_v3 = vadd.f32 1.0, %v1183_v26  ;;  %v557_v0 = vmul.f32 1.442695, %v436_v49  ;;  %v439_v41 = vsub.f32 0.0, %v1543_v42 }
 0x129   :  { %v1187_v1 = vpop.eup %1186  ;;  %1206 = vrcp.f32 %v619_v63  ;;  %v620_v2 = vadd.f32 1.0, %v1185_v56  ;;  %v409_v49 = vsub.f32 0.0, %v1551_v53 }
 0x12a   :  { %v1189_v5 = vpop.eup %1188  ;;  %1208 = vrcp.f32 %v588_v3  ;;  %v589_v10 = vadd.f32 1.0, %v1187_v1 }
 0x12b   :  { %v1191_v12 = vpop.eup %1190  ;;  %1210 = vrcp.f32 %v620_v2  ;;  %v621_v16 = vadd.f32 1.0, %v1189_v5  ;;  %v503_v53 = vmul.f32 1.442695, %v409_v49 }
 0x12c   :  { %v1193_v17 = vpop.eup %1192  ;;  %1212 = vrcp.f32 %v589_v10  ;;  %v590_v18 = vadd.f32 1.0, %v1191_v12 }
 0x12d   :  { %v1195_v20 = vpop.eup %1194  ;;  %v1011_v29 = vpack.c.bf16 %v1193_v17, %v1562_v22  ;;  %1214 = vrcp.f32 %v621_v16  ;;  %v487_v22 = vmul.f32 1.442695, %v401_v35 }
 0x12e   :  { %v1197_v32 = vpop.eup %1196  ;;  %v1027_v23 = vpack.c.bf16 %v1195_v20, %v1564_v36  ;;  %1216 = vrcp.f32 %v590_v18  ;;  %v551_v36 = vmul.f32 1.442695, %v433_v9 }
 0x12f   :  { %v1199_v24 = vpop.eup %1198  ;;  %897 = vst [vmem:[#allocation2 + $0x30] sm:$0xff] %v1011_v29  ;;  %1218 = vpow2.f32 %v545_v8 }
 0x130   :  { %v1201_v27 = vpop.eup %1200  ;;  %913 = vst [vmem:[#allocation2 + $0xb0] sm:$0xff] %v1027_v23  ;;  %1220 = vpow2.f32 %v483_v28  ;;  %v437_v23 = vsub.f32 0.0, %v1529_v13 }
 0x131   :  { %v1203_v39 = vpop.eup %1202  ;;  %v1012_v34 = vpack.c.bf16 %v1201_v27, %v1197_v32  ;;  %1222 = vpow2.f32 %v547_v21  ;;  %v405_v21 = vsub.f32 0.0, %v1526_v7  ;;  %v438_v27 = vsub.f32 0.0, %v1534_v19 }
 0x132   :  { %v1205_v37 = vpop.eup %1204  ;;  %v1028_v44 = vpack.c.bf16 %v1203_v39, %v1199_v24  ;;  %1224 = vpow2.f32 %v485_v14  ;;  %v406_v24 = vsub.f32 0.0, %v1531_v31  ;;  %v407_v7 = vsub.f32 0.0, %v1541_v45 }
 0x133   :  { %v1207_v46 = vpop.eup %1206  ;;  %898 = vst [vmem:[#allocation2 + $0x38] sm:$0xff] %v1012_v34  ;;  %1226 = vpow2.f32 %v549_v25  ;;  %v495_v39 = vmul.f32 1.442695, %v405_v21  ;;  %v559_v13 = vmul.f32 1.442695, %v437_v23 }
 0x134   :  { %v1209_v47 = vpop.eup %1208  ;;  %914 = vst [vmem:[#allocation2 + $0xb8] sm:$0xff] %v1028_v44  ;;  %1228 = vpow2.f32 %v487_v22  ;;  %v497_v44 = vmul.f32 1.442695, %v406_v24  ;;  %v561_v43 = vmul.f32 1.442695, %v438_v27 }
 0x135   :  { %v1211_v50 = vpop.eup %1210  ;;  %v1013_v52 = vpack.c.bf16 %v1209_v47, %v1205_v37  ;;  %1230 = vpow2.f32 %v551_v36  ;;  %v499_v45 = vmul.f32 1.442695, %v407_v7 }
 0x136   :  { %v1213_v26 = vpop.eup %1212  ;;  %v1029_v63 = vpack.c.bf16 %v1211_v50, %v1207_v46  ;;  %1232 = vpow2.f32 %v489_v40  ;;  %v408_v40 = vsub.f32 0.0, %v1546_v51  ;;  %v440_v46 = vsub.f32 0.0, %v1548_v62 }
 0x137   :  { %v1581_v56 = vpop.eup %1214  ;;  %899 = vst [vmem:[#allocation2 + $0x40] sm:$0xff] %v1013_v52  ;;  %1234 = vpow2.f32 %v553_v48  ;;  %v441_v50 = vsub.f32 0.0, %v1553_v54 }
 0x138   :  { %v1217_v3 = vpop.eup %1216  ;;  %915 = vst [vmem:[#allocation2 + $0xc0] sm:$0xff] %v1029_v63  ;;  %1236 = vpow2.f32 %v491_v57  ;;  %v563_v57 = vmul.f32 1.442695, %v439_v41  ;;  %v501_v51 = vmul.f32 1.442695, %v408_v40 }
 0x139   :  { %v1219_v6 = vpop.eup %1218  ;;  %v1014_v60 = vpack.c.bf16 %v1217_v3, %v1213_v26  ;;  %1238 = vpow2.f32 %v555_v61  ;;  %v410_v26 = vsub.f32 0.0, %v1556_v58  ;;  %v565_v62 = vmul.f32 1.442695, %v440_v46 }
 0x13a   :  { %v1221_v1 = vpop.eup %1220  ;;  %v622_v2 = vadd.f32 1.0, %v1219_v6  ;;  %1240 = vpow2.f32 %v493_v55  ;;  %v442_v55 = vsub.f32 0.0, %v1558_v59  ;;  %v567_v54 = vmul.f32 1.442695, %v441_v50 }
 0x13b   :  { %v1223_v4 = vpop.eup %1222  ;;  %900 = vst [vmem:[#allocation2 + $0x48] sm:$0xff] %v1014_v60  ;;  %v591_v5 = vadd.f32 1.0, %v1221_v1  ;;  %1242 = vpow2.f32 %v557_v0  ;;  %v505_v1 = vmul.f32 1.442695, %v410_v26 }
 0x13c   :  { %v1225_v10 = vpop.eup %1224  ;;  %1244 = vrcp.f32 %v622_v2  ;;  %v623_v11 = vadd.f32 1.0, %v1223_v4  ;;  %v569_v58 = vmul.f32 1.442695, %v442_v55 }
 0x13d   :  { %v1227_v12 = vpop.eup %1226  ;;  %1246 = vrcp.f32 %v591_v5  ;;  %v592_v16 = vadd.f32 1.0, %v1225_v10 }
 0x13e   :  { %v1229_v8 = vpop.eup %1228  ;;  %1248 = vrcp.f32 %v623_v11  ;;  %v624_v15 = vadd.f32 1.0, %v1227_v12 }
 0x13f   :  { %v1231_v17 = vpop.eup %1230  ;;  %1250 = vrcp.f32 %v592_v16  ;;  %v593_v18 = vadd.f32 1.0, %v1229_v8 }
 0x140   :  { %v1233_v28 = vpop.eup %1232  ;;  %1252 = vrcp.f32 %v624_v15  ;;  %v625_v35 = vadd.f32 1.0, %v1231_v17 }
 0x141   :  { %v1235_v20 = vpop.eup %1234  ;;  %1254 = vrcp.f32 %v593_v18  ;;  %v594_v29 = vadd.f32 1.0, %v1233_v28 }
 0x142   :  { %v1237_v9 = vpop.eup %1236  ;;  %1256 = vrcp.f32 %v625_v35  ;;  %v626_v32 = vadd.f32 1.0, %v1235_v20 }
 0x143   :  { %v1239_v14 = vpop.eup %1238  ;;  %1258 = vrcp.f32 %v594_v29  ;;  %v595_v33 = vadd.f32 1.0, %v1237_v9 }
 0x144   :  { %v1241_v25 = vpop.eup %1240  ;;  %1260 = vrcp.f32 %v626_v32  ;;  %v627_v38 = vadd.f32 1.0, %v1239_v14 }
 0x145   :  { %v1243_v22 = vpop.eup %1242  ;;  %1262 = vrcp.f32 %v595_v33  ;;  %v596_v30 = vadd.f32 1.0, %v1241_v25 }
 0x146   :  { %v1245_v34 = vpop.eup %1244  ;;  %1264 = vrcp.f32 %v627_v38  ;;  %v628_v36 = vadd.f32 1.0, %v1243_v22 }
 0x147   :  { %v1247_v37 = vpop.eup %1246  ;;  %v1030_v31 = vpack.c.bf16 %v1245_v34, %v1581_v56  ;;  %1266 = vrcp.f32 %v596_v30 }
 0x148   :  { %v1249_v19 = vpop.eup %1248  ;;  %1268 = vrcp.f32 %v628_v36 }
 0x149   :  { %v1251_v48 = vpop.eup %1250  ;;  %916 = vst [vmem:[#allocation2 + $0xc8] sm:$0xff] %v1030_v31  ;;  %1270 = vpow2.f32 %v495_v39 }
 0x14a   :  { %v1253_v47 = vpop.eup %1252  ;;  %v1015_v42 = vpack.c.bf16 %v1251_v48, %v1247_v37  ;;  %1272 = vpow2.f32 %v559_v13 }
 0x14b   :  { %v1255_v52 = vpop.eup %1254  ;;  %v1031_v61 = vpack.c.bf16 %v1253_v47, %v1249_v19  ;;  %1274 = vpow2.f32 %v497_v44 }
 0x14c   :  { %v1257_v63 = vpop.eup %1256  ;;  %901 = vst [vmem:[#allocation2 + $0x50] sm:$0xff] %v1015_v42  ;;  %1276 = vpow2.f32 %v561_v43 }
 0x14d   :  { %v1259_v56 = vpop.eup %1258  ;;  %917 = vst [vmem:[#allocation2 + $0xd0] sm:$0xff] %v1031_v61  ;;  %1278 = vpow2.f32 %v499_v45 }
 0x14e   :  { %v1261_v0 = vpop.eup %1260  ;;  %v1016_v3 = vpack.c.bf16 %v1259_v56, %v1255_v52  ;;  %1280 = vpow2.f32 %v563_v57 }
 0x14f   :  { %v1263_v6 = vpop.eup %1262  ;;  %v1032_v60 = vpack.c.bf16 %v1261_v0, %v1257_v63  ;;  %1282 = vpow2.f32 %v501_v51 }
 0x150   :  { %v1265_v2 = vpop.eup %1264  ;;  %902 = vst [vmem:[#allocation2 + $0x58] sm:$0xff] %v1016_v3  ;;  %1284 = vpow2.f32 %v565_v62 }
 0x151   :  { %v1267_v4 = vpop.eup %1266  ;;  %918 = vst [vmem:[#allocation2 + $0xd8] sm:$0xff] %v1032_v60  ;;  %1286 = vpow2.f32 %v503_v53 }
 0x152   :  { %v1269_v59 = vpop.eup %1268  ;;  %v1017_v5 = vpack.c.bf16 %v1267_v4, %v1263_v6  ;;  %1288 = vpow2.f32 %v567_v54 }
 0x153   :  { %v1271_v10 = vpop.eup %1270  ;;  %v1033_v11 = vpack.c.bf16 %v1269_v59, %v1265_v2  ;;  %1290 = vpow2.f32 %v505_v1 }
 0x154   :  { %v1273_v12 = vpop.eup %1272  ;;  %903 = vst [vmem:[#allocation2 + $0x60] sm:$0xff] %v1017_v5  ;;  %v597_v16 = vadd.f32 1.0, %v1271_v10  ;;  %1292 = vpow2.f32 %v569_v58 }
 0x155   :  { %v1275_v8 = vpop.eup %1274  ;;  %919 = vst [vmem:[#allocation2 + $0xe0] sm:$0xff] %v1033_v11  ;;  %v629_v15 = vadd.f32 1.0, %v1273_v12 }
 0x156   :  { %v1277_v17 = vpop.eup %1276  ;;  %1294 = vrcp.f32 %v597_v16  ;;  %v598_v18 = vadd.f32 1.0, %v1275_v8 }
 0x157   :  { %v1279_v28 = vpop.eup %1278  ;;  %1296 = vrcp.f32 %v629_v15  ;;  %v630_v35 = vadd.f32 1.0, %v1277_v17 }
 0x158   :  { %v1281_v20 = vpop.eup %1280  ;;  %1298 = vrcp.f32 %v598_v18  ;;  %v599_v29 = vadd.f32 1.0, %v1279_v28 }
 0x159   :  { %v1283_v21 = vpop.eup %1282  ;;  %1300 = vrcp.f32 %v630_v35  ;;  %v631_v9 = vadd.f32 1.0, %v1281_v20 }
 0x15a   :  { %v1285_v32 = vpop.eup %1284  ;;  %1302 = vrcp.f32 %v599_v29  ;;  %v600_v23 = vadd.f32 1.0, %v1283_v21 }
 0x15b   :  { %v1287_v14 = vpop.eup %1286  ;;  %1304 = vrcp.f32 %v631_v9  ;;  %v632_v33 = vadd.f32 1.0, %v1285_v32 }
 0x15c   :  { %v1289_v24 = vpop.eup %1288  ;;  %1306 = vrcp.f32 %v600_v23  ;;  %v601_v25 = vadd.f32 1.0, %v1287_v14 }
 0x15d   :  { %v1291_v38 = vpop.eup %1290  ;;  %1308 = vrcp.f32 %v632_v33  ;;  %v633_v27 = vadd.f32 1.0, %v1289_v24 }
 0x15e   :  { %v1293_v22 = vpop.eup %1292  ;;  %1310 = vrcp.f32 %v601_v25  ;;  %v602_v30 = vadd.f32 1.0, %v1291_v38 }
 0x15f   :  { %1312 = vrcp.f32 %v633_v27  ;;  %v634_v39 = vadd.f32 1.0, %v1293_v22 }
 0x160   :  { %v1295_v7 = vpop.eup %1294  ;;  %1314 = vrcp.f32 %v602_v30 }
 0x161   :  { %v1297_v34 = vpop.eup %1296  ;;  %1316 = vrcp.f32 %v634_v39 }
 0x162   :  { %v1299_v36 = vpop.eup %1298 }
 0x163   :  { %v1301_v13 = vpop.eup %1300  ;;  %v1018_v41 = vpack.c.bf16 %v1299_v36, %v1295_v7 }
 0x164   :  { %v1303_v37 = vpop.eup %1302  ;;  %v1034_v31 = vpack.c.bf16 %v1301_v13, %v1297_v34 }
 0x165   :  { %v1305_v44 = vpop.eup %1304  ;;  %904 = vst [vmem:[#allocation2 + $0x68] sm:$0xff] %v1018_v41 }
 0x166   :  { %v1307_v40 = vpop.eup %1306  ;;  %920 = vst [vmem:[#allocation2 + $0xe8] sm:$0xff] %v1034_v31 }
 0x167   :  { %v1309_v19 = vpop.eup %1308  ;;  %v1019_v43 = vpack.c.bf16 %v1307_v40, %v1303_v37 }
 0x168   :  { %v1311_v46 = vpop.eup %1310  ;;  %v1035_v48 = vpack.c.bf16 %v1309_v19, %v1305_v44 }
 0x169   :  { %v1313_v45 = vpop.eup %1312  ;;  %905 = vst [vmem:[#allocation2 + $0x70] sm:$0xff] %v1019_v43 }
 0x16a   :  { %v1315_v49 = vpop.eup %1314  ;;  %921 = vst [vmem:[#allocation2 + $0xf0] sm:$0xff] %v1035_v48 }
 0x16b   :  { %v1317_v47 = vpop.eup %1316  ;;  %v1020_v42 = vpack.c.bf16 %v1315_v49, %v1311_v46 }
 0x16c   :  { %v1036_v57 = vpack.c.bf16 %v1317_v47, %v1313_v45 }
 0x16d   :  { %906 = vst [vmem:[#allocation2 + $0x78] sm:$0xff] %v1020_v42 }
 0x16e   :  { %922 = vst [vmem:[#allocation2 + $0xf8] sm:$0xff] %v1036_v57 }
 0x16f   :  { %1329 = shalt.err (!%p1326_p4)
}
 0x170   :  { %s1330_s19 = scalar_lea.hbm %s1610_s2, 4096 }
 0x171   :  { %p1331_p5 = scmp.ne.s32.totalorder %s1610_s2, %s1330_s19  ;;  %p1334_p6 = scmp.lt.u32.totalorder %s1330_s19, %s1610_s2 }
 0x173   :  { %p1336_p7 = pnand %p1334_p6, %p1331_p5 }
 0x175   :  { %1339 = shalt.err (!%p1336_p7)
}
 0x176   :  { %s1344_s24 = smov 128   ;;  %s1345_s25 = smov 8  }
 0x177   :  { %934 = dma.vmem_to_hbm [thread:$0]  %s929_s16, 4096, %s1610_s2, [#allocation3], %s1344_s24, %s1344_s24, %s1345_s25  }
 0x178   :  { %1340 = dma.done.wait [#allocation3], 4096  }
 0x179   :  { %1341 = vsyncadd [#allocation3], 4294963200 }
 0x17a   :  { %938 = vsyncpa [#allocation3], 1 }

</bundles_post_ra>
